<compile_context>
chip_gen: v7x
topology: tpu7x:2x2x1
jax: 0.10.0
libtpu: 0.0.40
codegen_flags: <defaults>
</compile_context>

<pallas_src>
import functools
import math

import jax
import jax.numpy as jnp
import numpy as np
from jax.experimental import pallas as pl
from jax.experimental.pallas import tpu as pltpu


# ----------------------------- kernel helpers ------------------------------


def _layer_norm(x, gamma, beta, eps=1e-6):
    # x: (M, H) f32; gamma/beta: (1, H) f32.
    mu = jnp.mean(x, axis=-1, keepdims=True)
    var = jnp.mean(jnp.square(x - mu), axis=-1, keepdims=True)
    return (x - mu) * jax.lax.rsqrt(var + eps) * gamma + beta


def decoder_layer_kernel(x_ref, mem_ref, tgt_pad_ref, src_pad_ref,
                         attn_w_ref, attn_b_ref, o_w_ref, o_b_ref,
                         ln_g_ref, ln_b_ref, w1_ref, b1_ref, w2_ref, b2_ref,
                         out_ref, attn_ref, inorm_ref,
                         *, heads, d_head, bb, tq, ts, ts_pad, ff_chunk):
    scale = 1.0 / math.sqrt(d_head)

    x = x_ref[...]                # (bb*tq, H) f32   (batch folded into M)
    mem_bf = mem_ref[...]         # (bb*ts, H) bf16  (DMA'd in bf16)

    # ---- attention biases built in-kernel from compact pad vectors ----------
    tgt_pad = tgt_pad_ref[...]    # (bb, 1, tq), 1.0 = padded target position
    src_pad = src_pad_ref[...]    # (bb, 1, ts), 1.0 = padded source position
    q_idx = jax.lax.broadcasted_iota(jnp.int32, (tq, tq), 0)
    k_idx = jax.lax.broadcasted_iota(jnp.int32, (tq, tq), 1)
    causal = (k_idx > q_idx)[None, :, :]                        # (1, tq, tq)
    dec_bias = jnp.where(jnp.logical_or(causal, tgt_pad > 0.0),
                         -1e18, 0.0)                            # (bb, tq, tq)
    src_bias = jnp.where(src_pad > 0.0, -1e18, 0.0)             # (bb, 1, ts)

    def attention(q_bf, kv_bf, kv_rows, slot, bias, want_attn):
        """Multi-head attention. q_bf: (bb*tq, H) bf16, kv_bf: (bb*kv_rows, H) bf16.

        slot 0 = self-attention weights, slot 1 = context-attention weights.
        All per-head weights come pre-split from the wrapper, so every matmul
        is a dense 2-D (or bb-batched 3-D) MXU op with no lane-unaligned
        slicing, no stacking, and no scratch merge.
        """
        base = 3 * heads * slot
        o_base = heads * slot
        out = None
        attn0 = None
        for h in range(heads):
            bq = attn_b_ref[base + h:base + h + 1, :]
            bk = attn_b_ref[base + heads + h:base + heads + h + 1, :]
            bv = attn_b_ref[base + 2 * heads + h:base + 2 * heads + h + 1, :]
            q_h = jnp.dot(q_bf, attn_w_ref[base + h],
                          preferred_element_type=jnp.float32) + bq
            k_h = jnp.dot(kv_bf, attn_w_ref[base + heads + h],
                          preferred_element_type=jnp.float32) + bk
            v_h = jnp.dot(kv_bf, attn_w_ref[base + 2 * heads + h],
                          preferred_element_type=jnp.float32) + bv
            q_h = (q_h * scale).astype(jnp.bfloat16).reshape(bb, tq, d_head)
            k_h = k_h.astype(jnp.bfloat16).reshape(bb, kv_rows, d_head)
            v_h = v_h.astype(jnp.bfloat16).reshape(bb, kv_rows, d_head)

            # Scores batched over the batch block; bias broadcast-added
            # (no heads-times concatenation of the bias tensor).
            s = jnp.einsum('bqd,bkd->bqk', q_h, k_h,
                           preferred_element_type=jnp.float32) + bias
            s = s - jnp.max(s, axis=-1, keepdims=True)
            e = jnp.exp(s)                                       # f32
            inv = pl.reciprocal(jnp.sum(e, axis=-1, keepdims=True), approx=True)
            ctx = jnp.einsum('bqk,bkd->bqd', e.astype(jnp.bfloat16), v_h,
                             preferred_element_type=jnp.float32) * inv

            # Output projection folded into the head loop:
            #   out = sum_h ctx_h @ W_o[h]   (f32 accumulation, no scratch)
            contrib = jnp.dot(
                ctx.reshape(bb * tq, d_head).astype(jnp.bfloat16),
                o_w_ref[o_base + h], preferred_element_type=jnp.float32)
            out = contrib if out is None else out + contrib
            if want_attn and h == 0:
                attn0 = e * inv                                  # head 0 probs
        out = out + o_b_ref[slot:slot + 1, :]
        return out, attn0

    # ---- layer_norm_1 + masked self-attention (+ residual) -----------------
    input_norm = _layer_norm(x, ln_g_ref[0:1, :], ln_b_ref[0:1, :])
    inorm_bf = input_norm.astype(jnp.bfloat16)
    self_out, _ = attention(inorm_bf, inorm_bf, tq, 0, dec_bias, False)
    query = self_out + x                # dropout == identity (eval mode)

    # ---- layer_norm_2 + context attention over memory_bank (+ residual) ----
    query_norm = _layer_norm(query, ln_g_ref[1:2, :], ln_b_ref[1:2, :])
    ctx_out, attn0 = attention(query_norm.astype(jnp.bfloat16), mem_bf, ts,
                               1, src_bias, True)
    ff_in = ctx_out + query

    # ---- PositionwiseFeedForward: LN -> W1 -> ReLU -> W2 -> residual -------
    # d_ff is processed in chunks so the (rows, d_ff) intermediate and the
    # W1/W2 tiles stay bounded (v7x 64 MiB/TC VMEM budget).
    ff_norm_bf = _layer_norm(ff_in, ln_g_ref[2:3, :],
                             ln_b_ref[2:3, :]).astype(jnp.bfloat16)
    d_ff = w1_ref.shape[1]
    ff_out = ff_in + b2_ref[...]
    # TODO(synk): switch to lax.fori_loop + pl.ds for very large chunk counts.
    for c in range(d_ff // ff_chunk):
        lo, hi = c * ff_chunk, (c + 1) * ff_chunk
        inter = jnp.maximum(
            jnp.dot(ff_norm_bf, w1_ref[:, lo:hi],
                    preferred_element_type=jnp.float32) + b1_ref[:, lo:hi],
            0.0)
        ff_out = ff_out + jnp.dot(inter.astype(jnp.bfloat16), w2_ref[lo:hi, :],
                                  preferred_element_type=jnp.float32)

    out_ref[...] = ff_out.astype(out_ref.dtype)
    inorm_ref[...] = input_norm.astype(inorm_ref.dtype)   # bf16 writeback

    # Lane-dense attention-probability store: pad the last dim to a multiple
    # of 128 (padding columns are zero; the wrapper slices them off).
    if ts_pad > ts:
        zpad = jnp.broadcast_to(attn0[:, :, :1] * 0.0, (bb, tq, ts_pad - ts))
        attn0 = jnp.concatenate([attn0, zpad], axis=-1)
    attn_ref[...] = attn0.astype(attn_ref.dtype)


# ------------------------------- wrapper ------------------------------------


def transformer_decoder_layer(inputs, memory_bank, src_pad, tgt_pad, params,
                              heads, batch_block=None):
    """TransformerDecoderLayer forward (eval mode).

    src_pad / tgt_pad are compact per-token padding vectors (B, Ts) / (B, Tt)
    with 1.0 marking padded positions; the (B, T, T) boolean masks of the
    PyTorch forward are rebuilt inside the kernel from these.
    """
    B, Tt, H = inputs.shape
    Ts = memory_bank.shape[1]
    d_ff = params["w1"].shape[1]
    assert H % heads == 0
    d_head = H // heads
    Ts_pad = ((Ts + 127) // 128) * 128      # lane-dense attn output width

    # ---- batch-block selection: target ~256 rows per grid step -------------
    # (fills the v6e 2x256 MXU M dim; v5e is already full at 128 rows).
    if batch_block is None:
        def _ok(bbv):
            if B % bbv:
                return False
            # when bb < B the flattened blocks must respect sublane tiling
            return bbv == B or ((bbv * Tt) % 8 == 0 and (bbv * Ts) % 8 == 0)
        bb = min(B, max(1, 256 // max(Tt, 1)))
        while bb > 1 and not _ok(bb):
            bb -= 1
        if not _ok(bb):
            bb = B
    else:
        bb = batch_block
    n_blocks = B // bb
    # TODO(synk): on v7x prefer bb such that n_blocks is a multiple of 2.

    # ---- weights: pre-split per head in the wrapper (free host reshapes) ----
    def _split_qkv(w3, b3):
        # w3: (3, H, H) rows [q, k, v]; returns (3*heads, H, d_head), (3*heads, d_head)
        ws = [w3[i].reshape(H, heads, d_head).transpose(1, 0, 2) for i in range(3)]
        bs = [b3[i].reshape(heads, d_head) for i in range(3)]
        return jnp.concatenate(ws, axis=0), jnp.concatenate(bs, axis=0)

    sw, sb = _split_qkv(params["self_w"][:3], params["self_b"][:3])
    cw, cb = _split_qkv(params["ctx_w"][:3], params["ctx_b"][:3])
    attn_w = jnp.concatenate([sw, cw], axis=0).astype(jnp.bfloat16)   # (6h, H, dh)
    attn_b = jnp.concatenate([sb, cb], axis=0).astype(jnp.float32)    # (6h, dh)
    o_w = jnp.concatenate(
        [params["self_w"][3].reshape(heads, d_head, H),
         params["ctx_w"][3].reshape(heads, d_head, H)],
        axis=0).astype(jnp.bfloat16)                                  # (2h, dh, H)
    o_b = jnp.stack([params["self_b"][3], params["ctx_b"][3]], axis=0)  # (2, H)
    w1 = params["w1"].astype(jnp.bfloat16)
    w2 = params["w2"].astype(jnp.bfloat16)

    # d_ff chunking: bound the FFN intermediate working set.
    ff_chunk = d_ff
    if d_ff > 512:
        for cand in (512, 448, 384, 320, 256, 192, 128):
            if d_ff % cand == 0:
                ff_chunk = cand
                break

    x2d = inputs.reshape(B * Tt, H)                                  # f32 (parity)
    mem2d = memory_bank.reshape(B * Ts, H).astype(jnp.bfloat16)      # bf16 DMA
    tgt_pad3 = tgt_pad.astype(jnp.float32).reshape(B, 1, Tt)
    src_pad3 = src_pad.astype(jnp.float32).reshape(B, 1, Ts)

    kernel = functools.partial(decoder_layer_kernel, heads=heads,
                               d_head=d_head, bb=bb, tq=Tt, ts=Ts,
                               ts_pad=Ts_pad, ff_chunk=ff_chunk)

    # ---- VMEM budget derived from the actual block footprint ---------------
    def _nbytes(a):
        return int(np.prod(a.shape)) * a.dtype.itemsize
    weight_bytes = sum(_nbytes(a) for a in
                       (attn_w, attn_b, o_w, o_b, params["ln_g"],
                        params["ln_b"], w1, params["b1"], w2, params["b2"]))
    block_io_bytes = (bb * Tt * H * 4 + bb * Ts * H * 2 + bb * (Tt + Ts) * 4
                      + bb * Tt * H * 4 + bb * Tt * Ts_pad * 4 + bb * Tt * H * 2)
    work_bytes = (bb * Tt * max(Tt, Ts) * 4 * 4        # per-head score tensors
                  + bb * Tt * ff_chunk * 4 * 2         # FFN chunk intermediate
                  + bb * Tt * H * 4 * 8)               # residuals / norms / acc
    vmem_limit = int(min(100 * 2 ** 20,
                         max(32 * 2 ** 20,
                             2 * (weight_bytes + block_io_bytes)
                             + work_bytes + (8 << 20))))
    # TODO(synk): cap at ~56 MiB/TC on v7x and single-buffer the constant
    #             weight BlockSpecs (pipeline_mode=pl.Buffered(1)) there.

    grid_spec = pltpu.PrefetchScalarGridSpec(
        num_scalar_prefetch=0,
        grid=(n_blocks,),
        in_specs=[
            pl.BlockSpec((bb * Tt, H), lambda i: (i, 0)),       # inputs (flat f32)
            pl.BlockSpec((bb * Ts, H), lambda i: (i, 0)),       # memory (flat bf16)
            pl.BlockSpec((bb, 1, Tt), lambda i: (i, 0, 0)),     # tgt pad vector
            pl.BlockSpec((bb, 1, Ts), lambda i: (i, 0, 0)),     # src pad vector
            pl.BlockSpec((6 * heads, H, d_head), lambda i: (0, 0, 0)),  # QKV W
            pl.BlockSpec((6 * heads, d_head), lambda i: (0, 0)),        # QKV b
            pl.BlockSpec((2 * heads, d_head, H), lambda i: (0, 0, 0)),  # out-proj W
            pl.BlockSpec((2, H), lambda i: (0, 0)),                     # out-proj b
            pl.BlockSpec((3, H), lambda i: (0, 0)),             # LN gammas
            pl.BlockSpec((3, H), lambda i: (0, 0)),             # LN betas
            pl.BlockSpec((H, d_ff), lambda i: (0, 0)),          # FFN W1
            pl.BlockSpec((1, d_ff), lambda i: (0, 0)),          # FFN b1
            pl.BlockSpec((d_ff, H), lambda i: (0, 0)),          # FFN W2
            pl.BlockSpec((1, H), lambda i: (0, 0)),             # FFN b2
        ],
        out_specs=[
            pl.BlockSpec((bb * Tt, H), lambda i: (i, 0)),        # output (f32)
            pl.BlockSpec((bb, Tt, Ts_pad), lambda i: (i, 0, 0)), # attn (lane-dense)
            pl.BlockSpec((bb * Tt, H), lambda i: (i, 0)),        # input_norm (bf16)
        ],
    )
    out_shape = (
        jax.ShapeDtypeStruct((B * Tt, H), jnp.float32),
        jax.ShapeDtypeStruct((B, Tt, Ts_pad), jnp.float32),
        jax.ShapeDtypeStruct((B * Tt, H), jnp.bfloat16),
    )
    out2d, attn_pad, inorm2d = pl.pallas_call(
        kernel,
        out_shape=out_shape,
        grid_spec=grid_spec,
        compiler_params=pltpu.CompilerParams(
            dimension_semantics=("parallel",),
            vmem_limit_bytes=vmem_limit),
    )(x2d, mem2d, tgt_pad3, src_pad3, attn_w, attn_b, o_w, o_b,
      params["ln_g"], params["ln_b"], w1, params["b1"], w2, params["b2"])

    return (out2d.reshape(B, Tt, H),
            attn_pad[:, :, :Ts],
            inorm2d.astype(jnp.float32).reshape(B, Tt, H))


# --------------------------- params & reference ------------------------------


def init_params(key, hidden, heads, d_ff):
    ks = jax.random.split(key, 8)
    s = 0.05
    return dict(
        self_w=s * jax.random.normal(ks[0], (4, hidden, hidden), jnp.float32),
        self_b=s * jax.random.normal(ks[1], (4, hidden), jnp.float32),
        ctx_w=s * jax.random.normal(ks[2], (4, hidden, hidden), jnp.float32),
        ctx_b=s * jax.random.normal(ks[3], (4, hidden), jnp.float32),
        ln_g=jnp.ones((3, hidden), jnp.float32),
        ln_b=jnp.zeros((3, hidden), jnp.float32),
        w1=s * jax.random.normal(ks[4], (hidden, d_ff), jnp.float32),
        b1=s * jax.random.normal(ks[5], (1, d_ff), jnp.float32),
        w2=s * jax.random.normal(ks[6], (d_ff, hidden), jnp.float32),
        b2=s * jax.random.normal(ks[7], (1, hidden), jnp.float32),
    )


def reference_forward(inputs, memory_bank, src_pad, tgt_pad, p, heads):
    """Pure-JAX f32 reference mirroring the PyTorch forward (eval mode)."""
    B, Tt, H = inputs.shape
    Ts = memory_bank.shape[1]
    d_head = H // heads
    sub = jnp.triu(jnp.ones((Tt, Tt), jnp.float32), k=1)
    dec_mask = (tgt_pad[:, None, :] + sub[None]) > 0                 # (B,Tt,Tt)
    src_mask = jnp.broadcast_to(src_pad[:, None, :] > 0, (B, Tt, Ts))

    def ln(x, g, b):
        mu = x.mean(-1, keepdims=True)
        var = ((x - mu) ** 2).mean(-1, keepdims=True)
        return (x - mu) / jnp.sqrt(var + 1e-6) * g + b

    def mha(q_in, kv_in, W, bv, mask):
        q = q_in @ W[0] + bv[0]
        k = kv_in @ W[1] + bv[1]
        v = kv_in @ W[2] + bv[2]
        Tq, Tk = q.shape[1], k.shape[1]
        qh = q.reshape(B, Tq, heads, d_head).transpose(0, 2, 1, 3) / math.sqrt(d_head)
        kh = k.reshape(B, Tk, heads, d_head).transpose(0, 2, 1, 3)
        vh = v.reshape(B, Tk, heads, d_head).transpose(0, 2, 1, 3)
        s = jnp.einsum('bhqd,bhkd->bhqk', qh, kh)
        s = jnp.where(mask[:, None, :, :], -1e18, s)
        a = jax.nn.softmax(s, axis=-1)
        ctx = jnp.einsum('bhqk,bhkd->bhqd', a, vh)
        ctx = ctx.transpose(0, 2, 1, 3).reshape(B, Tq, H)
        return ctx @ W[3] + bv[3], a[:, 0]

    inorm = ln(inputs, p["ln_g"][0], p["ln_b"][0])
    q_self, _ = mha(inorm, inorm, p["self_w"], p["self_b"], dec_mask)
    query = q_self + inputs
    qnorm = ln(query, p["ln_g"][1], p["ln_b"][1])
    mid, attn = mha(qnorm, memory_bank, p["ctx_w"], p["ctx_b"], src_mask)
    ff_in = mid + query
    ffn = ln(ff_in, p["ln_g"][2], p["ln_b"][2])
    inter = jax.nn.relu(ffn @ p["w1"] + p["b1"][0])
    out = inter @ p["w2"] + p["b2"][0] + ff_in
    return out, attn, inorm


# --------------------------------- main --------------------------------------


if __name__ == "__main__":
    B, Tt, Ts, HIDDEN, HEADS, DFF = 2, 8, 10, 32, 4, 64

    key = jax.random.PRNGKey(0)
    k_in, k_mem, k_par = jax.random.split(key, 3)
    inputs = jax.random.normal(k_in, (B, Tt, HIDDEN), jnp.float32)
    memory_bank = jax.random.normal(k_mem, (B, Ts, HIDDEN), jnp.float32)
    params = init_params(k_par, HIDDEN, HEADS, DFF)

    # per-token padding vectors (1 = pad): batch 1 has 2 padded src tokens and
    # 1 padded tgt token.
    src_pad = jnp.zeros((B, Ts), jnp.float32).at[1, Ts - 2:].set(1.0)
    tgt_pad = jnp.zeros((B, Tt), jnp.float32).at[1, Tt - 1:].set(1.0)

    out, attn, input_norm = transformer_decoder_layer(
        inputs, memory_bank, src_pad, tgt_pad, params, HEADS)
    jax.block_until_ready((out, attn, input_norm))

    ref_out, ref_attn, ref_inorm = reference_forward(
        inputs, memory_bank, src_pad, tgt_pad, params, HEADS)

    # tolerances account for bf16 MXU operands / bf16 memory_bank DMA /
    # bf16 input_norm writeback / approx softmax reciprocal (f32 reference).
    np.testing.assert_allclose(np.asarray(out), np.asarray(ref_out),
                               rtol=3e-2, atol=2e-2)
    np.testing.assert_allclose(np.asarray(attn), np.asarray(ref_attn),
                               rtol=3e-2, atol=1e-2)
    np.testing.assert_allclose(np.asarray(input_norm), np.asarray(ref_inorm),
                               rtol=1e-2, atol=3e-3)

    print("KERNEL_OK")
</pallas_src>

<mosaic_0001>
module attributes {stable_mosaic.version = 11 : i64} {
  func.func @decoder_layer_kernel(%arg0: i32, %arg1: memref<16x32xf32, #tpu.memory_space<vmem>>, %arg2: memref<20x32xbf16, #tpu.memory_space<vmem>>, %arg3: memref<2x1x8xf32, #tpu.memory_space<vmem>>, %arg4: memref<2x1x10xf32, #tpu.memory_space<vmem>>, %arg5: memref<24x32x8xbf16, #tpu.memory_space<vmem>>, %arg6: memref<24x8xf32, #tpu.memory_space<vmem>>, %arg7: memref<8x8x32xbf16, #tpu.memory_space<vmem>>, %arg8: memref<2x32xf32, #tpu.memory_space<vmem>>, %arg9: memref<3x32xf32, #tpu.memory_space<vmem>>, %arg10: memref<3x32xf32, #tpu.memory_space<vmem>>, %arg11: memref<32x64xbf16, #tpu.memory_space<vmem>>, %arg12: memref<1x64xf32, #tpu.memory_space<vmem>>, %arg13: memref<64x32xbf16, #tpu.memory_space<vmem>>, %arg14: memref<1x32xf32, #tpu.memory_space<vmem>>, %arg15: memref<16x32xf32, #tpu.memory_space<vmem>>, %arg16: memref<2x8x128xf32, #tpu.memory_space<vmem>>, %arg17: memref<16x32xbf16, #tpu.memory_space<vmem>>) attributes {dimension_semantics = [#tpu.dimension_semantics<parallel>], iteration_bounds = array<i64: 1>, scalar_prefetch = 0 : i64, scratch_operands = 0 : i64, tpu.core_type = #tpu.core_type<tc>, window_params = [{transform_indices = @transform_0, window_bounds = array<i64: 16, 32>}, {transform_indices = @transform_1, window_bounds = array<i64: 20, 32>}, {transform_indices = @transform_2, window_bounds = array<i64: 2, 1, 8>}, {transform_indices = @transform_3, window_bounds = array<i64: 2, 1, 10>}, {pipeline_mode = #tpu.pipeline_mode<synchronous>, transform_indices = @transform_4, window_bounds = array<i64: 24, 32, 8>}, {pipeline_mode = #tpu.pipeline_mode<synchronous>, transform_indices = @transform_5, window_bounds = array<i64: 24, 8>}, {pipeline_mode = #tpu.pipeline_mode<synchronous>, transform_indices = @transform_6, window_bounds = array<i64: 8, 8, 32>}, {pipeline_mode = #tpu.pipeline_mode<synchronous>, transform_indices = @transform_7, window_bounds = array<i64: 2, 32>}, {pipeline_mode = #tpu.pipeline_mode<synchronous>, transform_indices = @transform_8, window_bounds = array<i64: 3, 32>}, {pipeline_mode = #tpu.pipeline_mode<synchronous>, transform_indices = @transform_9, window_bounds = array<i64: 3, 32>}, {pipeline_mode = #tpu.pipeline_mode<synchronous>, transform_indices = @transform_10, window_bounds = array<i64: 32, 64>}, {pipeline_mode = #tpu.pipeline_mode<synchronous>, transform_indices = @transform_11, window_bounds = array<i64: 1, 64>}, {pipeline_mode = #tpu.pipeline_mode<synchronous>, transform_indices = @transform_12, window_bounds = array<i64: 64, 32>}, {pipeline_mode = #tpu.pipeline_mode<synchronous>, transform_indices = @transform_13, window_bounds = array<i64: 1, 32>}, {transform_indices = @transform_14, window_bounds = array<i64: 16, 32>}, {transform_indices = @transform_15, window_bounds = array<i64: 2, 8, 128>}, {transform_indices = @transform_16, window_bounds = array<i64: 16, 32>}]} {
    %c0 = arith.constant 0 : index
    %c0_0 = arith.constant 0 : index
    %0 = vector.load %arg1[%c0, %c0_0] : memref<16x32xf32, #tpu.memory_space<vmem>>, vector<16x32xf32>
    %c0_1 = arith.constant 0 : index
    %c0_2 = arith.constant 0 : index
    %1 = vector.load %arg2[%c0_1, %c0_2] : memref<20x32xbf16, #tpu.memory_space<vmem>>, vector<20x32xbf16>
    %c0_3 = arith.constant 0 : index
    %c0_4 = arith.constant 0 : index
    %c0_5 = arith.constant 0 : index
    %2 = vector.load %arg3[%c0_3, %c0_4, %c0_5] : memref<2x1x8xf32, #tpu.memory_space<vmem>>, vector<2x1x8xf32>
    %c0_6 = arith.constant 0 : index
    %c0_7 = arith.constant 0 : index
    %c0_8 = arith.constant 0 : index
    %3 = vector.load %arg4[%c0_6, %c0_7, %c0_8] : memref<2x1x10xf32, #tpu.memory_space<vmem>>, vector<2x1x10xf32>
    %4 = tpu.iota {dimensions = array<i32: 0>} : vector<8x8xi32>
    %5 = tpu.iota {dimensions = array<i32: 1>} : vector<8x8xi32>
    %6 = arith.cmpi sgt, %5, %4 : vector<8x8xi32>
    %7 = vector.shape_cast %6 : vector<8x8xi1> to vector<1x8x8xi1>
    %cst = arith.constant 0.000000e+00 : f32
    %8 = vector.broadcast %cst : f32 to vector<2x1x8xf32>
    %9 = arith.cmpf ogt, %2, %8 : vector<2x1x8xf32>
    %10 = vector.broadcast %7 : vector<1x8x8xi1> to vector<2x8x8xi1>
    %11 = vector.broadcast %9 : vector<2x1x8xi1> to vector<2x8x8xi1>
    %12 = arith.ori %10, %11 : vector<2x8x8xi1>
    %cst_9 = arith.constant -9.99999984E+17 : f32
    %cst_10 = arith.constant 0.000000e+00 : f32
    %13 = vector.broadcast %cst_9 : f32 to vector<2x8x8xf32>
    %14 = vector.broadcast %cst_10 : f32 to vector<2x8x8xf32>
    %15 = arith.select %12, %13, %14 : vector<2x8x8xi1>, vector<2x8x8xf32>
    %cst_11 = arith.constant 0.000000e+00 : f32
    %16 = vector.broadcast %cst_11 : f32 to vector<2x1x10xf32>
    %17 = arith.cmpf ogt, %3, %16 : vector<2x1x10xf32>
    %cst_12 = arith.constant -9.99999984E+17 : f32
    %cst_13 = arith.constant 0.000000e+00 : f32
    %18 = vector.broadcast %cst_12 : f32 to vector<2x1x10xf32>
    %19 = vector.broadcast %cst_13 : f32 to vector<2x1x10xf32>
    %20 = arith.select %17, %18, %19 : vector<2x1x10xi1>, vector<2x1x10xf32>
    %c0_14 = arith.constant 0 : index
    %c0_15 = arith.constant 0 : index
    %21 = vector.load %arg9[%c0_14, %c0_15] : memref<3x32xf32, #tpu.memory_space<vmem>>, vector<1x32xf32>
    %c0_16 = arith.constant 0 : index
    %c0_17 = arith.constant 0 : index
    %22 = vector.load %arg10[%c0_16, %c0_17] : memref<3x32xf32, #tpu.memory_space<vmem>>, vector<1x32xf32>
    %cst_18 = arith.constant dense<0.000000e+00> : vector<16xf32>
    %23 = vector.multi_reduction <add>, %0, %cst_18 [1] : vector<16x32xf32> to vector<16xf32>
    %24 = vector.shape_cast %23 : vector<16xf32> to vector<16x1xf32>
    %cst_19 = arith.constant 3.200000e+01 : f32
    %25 = vector.broadcast %cst_19 : f32 to vector<16x1xf32>
    %26 = arith.divf %24, %25 : vector<16x1xf32>
    %27 = vector.broadcast %26 : vector<16x1xf32> to vector<16x32xf32>
    %28 = arith.subf %0, %27 : vector<16x32xf32>
    %29 = arith.mulf %28, %28 : vector<16x32xf32>
    %cst_20 = arith.constant dense<0.000000e+00> : vector<16xf32>
    %30 = vector.multi_reduction <add>, %29, %cst_20 [1] : vector<16x32xf32> to vector<16xf32>
    %31 = vector.shape_cast %30 : vector<16xf32> to vector<16x1xf32>
    %cst_21 = arith.constant 3.200000e+01 : f32
    %32 = vector.broadcast %cst_21 : f32 to vector<16x1xf32>
    %33 = arith.divf %31, %32 : vector<16x1xf32>
    %34 = vector.broadcast %26 : vector<16x1xf32> to vector<16x32xf32>
    %35 = arith.subf %0, %34 : vector<16x32xf32>
    %cst_22 = arith.constant 9.99999997E-7 : f32
    %36 = vector.broadcast %cst_22 : f32 to vector<16x1xf32>
    %37 = arith.addf %33, %36 : vector<16x1xf32>
    %38 = math.rsqrt %37 : vector<16x1xf32>
    %39 = vector.broadcast %38 : vector<16x1xf32> to vector<16x32xf32>
    %40 = arith.mulf %35, %39 : vector<16x32xf32>
    %41 = vector.broadcast %21 : vector<1x32xf32> to vector<16x32xf32>
    %42 = arith.mulf %40, %41 : vector<16x32xf32>
    %43 = vector.broadcast %22 : vector<1x32xf32> to vector<16x32xf32>
    %44 = arith.addf %42, %43 : vector<16x32xf32>
    %45 = arith.truncf %44 : vector<16x32xf32> to vector<16x32xbf16>
    %c0_23 = arith.constant 0 : index
    %c0_24 = arith.constant 0 : index
    %46 = vector.load %arg6[%c0_23, %c0_24] : memref<24x8xf32, #tpu.memory_space<vmem>>, vector<1x8xf32>
    %c4 = arith.constant 4 : index
    %c0_25 = arith.constant 0 : index
    %47 = vector.load %arg6[%c4, %c0_25] : memref<24x8xf32, #tpu.memory_space<vmem>>, vector<1x8xf32>
    %c8 = arith.constant 8 : index
    %c0_26 = arith.constant 0 : index
    %48 = vector.load %arg6[%c8, %c0_26] : memref<24x8xf32, #tpu.memory_space<vmem>>, vector<1x8xf32>
    %c0_27 = arith.constant 0 : index
    %c0_28 = arith.constant 0 : index
    %c0_29 = arith.constant 0 : index
    %49 = vector.load %arg5[%c0_27, %c0_28, %c0_29] : memref<24x32x8xbf16, #tpu.memory_space<vmem>>, vector<1x32x8xbf16>
    %50 = vector.shape_cast %49 : vector<1x32x8xbf16> to vector<32x8xbf16>
    %cst_30 = arith.constant dense<0.000000e+00> : vector<16x8xf32>
    %51 = tpu.matmul %45, %50, %cst_30 {dimension_numbers = #tpu.dot_dimension_numbers<[1], [0], [0], [1], [0, 0, 1, 1], [], []>} : vector<16x32xbf16>, vector<32x8xbf16>, vector<16x8xf32> -> vector<16x8xf32>
    %52 = vector.broadcast %46 : vector<1x8xf32> to vector<16x8xf32>
    %53 = arith.addf %51, %52 : vector<16x8xf32>
    %c4_31 = arith.constant 4 : index
    %c0_32 = arith.constant 0 : index
    %c0_33 = arith.constant 0 : index
    %54 = vector.load %arg5[%c4_31, %c0_32, %c0_33] : memref<24x32x8xbf16, #tpu.memory_space<vmem>>, vector<1x32x8xbf16>
    %55 = vector.shape_cast %54 : vector<1x32x8xbf16> to vector<32x8xbf16>
    %cst_34 = arith.constant dense<0.000000e+00> : vector<16x8xf32>
    %56 = tpu.matmul %45, %55, %cst_34 {dimension_numbers = #tpu.dot_dimension_numbers<[1], [0], [0], [1], [0, 0, 1, 1], [], []>} : vector<16x32xbf16>, vector<32x8xbf16>, vector<16x8xf32> -> vector<16x8xf32>
    %57 = vector.broadcast %47 : vector<1x8xf32> to vector<16x8xf32>
    %58 = arith.addf %56, %57 : vector<16x8xf32>
    %c8_35 = arith.constant 8 : index
    %c0_36 = arith.constant 0 : index
    %c0_37 = arith.constant 0 : index
    %59 = vector.load %arg5[%c8_35, %c0_36, %c0_37] : memref<24x32x8xbf16, #tpu.memory_space<vmem>>, vector<1x32x8xbf16>
    %60 = vector.shape_cast %59 : vector<1x32x8xbf16> to vector<32x8xbf16>
    %cst_38 = arith.constant dense<0.000000e+00> : vector<16x8xf32>
    %61 = tpu.matmul %45, %60, %cst_38 {dimension_numbers = #tpu.dot_dimension_numbers<[1], [0], [0], [1], [0, 0, 1, 1], [], []>} : vector<16x32xbf16>, vector<32x8xbf16>, vector<16x8xf32> -> vector<16x8xf32>
    %62 = vector.broadcast %48 : vector<1x8xf32> to vector<16x8xf32>
    %63 = arith.addf %61, %62 : vector<16x8xf32>
    %cst_39 = arith.constant 0.353553385 : f32
    %64 = vector.broadcast %cst_39 : f32 to vector<16x8xf32>
    %65 = arith.mulf %53, %64 : vector<16x8xf32>
    %66 = arith.truncf %65 : vector<16x8xf32> to vector<16x8xbf16>
    %67 = vector.shape_cast %66 : vector<16x8xbf16> to vector<2x8x8xbf16>
    %68 = arith.truncf %58 : vector<16x8xf32> to vector<16x8xbf16>
    %69 = vector.shape_cast %68 : vector<16x8xbf16> to vector<2x8x8xbf16>
    %70 = arith.truncf %63 : vector<16x8xf32> to vector<16x8xbf16>
    %71 = vector.shape_cast %70 : vector<16x8xbf16> to vector<2x8x8xbf16>
    "tpu.trace_start"() <{level = 10 : i32, message = "bqd,bkd->bqk"}> : () -> ()
    %cst_40 = arith.constant dense<0.000000e+00> : vector<2x8x8xf32>
    %72 = tpu.matmul %67, %69, %cst_40 {dimension_numbers = #tpu.dot_dimension_numbers<[2], [2], [1], [1], [0, 0, 0, 1, 1, 1], [0], [0]>} : vector<2x8x8xbf16>, vector<2x8x8xbf16>, vector<2x8x8xf32> -> vector<2x8x8xf32>
    "tpu.trace_stop"() : () -> ()
    %73 = arith.addf %72, %15 : vector<2x8x8xf32>
    %cst_41 = arith.constant dense<0xFF800000> : vector<2x8xf32>
    %74 = vector.multi_reduction <maximumf>, %73, %cst_41 [2] : vector<2x8x8xf32> to vector<2x8xf32>
    %75 = vector.shape_cast %74 : vector<2x8xf32> to vector<2x8x1xf32>
    %76 = vector.broadcast %75 : vector<2x8x1xf32> to vector<2x8x8xf32>
    %77 = arith.subf %73, %76 : vector<2x8x8xf32>
    %78 = math.exp %77 : vector<2x8x8xf32>
    %cst_42 = arith.constant dense<0.000000e+00> : vector<2x8xf32>
    %79 = vector.multi_reduction <add>, %78, %cst_42 [2] : vector<2x8x8xf32> to vector<2x8xf32>
    %80 = vector.shape_cast %79 : vector<2x8xf32> to vector<2x8x1xf32>
    %81 = tpu.reciprocal %80 {approx = true} : vector<2x8x1xf32> -> vector<2x8x1xf32>
    %82 = arith.truncf %78 : vector<2x8x8xf32> to vector<2x8x8xbf16>
    "tpu.trace_start"() <{level = 10 : i32, message = "bqk,bkd->bqd"}> : () -> ()
    %cst_43 = arith.constant dense<0.000000e+00> : vector<2x8x8xf32>
    %83 = tpu.matmul %82, %71, %cst_43 {dimension_numbers = #tpu.dot_dimension_numbers<[2], [1], [1], [2], [0, 0, 0, 1, 1, 2], [0], [0]>} : vector<2x8x8xbf16>, vector<2x8x8xbf16>, vector<2x8x8xf32> -> vector<2x8x8xf32>
    "tpu.trace_stop"() : () -> ()
    %84 = vector.broadcast %81 : vector<2x8x1xf32> to vector<2x8x8xf32>
    %85 = arith.mulf %83, %84 : vector<2x8x8xf32>
    %86 = vector.shape_cast %85 : vector<2x8x8xf32> to vector<16x8xf32>
    %87 = arith.truncf %86 : vector<16x8xf32> to vector<16x8xbf16>
    %c0_44 = arith.constant 0 : index
    %c0_45 = arith.constant 0 : index
    %c0_46 = arith.constant 0 : index
    %88 = vector.load %arg7[%c0_44, %c0_45, %c0_46] : memref<8x8x32xbf16, #tpu.memory_space<vmem>>, vector<1x8x32xbf16>
    %89 = vector.shape_cast %88 : vector<1x8x32xbf16> to vector<8x32xbf16>
    %cst_47 = arith.constant dense<0.000000e+00> : vector<16x32xf32>
    %90 = tpu.matmul %87, %89, %cst_47 {dimension_numbers = #tpu.dot_dimension_numbers<[1], [0], [0], [1], [0, 0, 1, 1], [], []>} : vector<16x8xbf16>, vector<8x32xbf16>, vector<16x32xf32> -> vector<16x32xf32>
    %c1 = arith.constant 1 : index
    %c0_48 = arith.constant 0 : index
    %91 = vector.load %arg6[%c1, %c0_48] : memref<24x8xf32, #tpu.memory_space<vmem>>, vector<1x8xf32>
    %c5 = arith.constant 5 : index
    %c0_49 = arith.constant 0 : index
    %92 = vector.load %arg6[%c5, %c0_49] : memref<24x8xf32, #tpu.memory_space<vmem>>, vector<1x8xf32>
    %c9 = arith.constant 9 : index
    %c0_50 = arith.constant 0 : index
    %93 = vector.load %arg6[%c9, %c0_50] : memref<24x8xf32, #tpu.memory_space<vmem>>, vector<1x8xf32>
    %c1_51 = arith.constant 1 : index
    %c0_52 = arith.constant 0 : index
    %c0_53 = arith.constant 0 : index
    %94 = vector.load %arg5[%c1_51, %c0_52, %c0_53] : memref<24x32x8xbf16, #tpu.memory_space<vmem>>, vector<1x32x8xbf16>
    %95 = vector.shape_cast %94 : vector<1x32x8xbf16> to vector<32x8xbf16>
    %cst_54 = arith.constant dense<0.000000e+00> : vector<16x8xf32>
    %96 = tpu.matmul %45, %95, %cst_54 {dimension_numbers = #tpu.dot_dimension_numbers<[1], [0], [0], [1], [0, 0, 1, 1], [], []>} : vector<16x32xbf16>, vector<32x8xbf16>, vector<16x8xf32> -> vector<16x8xf32>
    %97 = vector.broadcast %91 : vector<1x8xf32> to vector<16x8xf32>
    %98 = arith.addf %96, %97 : vector<16x8xf32>
    %c5_55 = arith.constant 5 : index
    %c0_56 = arith.constant 0 : index
    %c0_57 = arith.constant 0 : index
    %99 = vector.load %arg5[%c5_55, %c0_56, %c0_57] : memref<24x32x8xbf16, #tpu.memory_space<vmem>>, vector<1x32x8xbf16>
    %100 = vector.shape_cast %99 : vector<1x32x8xbf16> to vector<32x8xbf16>
    %cst_58 = arith.constant dense<0.000000e+00> : vector<16x8xf32>
    %101 = tpu.matmul %45, %100, %cst_58 {dimension_numbers = #tpu.dot_dimension_numbers<[1], [0], [0], [1], [0, 0, 1, 1], [], []>} : vector<16x32xbf16>, vector<32x8xbf16>, vector<16x8xf32> -> vector<16x8xf32>
    %102 = vector.broadcast %92 : vector<1x8xf32> to vector<16x8xf32>
    %103 = arith.addf %101, %102 : vector<16x8xf32>
    %c9_59 = arith.constant 9 : index
    %c0_60 = arith.constant 0 : index
    %c0_61 = arith.constant 0 : index
    %104 = vector.load %arg5[%c9_59, %c0_60, %c0_61] : memref<24x32x8xbf16, #tpu.memory_space<vmem>>, vector<1x32x8xbf16>
    %105 = vector.shape_cast %104 : vector<1x32x8xbf16> to vector<32x8xbf16>
    %cst_62 = arith.constant dense<0.000000e+00> : vector<16x8xf32>
    %106 = tpu.matmul %45, %105, %cst_62 {dimension_numbers = #tpu.dot_dimension_numbers<[1], [0], [0], [1], [0, 0, 1, 1], [], []>} : vector<16x32xbf16>, vector<32x8xbf16>, vector<16x8xf32> -> vector<16x8xf32>
    %107 = vector.broadcast %93 : vector<1x8xf32> to vector<16x8xf32>
    %108 = arith.addf %106, %107 : vector<16x8xf32>
    %cst_63 = arith.constant 0.353553385 : f32
    %109 = vector.broadcast %cst_63 : f32 to vector<16x8xf32>
    %110 = arith.mulf %98, %109 : vector<16x8xf32>
    %111 = arith.truncf %110 : vector<16x8xf32> to vector<16x8xbf16>
    %112 = vector.shape_cast %111 : vector<16x8xbf16> to vector<2x8x8xbf16>
    %113 = arith.truncf %103 : vector<16x8xf32> to vector<16x8xbf16>
    %114 = vector.shape_cast %113 : vector<16x8xbf16> to vector<2x8x8xbf16>
    %115 = arith.truncf %108 : vector<16x8xf32> to vector<16x8xbf16>
    %116 = vector.shape_cast %115 : vector<16x8xbf16> to vector<2x8x8xbf16>
    "tpu.trace_start"() <{level = 10 : i32, message = "bqd,bkd->bqk"}> : () -> ()
    %cst_64 = arith.constant dense<0.000000e+00> : vector<2x8x8xf32>
    %117 = tpu.matmul %112, %114, %cst_64 {dimension_numbers = #tpu.dot_dimension_numbers<[2], [2], [1], [1], [0, 0, 0, 1, 1, 1], [0], [0]>} : vector<2x8x8xbf16>, vector<2x8x8xbf16>, vector<2x8x8xf32> -> vector<2x8x8xf32>
    "tpu.trace_stop"() : () -> ()
    %118 = arith.addf %117, %15 : vector<2x8x8xf32>
    %cst_65 = arith.constant dense<0xFF800000> : vector<2x8xf32>
    %119 = vector.multi_reduction <maximumf>, %118, %cst_65 [2] : vector<2x8x8xf32> to vector<2x8xf32>
    %120 = vector.shape_cast %119 : vector<2x8xf32> to vector<2x8x1xf32>
    %121 = vector.broadcast %120 : vector<2x8x1xf32> to vector<2x8x8xf32>
    %122 = arith.subf %118, %121 : vector<2x8x8xf32>
    %123 = math.exp %122 : vector<2x8x8xf32>
    %cst_66 = arith.constant dense<0.000000e+00> : vector<2x8xf32>
    %124 = vector.multi_reduction <add>, %123, %cst_66 [2] : vector<2x8x8xf32> to vector<2x8xf32>
    %125 = vector.shape_cast %124 : vector<2x8xf32> to vector<2x8x1xf32>
    %126 = tpu.reciprocal %125 {approx = true} : vector<2x8x1xf32> -> vector<2x8x1xf32>
    %127 = arith.truncf %123 : vector<2x8x8xf32> to vector<2x8x8xbf16>
    "tpu.trace_start"() <{level = 10 : i32, message = "bqk,bkd->bqd"}> : () -> ()
    %cst_67 = arith.constant dense<0.000000e+00> : vector<2x8x8xf32>
    %128 = tpu.matmul %127, %116, %cst_67 {dimension_numbers = #tpu.dot_dimension_numbers<[2], [1], [1], [2], [0, 0, 0, 1, 1, 2], [0], [0]>} : vector<2x8x8xbf16>, vector<2x8x8xbf16>, vector<2x8x8xf32> -> vector<2x8x8xf32>
    "tpu.trace_stop"() : () -> ()
    %129 = vector.broadcast %126 : vector<2x8x1xf32> to vector<2x8x8xf32>
    %130 = arith.mulf %128, %129 : vector<2x8x8xf32>
    %131 = vector.shape_cast %130 : vector<2x8x8xf32> to vector<16x8xf32>
    %132 = arith.truncf %131 : vector<16x8xf32> to vector<16x8xbf16>
    %c1_68 = arith.constant 1 : index
    %c0_69 = arith.constant 0 : index
    %c0_70 = arith.constant 0 : index
    %133 = vector.load %arg7[%c1_68, %c0_69, %c0_70] : memref<8x8x32xbf16, #tpu.memory_space<vmem>>, vector<1x8x32xbf16>
    %134 = vector.shape_cast %133 : vector<1x8x32xbf16> to vector<8x32xbf16>
    %cst_71 = arith.constant dense<0.000000e+00> : vector<16x32xf32>
    %135 = tpu.matmul %132, %134, %cst_71 {dimension_numbers = #tpu.dot_dimension_numbers<[1], [0], [0], [1], [0, 0, 1, 1], [], []>} : vector<16x8xbf16>, vector<8x32xbf16>, vector<16x32xf32> -> vector<16x32xf32>
    %136 = arith.addf %90, %135 : vector<16x32xf32>
    %c2 = arith.constant 2 : index
    %c0_72 = arith.constant 0 : index
    %137 = vector.load %arg6[%c2, %c0_72] : memref<24x8xf32, #tpu.memory_space<vmem>>, vector<1x8xf32>
    %c6 = arith.constant 6 : index
    %c0_73 = arith.constant 0 : index
    %138 = vector.load %arg6[%c6, %c0_73] : memref<24x8xf32, #tpu.memory_space<vmem>>, vector<1x8xf32>
    %c10 = arith.constant 10 : index
    %c0_74 = arith.constant 0 : index
    %139 = vector.load %arg6[%c10, %c0_74] : memref<24x8xf32, #tpu.memory_space<vmem>>, vector<1x8xf32>
    %c2_75 = arith.constant 2 : index
    %c0_76 = arith.constant 0 : index
    %c0_77 = arith.constant 0 : index
    %140 = vector.load %arg5[%c2_75, %c0_76, %c0_77] : memref<24x32x8xbf16, #tpu.memory_space<vmem>>, vector<1x32x8xbf16>
    %141 = vector.shape_cast %140 : vector<1x32x8xbf16> to vector<32x8xbf16>
    %cst_78 = arith.constant dense<0.000000e+00> : vector<16x8xf32>
    %142 = tpu.matmul %45, %141, %cst_78 {dimension_numbers = #tpu.dot_dimension_numbers<[1], [0], [0], [1], [0, 0, 1, 1], [], []>} : vector<16x32xbf16>, vector<32x8xbf16>, vector<16x8xf32> -> vector<16x8xf32>
    %143 = vector.broadcast %137 : vector<1x8xf32> to vector<16x8xf32>
    %144 = arith.addf %142, %143 : vector<16x8xf32>
    %c6_79 = arith.constant 6 : index
    %c0_80 = arith.constant 0 : index
    %c0_81 = arith.constant 0 : index
    %145 = vector.load %arg5[%c6_79, %c0_80, %c0_81] : memref<24x32x8xbf16, #tpu.memory_space<vmem>>, vector<1x32x8xbf16>
    %146 = vector.shape_cast %145 : vector<1x32x8xbf16> to vector<32x8xbf16>
    %cst_82 = arith.constant dense<0.000000e+00> : vector<16x8xf32>
    %147 = tpu.matmul %45, %146, %cst_82 {dimension_numbers = #tpu.dot_dimension_numbers<[1], [0], [0], [1], [0, 0, 1, 1], [], []>} : vector<16x32xbf16>, vector<32x8xbf16>, vector<16x8xf32> -> vector<16x8xf32>
    %148 = vector.broadcast %138 : vector<1x8xf32> to vector<16x8xf32>
    %149 = arith.addf %147, %148 : vector<16x8xf32>
    %c10_83 = arith.constant 10 : index
    %c0_84 = arith.constant 0 : index
    %c0_85 = arith.constant 0 : index
    %150 = vector.load %arg5[%c10_83, %c0_84, %c0_85] : memref<24x32x8xbf16, #tpu.memory_space<vmem>>, vector<1x32x8xbf16>
    %151 = vector.shape_cast %150 : vector<1x32x8xbf16> to vector<32x8xbf16>
    %cst_86 = arith.constant dense<0.000000e+00> : vector<16x8xf32>
    %152 = tpu.matmul %45, %151, %cst_86 {dimension_numbers = #tpu.dot_dimension_numbers<[1], [0], [0], [1], [0, 0, 1, 1], [], []>} : vector<16x32xbf16>, vector<32x8xbf16>, vector<16x8xf32> -> vector<16x8xf32>
    %153 = vector.broadcast %139 : vector<1x8xf32> to vector<16x8xf32>
    %154 = arith.addf %152, %153 : vector<16x8xf32>
    %cst_87 = arith.constant 0.353553385 : f32
    %155 = vector.broadcast %cst_87 : f32 to vector<16x8xf32>
    %156 = arith.mulf %144, %155 : vector<16x8xf32>
    %157 = arith.truncf %156 : vector<16x8xf32> to vector<16x8xbf16>
    %158 = vector.shape_cast %157 : vector<16x8xbf16> to vector<2x8x8xbf16>
    %159 = arith.truncf %149 : vector<16x8xf32> to vector<16x8xbf16>
    %160 = vector.shape_cast %159 : vector<16x8xbf16> to vector<2x8x8xbf16>
    %161 = arith.truncf %154 : vector<16x8xf32> to vector<16x8xbf16>
    %162 = vector.shape_cast %161 : vector<16x8xbf16> to vector<2x8x8xbf16>
    "tpu.trace_start"() <{level = 10 : i32, message = "bqd,bkd->bqk"}> : () -> ()
    %cst_88 = arith.constant dense<0.000000e+00> : vector<2x8x8xf32>
    %163 = tpu.matmul %158, %160, %cst_88 {dimension_numbers = #tpu.dot_dimension_numbers<[2], [2], [1], [1], [0, 0, 0, 1, 1, 1], [0], [0]>} : vector<2x8x8xbf16>, vector<2x8x8xbf16>, vector<2x8x8xf32> -> vector<2x8x8xf32>
    "tpu.trace_stop"() : () -> ()
    %164 = arith.addf %163, %15 : vector<2x8x8xf32>
    %cst_89 = arith.constant dense<0xFF800000> : vector<2x8xf32>
    %165 = vector.multi_reduction <maximumf>, %164, %cst_89 [2] : vector<2x8x8xf32> to vector<2x8xf32>
    %166 = vector.shape_cast %165 : vector<2x8xf32> to vector<2x8x1xf32>
    %167 = vector.broadcast %166 : vector<2x8x1xf32> to vector<2x8x8xf32>
    %168 = arith.subf %164, %167 : vector<2x8x8xf32>
    %169 = math.exp %168 : vector<2x8x8xf32>
    %cst_90 = arith.constant dense<0.000000e+00> : vector<2x8xf32>
    %170 = vector.multi_reduction <add>, %169, %cst_90 [2] : vector<2x8x8xf32> to vector<2x8xf32>
    %171 = vector.shape_cast %170 : vector<2x8xf32> to vector<2x8x1xf32>
    %172 = tpu.reciprocal %171 {approx = true} : vector<2x8x1xf32> -> vector<2x8x1xf32>
    %173 = arith.truncf %169 : vector<2x8x8xf32> to vector<2x8x8xbf16>
    "tpu.trace_start"() <{level = 10 : i32, message = "bqk,bkd->bqd"}> : () -> ()
    %cst_91 = arith.constant dense<0.000000e+00> : vector<2x8x8xf32>
    %174 = tpu.matmul %173, %162, %cst_91 {dimension_numbers = #tpu.dot_dimension_numbers<[2], [1], [1], [2], [0, 0, 0, 1, 1, 2], [0], [0]>} : vector<2x8x8xbf16>, vector<2x8x8xbf16>, vector<2x8x8xf32> -> vector<2x8x8xf32>
    "tpu.trace_stop"() : () -> ()
    %175 = vector.broadcast %172 : vector<2x8x1xf32> to vector<2x8x8xf32>
    %176 = arith.mulf %174, %175 : vector<2x8x8xf32>
    %177 = vector.shape_cast %176 : vector<2x8x8xf32> to vector<16x8xf32>
    %178 = arith.truncf %177 : vector<16x8xf32> to vector<16x8xbf16>
    %c2_92 = arith.constant 2 : index
    %c0_93 = arith.constant 0 : index
    %c0_94 = arith.constant 0 : index
    %179 = vector.load %arg7[%c2_92, %c0_93, %c0_94] : memref<8x8x32xbf16, #tpu.memory_space<vmem>>, vector<1x8x32xbf16>
    %180 = vector.shape_cast %179 : vector<1x8x32xbf16> to vector<8x32xbf16>
    %cst_95 = arith.constant dense<0.000000e+00> : vector<16x32xf32>
    %181 = tpu.matmul %178, %180, %cst_95 {dimension_numbers = #tpu.dot_dimension_numbers<[1], [0], [0], [1], [0, 0, 1, 1], [], []>} : vector<16x8xbf16>, vector<8x32xbf16>, vector<16x32xf32> -> vector<16x32xf32>
    %182 = arith.addf %136, %181 : vector<16x32xf32>
    %c3 = arith.constant 3 : index
    %c0_96 = arith.constant 0 : index
    %183 = vector.load %arg6[%c3, %c0_96] : memref<24x8xf32, #tpu.memory_space<vmem>>, vector<1x8xf32>
    %c7 = arith.constant 7 : index
    %c0_97 = arith.constant 0 : index
    %184 = vector.load %arg6[%c7, %c0_97] : memref<24x8xf32, #tpu.memory_space<vmem>>, vector<1x8xf32>
    %c11 = arith.constant 11 : index
    %c0_98 = arith.constant 0 : index
    %185 = vector.load %arg6[%c11, %c0_98] : memref<24x8xf32, #tpu.memory_space<vmem>>, vector<1x8xf32>
    %c3_99 = arith.constant 3 : index
    %c0_100 = arith.constant 0 : index
    %c0_101 = arith.constant 0 : index
    %186 = vector.load %arg5[%c3_99, %c0_100, %c0_101] : memref<24x32x8xbf16, #tpu.memory_space<vmem>>, vector<1x32x8xbf16>
    %187 = vector.shape_cast %186 : vector<1x32x8xbf16> to vector<32x8xbf16>
    %cst_102 = arith.constant dense<0.000000e+00> : vector<16x8xf32>
    %188 = tpu.matmul %45, %187, %cst_102 {dimension_numbers = #tpu.dot_dimension_numbers<[1], [0], [0], [1], [0, 0, 1, 1], [], []>} : vector<16x32xbf16>, vector<32x8xbf16>, vector<16x8xf32> -> vector<16x8xf32>
    %189 = vector.broadcast %183 : vector<1x8xf32> to vector<16x8xf32>
    %190 = arith.addf %188, %189 : vector<16x8xf32>
    %c7_103 = arith.constant 7 : index
    %c0_104 = arith.constant 0 : index
    %c0_105 = arith.constant 0 : index
    %191 = vector.load %arg5[%c7_103, %c0_104, %c0_105] : memref<24x32x8xbf16, #tpu.memory_space<vmem>>, vector<1x32x8xbf16>
    %192 = vector.shape_cast %191 : vector<1x32x8xbf16> to vector<32x8xbf16>
    %cst_106 = arith.constant dense<0.000000e+00> : vector<16x8xf32>
    %193 = tpu.matmul %45, %192, %cst_106 {dimension_numbers = #tpu.dot_dimension_numbers<[1], [0], [0], [1], [0, 0, 1, 1], [], []>} : vector<16x32xbf16>, vector<32x8xbf16>, vector<16x8xf32> -> vector<16x8xf32>
    %194 = vector.broadcast %184 : vector<1x8xf32> to vector<16x8xf32>
    %195 = arith.addf %193, %194 : vector<16x8xf32>
    %c11_107 = arith.constant 11 : index
    %c0_108 = arith.constant 0 : index
    %c0_109 = arith.constant 0 : index
    %196 = vector.load %arg5[%c11_107, %c0_108, %c0_109] : memref<24x32x8xbf16, #tpu.memory_space<vmem>>, vector<1x32x8xbf16>
    %197 = vector.shape_cast %196 : vector<1x32x8xbf16> to vector<32x8xbf16>
    %cst_110 = arith.constant dense<0.000000e+00> : vector<16x8xf32>
    %198 = tpu.matmul %45, %197, %cst_110 {dimension_numbers = #tpu.dot_dimension_numbers<[1], [0], [0], [1], [0, 0, 1, 1], [], []>} : vector<16x32xbf16>, vector<32x8xbf16>, vector<16x8xf32> -> vector<16x8xf32>
    %199 = vector.broadcast %185 : vector<1x8xf32> to vector<16x8xf32>
    %200 = arith.addf %198, %199 : vector<16x8xf32>
    %cst_111 = arith.constant 0.353553385 : f32
    %201 = vector.broadcast %cst_111 : f32 to vector<16x8xf32>
    %202 = arith.mulf %190, %201 : vector<16x8xf32>
    %203 = arith.truncf %202 : vector<16x8xf32> to vector<16x8xbf16>
    %204 = vector.shape_cast %203 : vector<16x8xbf16> to vector<2x8x8xbf16>
    %205 = arith.truncf %195 : vector<16x8xf32> to vector<16x8xbf16>
    %206 = vector.shape_cast %205 : vector<16x8xbf16> to vector<2x8x8xbf16>
    %207 = arith.truncf %200 : vector<16x8xf32> to vector<16x8xbf16>
    %208 = vector.shape_cast %207 : vector<16x8xbf16> to vector<2x8x8xbf16>
    "tpu.trace_start"() <{level = 10 : i32, message = "bqd,bkd->bqk"}> : () -> ()
    %cst_112 = arith.constant dense<0.000000e+00> : vector<2x8x8xf32>
    %209 = tpu.matmul %204, %206, %cst_112 {dimension_numbers = #tpu.dot_dimension_numbers<[2], [2], [1], [1], [0, 0, 0, 1, 1, 1], [0], [0]>} : vector<2x8x8xbf16>, vector<2x8x8xbf16>, vector<2x8x8xf32> -> vector<2x8x8xf32>
    "tpu.trace_stop"() : () -> ()
    %210 = arith.addf %209, %15 : vector<2x8x8xf32>
    %cst_113 = arith.constant dense<0xFF800000> : vector<2x8xf32>
    %211 = vector.multi_reduction <maximumf>, %210, %cst_113 [2] : vector<2x8x8xf32> to vector<2x8xf32>
    %212 = vector.shape_cast %211 : vector<2x8xf32> to vector<2x8x1xf32>
    %213 = vector.broadcast %212 : vector<2x8x1xf32> to vector<2x8x8xf32>
    %214 = arith.subf %210, %213 : vector<2x8x8xf32>
    %215 = math.exp %214 : vector<2x8x8xf32>
    %cst_114 = arith.constant dense<0.000000e+00> : vector<2x8xf32>
    %216 = vector.multi_reduction <add>, %215, %cst_114 [2] : vector<2x8x8xf32> to vector<2x8xf32>
    %217 = vector.shape_cast %216 : vector<2x8xf32> to vector<2x8x1xf32>
    %218 = tpu.reciprocal %217 {approx = true} : vector<2x8x1xf32> -> vector<2x8x1xf32>
    %219 = arith.truncf %215 : vector<2x8x8xf32> to vector<2x8x8xbf16>
    "tpu.trace_start"() <{level = 10 : i32, message = "bqk,bkd->bqd"}> : () -> ()
    %cst_115 = arith.constant dense<0.000000e+00> : vector<2x8x8xf32>
    %220 = tpu.matmul %219, %208, %cst_115 {dimension_numbers = #tpu.dot_dimension_numbers<[2], [1], [1], [2], [0, 0, 0, 1, 1, 2], [0], [0]>} : vector<2x8x8xbf16>, vector<2x8x8xbf16>, vector<2x8x8xf32> -> vector<2x8x8xf32>
    "tpu.trace_stop"() : () -> ()
    %221 = vector.broadcast %218 : vector<2x8x1xf32> to vector<2x8x8xf32>
    %222 = arith.mulf %220, %221 : vector<2x8x8xf32>
    %223 = vector.shape_cast %222 : vector<2x8x8xf32> to vector<16x8xf32>
    %224 = arith.truncf %223 : vector<16x8xf32> to vector<16x8xbf16>
    %c3_116 = arith.constant 3 : index
    %c0_117 = arith.constant 0 : index
    %c0_118 = arith.constant 0 : index
    %225 = vector.load %arg7[%c3_116, %c0_117, %c0_118] : memref<8x8x32xbf16, #tpu.memory_space<vmem>>, vector<1x8x32xbf16>
    %226 = vector.shape_cast %225 : vector<1x8x32xbf16> to vector<8x32xbf16>
    %cst_119 = arith.constant dense<0.000000e+00> : vector<16x32xf32>
    %227 = tpu.matmul %224, %226, %cst_119 {dimension_numbers = #tpu.dot_dimension_numbers<[1], [0], [0], [1], [0, 0, 1, 1], [], []>} : vector<16x8xbf16>, vector<8x32xbf16>, vector<16x32xf32> -> vector<16x32xf32>
    %228 = arith.addf %182, %227 : vector<16x32xf32>
    %c0_120 = arith.constant 0 : index
    %c0_121 = arith.constant 0 : index
    %229 = vector.load %arg8[%c0_120, %c0_121] : memref<2x32xf32, #tpu.memory_space<vmem>>, vector<1x32xf32>
    %230 = vector.broadcast %229 : vector<1x32xf32> to vector<16x32xf32>
    %231 = arith.addf %228, %230 : vector<16x32xf32>
    %232 = arith.addf %231, %0 : vector<16x32xf32>
    %c1_122 = arith.constant 1 : index
    %c0_123 = arith.constant 0 : index
    %233 = vector.load %arg9[%c1_122, %c0_123] : memref<3x32xf32, #tpu.memory_space<vmem>>, vector<1x32xf32>
    %c1_124 = arith.constant 1 : index
    %c0_125 = arith.constant 0 : index
    %234 = vector.load %arg10[%c1_124, %c0_125] : memref<3x32xf32, #tpu.memory_space<vmem>>, vector<1x32xf32>
    %cst_126 = arith.constant dense<0.000000e+00> : vector<16xf32>
    %235 = vector.multi_reduction <add>, %232, %cst_126 [1] : vector<16x32xf32> to vector<16xf32>
    %236 = vector.shape_cast %235 : vector<16xf32> to vector<16x1xf32>
    %cst_127 = arith.constant 3.200000e+01 : f32
    %237 = vector.broadcast %cst_127 : f32 to vector<16x1xf32>
    %238 = arith.divf %236, %237 : vector<16x1xf32>
    %239 = vector.broadcast %238 : vector<16x1xf32> to vector<16x32xf32>
    %240 = arith.subf %232, %239 : vector<16x32xf32>
    %241 = arith.mulf %240, %240 : vector<16x32xf32>
    %cst_128 = arith.constant dense<0.000000e+00> : vector<16xf32>
    %242 = vector.multi_reduction <add>, %241, %cst_128 [1] : vector<16x32xf32> to vector<16xf32>
    %243 = vector.shape_cast %242 : vector<16xf32> to vector<16x1xf32>
    %cst_129 = arith.constant 3.200000e+01 : f32
    %244 = vector.broadcast %cst_129 : f32 to vector<16x1xf32>
    %245 = arith.divf %243, %244 : vector<16x1xf32>
    %246 = vector.broadcast %238 : vector<16x1xf32> to vector<16x32xf32>
    %247 = arith.subf %232, %246 : vector<16x32xf32>
    %cst_130 = arith.constant 9.99999997E-7 : f32
    %248 = vector.broadcast %cst_130 : f32 to vector<16x1xf32>
    %249 = arith.addf %245, %248 : vector<16x1xf32>
    %250 = math.rsqrt %249 : vector<16x1xf32>
    %251 = vector.broadcast %250 : vector<16x1xf32> to vector<16x32xf32>
    %252 = arith.mulf %247, %251 : vector<16x32xf32>
    %253 = vector.broadcast %233 : vector<1x32xf32> to vector<16x32xf32>
    %254 = arith.mulf %252, %253 : vector<16x32xf32>
    %255 = vector.broadcast %234 : vector<1x32xf32> to vector<16x32xf32>
    %256 = arith.addf %254, %255 : vector<16x32xf32>
    %257 = arith.truncf %256 : vector<16x32xf32> to vector<16x32xbf16>
    %c12 = arith.constant 12 : index
    %c0_131 = arith.constant 0 : index
    %258 = vector.load %arg6[%c12, %c0_131] : memref<24x8xf32, #tpu.memory_space<vmem>>, vector<1x8xf32>
    %c16 = arith.constant 16 : index
    %c0_132 = arith.constant 0 : index
    %259 = vector.load %arg6[%c16, %c0_132] : memref<24x8xf32, #tpu.memory_space<vmem>>, vector<1x8xf32>
    %c20 = arith.constant 20 : index
    %c0_133 = arith.constant 0 : index
    %260 = vector.load %arg6[%c20, %c0_133] : memref<24x8xf32, #tpu.memory_space<vmem>>, vector<1x8xf32>
    %c12_134 = arith.constant 12 : index
    %c0_135 = arith.constant 0 : index
    %c0_136 = arith.constant 0 : index
    %261 = vector.load %arg5[%c12_134, %c0_135, %c0_136] : memref<24x32x8xbf16, #tpu.memory_space<vmem>>, vector<1x32x8xbf16>
    %262 = vector.shape_cast %261 : vector<1x32x8xbf16> to vector<32x8xbf16>
    %cst_137 = arith.constant dense<0.000000e+00> : vector<16x8xf32>
    %263 = tpu.matmul %257, %262, %cst_137 {dimension_numbers = #tpu.dot_dimension_numbers<[1], [0], [0], [1], [0, 0, 1, 1], [], []>} : vector<16x32xbf16>, vector<32x8xbf16>, vector<16x8xf32> -> vector<16x8xf32>
    %264 = vector.broadcast %258 : vector<1x8xf32> to vector<16x8xf32>
    %265 = arith.addf %263, %264 : vector<16x8xf32>
    %c16_138 = arith.constant 16 : index
    %c0_139 = arith.constant 0 : index
    %c0_140 = arith.constant 0 : index
    %266 = vector.load %arg5[%c16_138, %c0_139, %c0_140] : memref<24x32x8xbf16, #tpu.memory_space<vmem>>, vector<1x32x8xbf16>
    %267 = vector.shape_cast %266 : vector<1x32x8xbf16> to vector<32x8xbf16>
    %cst_141 = arith.constant dense<0.000000e+00> : vector<20x8xf32>
    %268 = tpu.matmul %1, %267, %cst_141 {dimension_numbers = #tpu.dot_dimension_numbers<[1], [0], [0], [1], [0, 0, 1, 1], [], []>} : vector<20x32xbf16>, vector<32x8xbf16>, vector<20x8xf32> -> vector<20x8xf32>
    %269 = vector.broadcast %259 : vector<1x8xf32> to vector<20x8xf32>
    %270 = arith.addf %268, %269 : vector<20x8xf32>
    %c20_142 = arith.constant 20 : index
    %c0_143 = arith.constant 0 : index
    %c0_144 = arith.constant 0 : index
    %271 = vector.load %arg5[%c20_142, %c0_143, %c0_144] : memref<24x32x8xbf16, #tpu.memory_space<vmem>>, vector<1x32x8xbf16>
    %272 = vector.shape_cast %271 : vector<1x32x8xbf16> to vector<32x8xbf16>
    %cst_145 = arith.constant dense<0.000000e+00> : vector<20x8xf32>
    %273 = tpu.matmul %1, %272, %cst_145 {dimension_numbers = #tpu.dot_dimension_numbers<[1], [0], [0], [1], [0, 0, 1, 1], [], []>} : vector<20x32xbf16>, vector<32x8xbf16>, vector<20x8xf32> -> vector<20x8xf32>
    %274 = vector.broadcast %260 : vector<1x8xf32> to vector<20x8xf32>
    %275 = arith.addf %273, %274 : vector<20x8xf32>
    %cst_146 = arith.constant 0.353553385 : f32
    %276 = vector.broadcast %cst_146 : f32 to vector<16x8xf32>
    %277 = arith.mulf %265, %276 : vector<16x8xf32>
    %278 = arith.truncf %277 : vector<16x8xf32> to vector<16x8xbf16>
    %279 = vector.shape_cast %278 : vector<16x8xbf16> to vector<2x8x8xbf16>
    %280 = arith.truncf %270 : vector<20x8xf32> to vector<20x8xbf16>
    %281 = vector.shape_cast %280 : vector<20x8xbf16> to vector<2x10x8xbf16>
    %282 = arith.truncf %275 : vector<20x8xf32> to vector<20x8xbf16>
    %283 = vector.shape_cast %282 : vector<20x8xbf16> to vector<2x10x8xbf16>
    "tpu.trace_start"() <{level = 10 : i32, message = "bqd,bkd->bqk"}> : () -> ()
    %cst_147 = arith.constant dense<0.000000e+00> : vector<2x8x10xf32>
    %284 = tpu.matmul %279, %281, %cst_147 {dimension_numbers = #tpu.dot_dimension_numbers<[2], [2], [1], [1], [0, 0, 0, 1, 1, 1], [0], [0]>} : vector<2x8x8xbf16>, vector<2x10x8xbf16>, vector<2x8x10xf32> -> vector<2x8x10xf32>
    "tpu.trace_stop"() : () -> ()
    %285 = vector.broadcast %20 : vector<2x1x10xf32> to vector<2x8x10xf32>
    %286 = arith.addf %284, %285 : vector<2x8x10xf32>
    %cst_148 = arith.constant dense<0xFF800000> : vector<2x8xf32>
    %287 = vector.multi_reduction <maximumf>, %286, %cst_148 [2] : vector<2x8x10xf32> to vector<2x8xf32>
    %288 = vector.shape_cast %287 : vector<2x8xf32> to vector<2x8x1xf32>
    %289 = vector.broadcast %288 : vector<2x8x1xf32> to vector<2x8x10xf32>
    %290 = arith.subf %286, %289 : vector<2x8x10xf32>
    %291 = math.exp %290 : vector<2x8x10xf32>
    %cst_149 = arith.constant dense<0.000000e+00> : vector<2x8xf32>
    %292 = vector.multi_reduction <add>, %291, %cst_149 [2] : vector<2x8x10xf32> to vector<2x8xf32>
    %293 = vector.shape_cast %292 : vector<2x8xf32> to vector<2x8x1xf32>
    %294 = tpu.reciprocal %293 {approx = true} : vector<2x8x1xf32> -> vector<2x8x1xf32>
    %295 = arith.truncf %291 : vector<2x8x10xf32> to vector<2x8x10xbf16>
    "tpu.trace_start"() <{level = 10 : i32, message = "bqk,bkd->bqd"}> : () -> ()
    %cst_150 = arith.constant dense<0.000000e+00> : vector<2x8x8xf32>
    %296 = tpu.matmul %295, %283, %cst_150 {dimension_numbers = #tpu.dot_dimension_numbers<[2], [1], [1], [2], [0, 0, 0, 1, 1, 2], [0], [0]>} : vector<2x8x10xbf16>, vector<2x10x8xbf16>, vector<2x8x8xf32> -> vector<2x8x8xf32>
    "tpu.trace_stop"() : () -> ()
    %297 = vector.broadcast %294 : vector<2x8x1xf32> to vector<2x8x8xf32>
    %298 = arith.mulf %296, %297 : vector<2x8x8xf32>
    %299 = vector.shape_cast %298 : vector<2x8x8xf32> to vector<16x8xf32>
    %300 = arith.truncf %299 : vector<16x8xf32> to vector<16x8xbf16>
    %c4_151 = arith.constant 4 : index
    %c0_152 = arith.constant 0 : index
    %c0_153 = arith.constant 0 : index
    %301 = vector.load %arg7[%c4_151, %c0_152, %c0_153] : memref<8x8x32xbf16, #tpu.memory_space<vmem>>, vector<1x8x32xbf16>
    %302 = vector.shape_cast %301 : vector<1x8x32xbf16> to vector<8x32xbf16>
    %cst_154 = arith.constant dense<0.000000e+00> : vector<16x32xf32>
    %303 = tpu.matmul %300, %302, %cst_154 {dimension_numbers = #tpu.dot_dimension_numbers<[1], [0], [0], [1], [0, 0, 1, 1], [], []>} : vector<16x8xbf16>, vector<8x32xbf16>, vector<16x32xf32> -> vector<16x32xf32>
    %304 = vector.broadcast %294 : vector<2x8x1xf32> to vector<2x8x10xf32>
    %305 = arith.mulf %291, %304 : vector<2x8x10xf32>
    %c13 = arith.constant 13 : index
    %c0_155 = arith.constant 0 : index
    %306 = vector.load %arg6[%c13, %c0_155] : memref<24x8xf32, #tpu.memory_space<vmem>>, vector<1x8xf32>
    %c17 = arith.constant 17 : index
    %c0_156 = arith.constant 0 : index
    %307 = vector.load %arg6[%c17, %c0_156] : memref<24x8xf32, #tpu.memory_space<vmem>>, vector<1x8xf32>
    %c21 = arith.constant 21 : index
    %c0_157 = arith.constant 0 : index
    %308 = vector.load %arg6[%c21, %c0_157] : memref<24x8xf32, #tpu.memory_space<vmem>>, vector<1x8xf32>
    %c13_158 = arith.constant 13 : index
    %c0_159 = arith.constant 0 : index
    %c0_160 = arith.constant 0 : index
    %309 = vector.load %arg5[%c13_158, %c0_159, %c0_160] : memref<24x32x8xbf16, #tpu.memory_space<vmem>>, vector<1x32x8xbf16>
    %310 = vector.shape_cast %309 : vector<1x32x8xbf16> to vector<32x8xbf16>
    %cst_161 = arith.constant dense<0.000000e+00> : vector<16x8xf32>
    %311 = tpu.matmul %257, %310, %cst_161 {dimension_numbers = #tpu.dot_dimension_numbers<[1], [0], [0], [1], [0, 0, 1, 1], [], []>} : vector<16x32xbf16>, vector<32x8xbf16>, vector<16x8xf32> -> vector<16x8xf32>
    %312 = vector.broadcast %306 : vector<1x8xf32> to vector<16x8xf32>
    %313 = arith.addf %311, %312 : vector<16x8xf32>
    %c17_162 = arith.constant 17 : index
    %c0_163 = arith.constant 0 : index
    %c0_164 = arith.constant 0 : index
    %314 = vector.load %arg5[%c17_162, %c0_163, %c0_164] : memref<24x32x8xbf16, #tpu.memory_space<vmem>>, vector<1x32x8xbf16>
    %315 = vector.shape_cast %314 : vector<1x32x8xbf16> to vector<32x8xbf16>
    %cst_165 = arith.constant dense<0.000000e+00> : vector<20x8xf32>
    %316 = tpu.matmul %1, %315, %cst_165 {dimension_numbers = #tpu.dot_dimension_numbers<[1], [0], [0], [1], [0, 0, 1, 1], [], []>} : vector<20x32xbf16>, vector<32x8xbf16>, vector<20x8xf32> -> vector<20x8xf32>
    %317 = vector.broadcast %307 : vector<1x8xf32> to vector<20x8xf32>
    %318 = arith.addf %316, %317 : vector<20x8xf32>
    %c21_166 = arith.constant 21 : index
    %c0_167 = arith.constant 0 : index
    %c0_168 = arith.constant 0 : index
    %319 = vector.load %arg5[%c21_166, %c0_167, %c0_168] : memref<24x32x8xbf16, #tpu.memory_space<vmem>>, vector<1x32x8xbf16>
    %320 = vector.shape_cast %319 : vector<1x32x8xbf16> to vector<32x8xbf16>
    %cst_169 = arith.constant dense<0.000000e+00> : vector<20x8xf32>
    %321 = tpu.matmul %1, %320, %cst_169 {dimension_numbers = #tpu.dot_dimension_numbers<[1], [0], [0], [1], [0, 0, 1, 1], [], []>} : vector<20x32xbf16>, vector<32x8xbf16>, vector<20x8xf32> -> vector<20x8xf32>
    %322 = vector.broadcast %308 : vector<1x8xf32> to vector<20x8xf32>
    %323 = arith.addf %321, %322 : vector<20x8xf32>
    %cst_170 = arith.constant 0.353553385 : f32
    %324 = vector.broadcast %cst_170 : f32 to vector<16x8xf32>
    %325 = arith.mulf %313, %324 : vector<16x8xf32>
    %326 = arith.truncf %325 : vector<16x8xf32> to vector<16x8xbf16>
    %327 = vector.shape_cast %326 : vector<16x8xbf16> to vector<2x8x8xbf16>
    %328 = arith.truncf %318 : vector<20x8xf32> to vector<20x8xbf16>
    %329 = vector.shape_cast %328 : vector<20x8xbf16> to vector<2x10x8xbf16>
    %330 = arith.truncf %323 : vector<20x8xf32> to vector<20x8xbf16>
    %331 = vector.shape_cast %330 : vector<20x8xbf16> to vector<2x10x8xbf16>
    "tpu.trace_start"() <{level = 10 : i32, message = "bqd,bkd->bqk"}> : () -> ()
    %cst_171 = arith.constant dense<0.000000e+00> : vector<2x8x10xf32>
    %332 = tpu.matmul %327, %329, %cst_171 {dimension_numbers = #tpu.dot_dimension_numbers<[2], [2], [1], [1], [0, 0, 0, 1, 1, 1], [0], [0]>} : vector<2x8x8xbf16>, vector<2x10x8xbf16>, vector<2x8x10xf32> -> vector<2x8x10xf32>
    "tpu.trace_stop"() : () -> ()
    %333 = vector.broadcast %20 : vector<2x1x10xf32> to vector<2x8x10xf32>
    %334 = arith.addf %332, %333 : vector<2x8x10xf32>
    %cst_172 = arith.constant dense<0xFF800000> : vector<2x8xf32>
    %335 = vector.multi_reduction <maximumf>, %334, %cst_172 [2] : vector<2x8x10xf32> to vector<2x8xf32>
    %336 = vector.shape_cast %335 : vector<2x8xf32> to vector<2x8x1xf32>
    %337 = vector.broadcast %336 : vector<2x8x1xf32> to vector<2x8x10xf32>
    %338 = arith.subf %334, %337 : vector<2x8x10xf32>
    %339 = math.exp %338 : vector<2x8x10xf32>
    %cst_173 = arith.constant dense<0.000000e+00> : vector<2x8xf32>
    %340 = vector.multi_reduction <add>, %339, %cst_173 [2] : vector<2x8x10xf32> to vector<2x8xf32>
    %341 = vector.shape_cast %340 : vector<2x8xf32> to vector<2x8x1xf32>
    %342 = tpu.reciprocal %341 {approx = true} : vector<2x8x1xf32> -> vector<2x8x1xf32>
    %343 = arith.truncf %339 : vector<2x8x10xf32> to vector<2x8x10xbf16>
    "tpu.trace_start"() <{level = 10 : i32, message = "bqk,bkd->bqd"}> : () -> ()
    %cst_174 = arith.constant dense<0.000000e+00> : vector<2x8x8xf32>
    %344 = tpu.matmul %343, %331, %cst_174 {dimension_numbers = #tpu.dot_dimension_numbers<[2], [1], [1], [2], [0, 0, 0, 1, 1, 2], [0], [0]>} : vector<2x8x10xbf16>, vector<2x10x8xbf16>, vector<2x8x8xf32> -> vector<2x8x8xf32>
    "tpu.trace_stop"() : () -> ()
    %345 = vector.broadcast %342 : vector<2x8x1xf32> to vector<2x8x8xf32>
    %346 = arith.mulf %344, %345 : vector<2x8x8xf32>
    %347 = vector.shape_cast %346 : vector<2x8x8xf32> to vector<16x8xf32>
    %348 = arith.truncf %347 : vector<16x8xf32> to vector<16x8xbf16>
    %c5_175 = arith.constant 5 : index
    %c0_176 = arith.constant 0 : index
    %c0_177 = arith.constant 0 : index
    %349 = vector.load %arg7[%c5_175, %c0_176, %c0_177] : memref<8x8x32xbf16, #tpu.memory_space<vmem>>, vector<1x8x32xbf16>
    %350 = vector.shape_cast %349 : vector<1x8x32xbf16> to vector<8x32xbf16>
    %cst_178 = arith.constant dense<0.000000e+00> : vector<16x32xf32>
    %351 = tpu.matmul %348, %350, %cst_178 {dimension_numbers = #tpu.dot_dimension_numbers<[1], [0], [0], [1], [0, 0, 1, 1], [], []>} : vector<16x8xbf16>, vector<8x32xbf16>, vector<16x32xf32> -> vector<16x32xf32>
    %352 = arith.addf %303, %351 : vector<16x32xf32>
    %c14 = arith.constant 14 : index
    %c0_179 = arith.constant 0 : index
    %353 = vector.load %arg6[%c14, %c0_179] : memref<24x8xf32, #tpu.memory_space<vmem>>, vector<1x8xf32>
    %c18 = arith.constant 18 : index
    %c0_180 = arith.constant 0 : index
    %354 = vector.load %arg6[%c18, %c0_180] : memref<24x8xf32, #tpu.memory_space<vmem>>, vector<1x8xf32>
    %c22 = arith.constant 22 : index
    %c0_181 = arith.constant 0 : index
    %355 = vector.load %arg6[%c22, %c0_181] : memref<24x8xf32, #tpu.memory_space<vmem>>, vector<1x8xf32>
    %c14_182 = arith.constant 14 : index
    %c0_183 = arith.constant 0 : index
    %c0_184 = arith.constant 0 : index
    %356 = vector.load %arg5[%c14_182, %c0_183, %c0_184] : memref<24x32x8xbf16, #tpu.memory_space<vmem>>, vector<1x32x8xbf16>
    %357 = vector.shape_cast %356 : vector<1x32x8xbf16> to vector<32x8xbf16>
    %cst_185 = arith.constant dense<0.000000e+00> : vector<16x8xf32>
    %358 = tpu.matmul %257, %357, %cst_185 {dimension_numbers = #tpu.dot_dimension_numbers<[1], [0], [0], [1], [0, 0, 1, 1], [], []>} : vector<16x32xbf16>, vector<32x8xbf16>, vector<16x8xf32> -> vector<16x8xf32>
    %359 = vector.broadcast %353 : vector<1x8xf32> to vector<16x8xf32>
    %360 = arith.addf %358, %359 : vector<16x8xf32>
    %c18_186 = arith.constant 18 : index
    %c0_187 = arith.constant 0 : index
    %c0_188 = arith.constant 0 : index
    %361 = vector.load %arg5[%c18_186, %c0_187, %c0_188] : memref<24x32x8xbf16, #tpu.memory_space<vmem>>, vector<1x32x8xbf16>
    %362 = vector.shape_cast %361 : vector<1x32x8xbf16> to vector<32x8xbf16>
    %cst_189 = arith.constant dense<0.000000e+00> : vector<20x8xf32>
    %363 = tpu.matmul %1, %362, %cst_189 {dimension_numbers = #tpu.dot_dimension_numbers<[1], [0], [0], [1], [0, 0, 1, 1], [], []>} : vector<20x32xbf16>, vector<32x8xbf16>, vector<20x8xf32> -> vector<20x8xf32>
    %364 = vector.broadcast %354 : vector<1x8xf32> to vector<20x8xf32>
    %365 = arith.addf %363, %364 : vector<20x8xf32>
    %c22_190 = arith.constant 22 : index
    %c0_191 = arith.constant 0 : index
    %c0_192 = arith.constant 0 : index
    %366 = vector.load %arg5[%c22_190, %c0_191, %c0_192] : memref<24x32x8xbf16, #tpu.memory_space<vmem>>, vector<1x32x8xbf16>
    %367 = vector.shape_cast %366 : vector<1x32x8xbf16> to vector<32x8xbf16>
    %cst_193 = arith.constant dense<0.000000e+00> : vector<20x8xf32>
    %368 = tpu.matmul %1, %367, %cst_193 {dimension_numbers = #tpu.dot_dimension_numbers<[1], [0], [0], [1], [0, 0, 1, 1], [], []>} : vector<20x32xbf16>, vector<32x8xbf16>, vector<20x8xf32> -> vector<20x8xf32>
    %369 = vector.broadcast %355 : vector<1x8xf32> to vector<20x8xf32>
    %370 = arith.addf %368, %369 : vector<20x8xf32>
    %cst_194 = arith.constant 0.353553385 : f32
    %371 = vector.broadcast %cst_194 : f32 to vector<16x8xf32>
    %372 = arith.mulf %360, %371 : vector<16x8xf32>
    %373 = arith.truncf %372 : vector<16x8xf32> to vector<16x8xbf16>
    %374 = vector.shape_cast %373 : vector<16x8xbf16> to vector<2x8x8xbf16>
    %375 = arith.truncf %365 : vector<20x8xf32> to vector<20x8xbf16>
    %376 = vector.shape_cast %375 : vector<20x8xbf16> to vector<2x10x8xbf16>
    %377 = arith.truncf %370 : vector<20x8xf32> to vector<20x8xbf16>
    %378 = vector.shape_cast %377 : vector<20x8xbf16> to vector<2x10x8xbf16>
    "tpu.trace_start"() <{level = 10 : i32, message = "bqd,bkd->bqk"}> : () -> ()
    %cst_195 = arith.constant dense<0.000000e+00> : vector<2x8x10xf32>
    %379 = tpu.matmul %374, %376, %cst_195 {dimension_numbers = #tpu.dot_dimension_numbers<[2], [2], [1], [1], [0, 0, 0, 1, 1, 1], [0], [0]>} : vector<2x8x8xbf16>, vector<2x10x8xbf16>, vector<2x8x10xf32> -> vector<2x8x10xf32>
    "tpu.trace_stop"() : () -> ()
    %380 = vector.broadcast %20 : vector<2x1x10xf32> to vector<2x8x10xf32>
    %381 = arith.addf %379, %380 : vector<2x8x10xf32>
    %cst_196 = arith.constant dense<0xFF800000> : vector<2x8xf32>
    %382 = vector.multi_reduction <maximumf>, %381, %cst_196 [2] : vector<2x8x10xf32> to vector<2x8xf32>
    %383 = vector.shape_cast %382 : vector<2x8xf32> to vector<2x8x1xf32>
    %384 = vector.broadcast %383 : vector<2x8x1xf32> to vector<2x8x10xf32>
    %385 = arith.subf %381, %384 : vector<2x8x10xf32>
    %386 = math.exp %385 : vector<2x8x10xf32>
    %cst_197 = arith.constant dense<0.000000e+00> : vector<2x8xf32>
    %387 = vector.multi_reduction <add>, %386, %cst_197 [2] : vector<2x8x10xf32> to vector<2x8xf32>
    %388 = vector.shape_cast %387 : vector<2x8xf32> to vector<2x8x1xf32>
    %389 = tpu.reciprocal %388 {approx = true} : vector<2x8x1xf32> -> vector<2x8x1xf32>
    %390 = arith.truncf %386 : vector<2x8x10xf32> to vector<2x8x10xbf16>
    "tpu.trace_start"() <{level = 10 : i32, message = "bqk,bkd->bqd"}> : () -> ()
    %cst_198 = arith.constant dense<0.000000e+00> : vector<2x8x8xf32>
    %391 = tpu.matmul %390, %378, %cst_198 {dimension_numbers = #tpu.dot_dimension_numbers<[2], [1], [1], [2], [0, 0, 0, 1, 1, 2], [0], [0]>} : vector<2x8x10xbf16>, vector<2x10x8xbf16>, vector<2x8x8xf32> -> vector<2x8x8xf32>
    "tpu.trace_stop"() : () -> ()
    %392 = vector.broadcast %389 : vector<2x8x1xf32> to vector<2x8x8xf32>
    %393 = arith.mulf %391, %392 : vector<2x8x8xf32>
    %394 = vector.shape_cast %393 : vector<2x8x8xf32> to vector<16x8xf32>
    %395 = arith.truncf %394 : vector<16x8xf32> to vector<16x8xbf16>
    %c6_199 = arith.constant 6 : index
    %c0_200 = arith.constant 0 : index
    %c0_201 = arith.constant 0 : index
    %396 = vector.load %arg7[%c6_199, %c0_200, %c0_201] : memref<8x8x32xbf16, #tpu.memory_space<vmem>>, vector<1x8x32xbf16>
    %397 = vector.shape_cast %396 : vector<1x8x32xbf16> to vector<8x32xbf16>
    %cst_202 = arith.constant dense<0.000000e+00> : vector<16x32xf32>
    %398 = tpu.matmul %395, %397, %cst_202 {dimension_numbers = #tpu.dot_dimension_numbers<[1], [0], [0], [1], [0, 0, 1, 1], [], []>} : vector<16x8xbf16>, vector<8x32xbf16>, vector<16x32xf32> -> vector<16x32xf32>
    %399 = arith.addf %352, %398 : vector<16x32xf32>
    %c15 = arith.constant 15 : index
    %c0_203 = arith.constant 0 : index
    %400 = vector.load %arg6[%c15, %c0_203] : memref<24x8xf32, #tpu.memory_space<vmem>>, vector<1x8xf32>
    %c19 = arith.constant 19 : index
    %c0_204 = arith.constant 0 : index
    %401 = vector.load %arg6[%c19, %c0_204] : memref<24x8xf32, #tpu.memory_space<vmem>>, vector<1x8xf32>
    %c23 = arith.constant 23 : index
    %c0_205 = arith.constant 0 : index
    %402 = vector.load %arg6[%c23, %c0_205] : memref<24x8xf32, #tpu.memory_space<vmem>>, vector<1x8xf32>
    %c15_206 = arith.constant 15 : index
    %c0_207 = arith.constant 0 : index
    %c0_208 = arith.constant 0 : index
    %403 = vector.load %arg5[%c15_206, %c0_207, %c0_208] : memref<24x32x8xbf16, #tpu.memory_space<vmem>>, vector<1x32x8xbf16>
    %404 = vector.shape_cast %403 : vector<1x32x8xbf16> to vector<32x8xbf16>
    %cst_209 = arith.constant dense<0.000000e+00> : vector<16x8xf32>
    %405 = tpu.matmul %257, %404, %cst_209 {dimension_numbers = #tpu.dot_dimension_numbers<[1], [0], [0], [1], [0, 0, 1, 1], [], []>} : vector<16x32xbf16>, vector<32x8xbf16>, vector<16x8xf32> -> vector<16x8xf32>
    %406 = vector.broadcast %400 : vector<1x8xf32> to vector<16x8xf32>
    %407 = arith.addf %405, %406 : vector<16x8xf32>
    %c19_210 = arith.constant 19 : index
    %c0_211 = arith.constant 0 : index
    %c0_212 = arith.constant 0 : index
    %408 = vector.load %arg5[%c19_210, %c0_211, %c0_212] : memref<24x32x8xbf16, #tpu.memory_space<vmem>>, vector<1x32x8xbf16>
    %409 = vector.shape_cast %408 : vector<1x32x8xbf16> to vector<32x8xbf16>
    %cst_213 = arith.constant dense<0.000000e+00> : vector<20x8xf32>
    %410 = tpu.matmul %1, %409, %cst_213 {dimension_numbers = #tpu.dot_dimension_numbers<[1], [0], [0], [1], [0, 0, 1, 1], [], []>} : vector<20x32xbf16>, vector<32x8xbf16>, vector<20x8xf32> -> vector<20x8xf32>
    %411 = vector.broadcast %401 : vector<1x8xf32> to vector<20x8xf32>
    %412 = arith.addf %410, %411 : vector<20x8xf32>
    %c23_214 = arith.constant 23 : index
    %c0_215 = arith.constant 0 : index
    %c0_216 = arith.constant 0 : index
    %413 = vector.load %arg5[%c23_214, %c0_215, %c0_216] : memref<24x32x8xbf16, #tpu.memory_space<vmem>>, vector<1x32x8xbf16>
    %414 = vector.shape_cast %413 : vector<1x32x8xbf16> to vector<32x8xbf16>
    %cst_217 = arith.constant dense<0.000000e+00> : vector<20x8xf32>
    %415 = tpu.matmul %1, %414, %cst_217 {dimension_numbers = #tpu.dot_dimension_numbers<[1], [0], [0], [1], [0, 0, 1, 1], [], []>} : vector<20x32xbf16>, vector<32x8xbf16>, vector<20x8xf32> -> vector<20x8xf32>
    %416 = vector.broadcast %402 : vector<1x8xf32> to vector<20x8xf32>
    %417 = arith.addf %415, %416 : vector<20x8xf32>
    %cst_218 = arith.constant 0.353553385 : f32
    %418 = vector.broadcast %cst_218 : f32 to vector<16x8xf32>
    %419 = arith.mulf %407, %418 : vector<16x8xf32>
    %420 = arith.truncf %419 : vector<16x8xf32> to vector<16x8xbf16>
    %421 = vector.shape_cast %420 : vector<16x8xbf16> to vector<2x8x8xbf16>
    %422 = arith.truncf %412 : vector<20x8xf32> to vector<20x8xbf16>
    %423 = vector.shape_cast %422 : vector<20x8xbf16> to vector<2x10x8xbf16>
    %424 = arith.truncf %417 : vector<20x8xf32> to vector<20x8xbf16>
    %425 = vector.shape_cast %424 : vector<20x8xbf16> to vector<2x10x8xbf16>
    "tpu.trace_start"() <{level = 10 : i32, message = "bqd,bkd->bqk"}> : () -> ()
    %cst_219 = arith.constant dense<0.000000e+00> : vector<2x8x10xf32>
    %426 = tpu.matmul %421, %423, %cst_219 {dimension_numbers = #tpu.dot_dimension_numbers<[2], [2], [1], [1], [0, 0, 0, 1, 1, 1], [0], [0]>} : vector<2x8x8xbf16>, vector<2x10x8xbf16>, vector<2x8x10xf32> -> vector<2x8x10xf32>
    "tpu.trace_stop"() : () -> ()
    %427 = vector.broadcast %20 : vector<2x1x10xf32> to vector<2x8x10xf32>
    %428 = arith.addf %426, %427 : vector<2x8x10xf32>
    %cst_220 = arith.constant dense<0xFF800000> : vector<2x8xf32>
    %429 = vector.multi_reduction <maximumf>, %428, %cst_220 [2] : vector<2x8x10xf32> to vector<2x8xf32>
    %430 = vector.shape_cast %429 : vector<2x8xf32> to vector<2x8x1xf32>
    %431 = vector.broadcast %430 : vector<2x8x1xf32> to vector<2x8x10xf32>
    %432 = arith.subf %428, %431 : vector<2x8x10xf32>
    %433 = math.exp %432 : vector<2x8x10xf32>
    %cst_221 = arith.constant dense<0.000000e+00> : vector<2x8xf32>
    %434 = vector.multi_reduction <add>, %433, %cst_221 [2] : vector<2x8x10xf32> to vector<2x8xf32>
    %435 = vector.shape_cast %434 : vector<2x8xf32> to vector<2x8x1xf32>
    %436 = tpu.reciprocal %435 {approx = true} : vector<2x8x1xf32> -> vector<2x8x1xf32>
    %437 = arith.truncf %433 : vector<2x8x10xf32> to vector<2x8x10xbf16>
    "tpu.trace_start"() <{level = 10 : i32, message = "bqk,bkd->bqd"}> : () -> ()
    %cst_222 = arith.constant dense<0.000000e+00> : vector<2x8x8xf32>
    %438 = tpu.matmul %437, %425, %cst_222 {dimension_numbers = #tpu.dot_dimension_numbers<[2], [1], [1], [2], [0, 0, 0, 1, 1, 2], [0], [0]>} : vector<2x8x10xbf16>, vector<2x10x8xbf16>, vector<2x8x8xf32> -> vector<2x8x8xf32>
    "tpu.trace_stop"() : () -> ()
    %439 = vector.broadcast %436 : vector<2x8x1xf32> to vector<2x8x8xf32>
    %440 = arith.mulf %438, %439 : vector<2x8x8xf32>
    %441 = vector.shape_cast %440 : vector<2x8x8xf32> to vector<16x8xf32>
    %442 = arith.truncf %441 : vector<16x8xf32> to vector<16x8xbf16>
    %c7_223 = arith.constant 7 : index
    %c0_224 = arith.constant 0 : index
    %c0_225 = arith.constant 0 : index
    %443 = vector.load %arg7[%c7_223, %c0_224, %c0_225] : memref<8x8x32xbf16, #tpu.memory_space<vmem>>, vector<1x8x32xbf16>
    %444 = vector.shape_cast %443 : vector<1x8x32xbf16> to vector<8x32xbf16>
    %cst_226 = arith.constant dense<0.000000e+00> : vector<16x32xf32>
    %445 = tpu.matmul %442, %444, %cst_226 {dimension_numbers = #tpu.dot_dimension_numbers<[1], [0], [0], [1], [0, 0, 1, 1], [], []>} : vector<16x8xbf16>, vector<8x32xbf16>, vector<16x32xf32> -> vector<16x32xf32>
    %446 = arith.addf %399, %445 : vector<16x32xf32>
    %c1_227 = arith.constant 1 : index
    %c0_228 = arith.constant 0 : index
    %447 = vector.load %arg8[%c1_227, %c0_228] : memref<2x32xf32, #tpu.memory_space<vmem>>, vector<1x32xf32>
    %448 = vector.broadcast %447 : vector<1x32xf32> to vector<16x32xf32>
    %449 = arith.addf %446, %448 : vector<16x32xf32>
    %450 = arith.addf %449, %232 : vector<16x32xf32>
    %c2_229 = arith.constant 2 : index
    %c0_230 = arith.constant 0 : index
    %451 = vector.load %arg9[%c2_229, %c0_230] : memref<3x32xf32, #tpu.memory_space<vmem>>, vector<1x32xf32>
    %c2_231 = arith.constant 2 : index
    %c0_232 = arith.constant 0 : index
    %452 = vector.load %arg10[%c2_231, %c0_232] : memref<3x32xf32, #tpu.memory_space<vmem>>, vector<1x32xf32>
    %cst_233 = arith.constant dense<0.000000e+00> : vector<16xf32>
    %453 = vector.multi_reduction <add>, %450, %cst_233 [1] : vector<16x32xf32> to vector<16xf32>
    %454 = vector.shape_cast %453 : vector<16xf32> to vector<16x1xf32>
    %cst_234 = arith.constant 3.200000e+01 : f32
    %455 = vector.broadcast %cst_234 : f32 to vector<16x1xf32>
    %456 = arith.divf %454, %455 : vector<16x1xf32>
    %457 = vector.broadcast %456 : vector<16x1xf32> to vector<16x32xf32>
    %458 = arith.subf %450, %457 : vector<16x32xf32>
    %459 = arith.mulf %458, %458 : vector<16x32xf32>
    %cst_235 = arith.constant dense<0.000000e+00> : vector<16xf32>
    %460 = vector.multi_reduction <add>, %459, %cst_235 [1] : vector<16x32xf32> to vector<16xf32>
    %461 = vector.shape_cast %460 : vector<16xf32> to vector<16x1xf32>
    %cst_236 = arith.constant 3.200000e+01 : f32
    %462 = vector.broadcast %cst_236 : f32 to vector<16x1xf32>
    %463 = arith.divf %461, %462 : vector<16x1xf32>
    %464 = vector.broadcast %456 : vector<16x1xf32> to vector<16x32xf32>
    %465 = arith.subf %450, %464 : vector<16x32xf32>
    %cst_237 = arith.constant 9.99999997E-7 : f32
    %466 = vector.broadcast %cst_237 : f32 to vector<16x1xf32>
    %467 = arith.addf %463, %466 : vector<16x1xf32>
    %468 = math.rsqrt %467 : vector<16x1xf32>
    %469 = vector.broadcast %468 : vector<16x1xf32> to vector<16x32xf32>
    %470 = arith.mulf %465, %469 : vector<16x32xf32>
    %471 = vector.broadcast %451 : vector<1x32xf32> to vector<16x32xf32>
    %472 = arith.mulf %470, %471 : vector<16x32xf32>
    %473 = vector.broadcast %452 : vector<1x32xf32> to vector<16x32xf32>
    %474 = arith.addf %472, %473 : vector<16x32xf32>
    %475 = arith.truncf %474 : vector<16x32xf32> to vector<16x32xbf16>
    %c0_238 = arith.constant 0 : index
    %c0_239 = arith.constant 0 : index
    %476 = vector.load %arg14[%c0_238, %c0_239] : memref<1x32xf32, #tpu.memory_space<vmem>>, vector<1x32xf32>
    %477 = vector.broadcast %476 : vector<1x32xf32> to vector<16x32xf32>
    %478 = arith.addf %450, %477 : vector<16x32xf32>
    %c0_240 = arith.constant 0 : index
    %c0_241 = arith.constant 0 : index
    %479 = vector.load %arg11[%c0_240, %c0_241] : memref<32x64xbf16, #tpu.memory_space<vmem>>, vector<32x64xbf16>
    %cst_242 = arith.constant dense<0.000000e+00> : vector<16x64xf32>
    %480 = tpu.matmul %475, %479, %cst_242 {dimension_numbers = #tpu.dot_dimension_numbers<[1], [0], [0], [1], [0, 0, 1, 1], [], []>} : vector<16x32xbf16>, vector<32x64xbf16>, vector<16x64xf32> -> vector<16x64xf32>
    %c0_243 = arith.constant 0 : index
    %c0_244 = arith.constant 0 : index
    %481 = vector.load %arg12[%c0_243, %c0_244] : memref<1x64xf32, #tpu.memory_space<vmem>>, vector<1x64xf32>
    %482 = vector.broadcast %481 : vector<1x64xf32> to vector<16x64xf32>
    %483 = arith.addf %480, %482 : vector<16x64xf32>
    %cst_245 = arith.constant 0.000000e+00 : f32
    %484 = vector.broadcast %cst_245 : f32 to vector<16x64xf32>
    %485 = arith.maximumf %483, %484 : vector<16x64xf32>
    %486 = arith.truncf %485 : vector<16x64xf32> to vector<16x64xbf16>
    %c0_246 = arith.constant 0 : index
    %c0_247 = arith.constant 0 : index
    %487 = vector.load %arg13[%c0_246, %c0_247] : memref<64x32xbf16, #tpu.memory_space<vmem>>, vector<64x32xbf16>
    %cst_248 = arith.constant dense<0.000000e+00> : vector<16x32xf32>
    %488 = tpu.matmul %486, %487, %cst_248 {dimension_numbers = #tpu.dot_dimension_numbers<[1], [0], [0], [1], [0, 0, 1, 1], [], []>} : vector<16x64xbf16>, vector<64x32xbf16>, vector<16x32xf32> -> vector<16x32xf32>
    %489 = arith.addf %478, %488 : vector<16x32xf32>
    %c0_249 = arith.constant 0 : index
    %c0_250 = arith.constant 0 : index
    %490 = vector.load %arg15[%c0_249, %c0_250] : memref<16x32xf32, #tpu.memory_space<vmem>>, vector<16x32xf32>
    tpu.vector_store %arg15[%c0_249, %c0_250], %489 {strides = array<i32>} : memref<16x32xf32, #tpu.memory_space<vmem>>, vector<16x32xf32>,
    %491 = arith.truncf %44 : vector<16x32xf32> to vector<16x32xbf16>
    %c0_251 = arith.constant 0 : index
    %c0_252 = arith.constant 0 : index
    %492 = vector.load %arg17[%c0_251, %c0_252] : memref<16x32xbf16, #tpu.memory_space<vmem>>, vector<16x32xbf16>
    tpu.vector_store %arg17[%c0_251, %c0_252], %491 {strides = array<i32>} : memref<16x32xbf16, #tpu.memory_space<vmem>>, vector<16x32xbf16>,
    %493 = vector.extract_strided_slice %305 {offsets = [0, 0, 0], sizes = [2, 8, 1], strides = [1, 1, 1]} : vector<2x8x10xf32> to vector<2x8x1xf32>
    %cst_253 = arith.constant 0.000000e+00 : f32
    %494 = vector.broadcast %cst_253 : f32 to vector<2x8x1xf32>
    %495 = arith.mulf %493, %494 : vector<2x8x1xf32>
    %496 = vector.shape_cast %495 : vector<2x8x1xf32> to vector<2x8x1xf32>
    %497 = vector.broadcast %496 : vector<2x8x1xf32> to vector<2x8x118xf32>
    %498 = tpu.concatenate %305, %497 in 2 : vector<2x8x10xf32>, vector<2x8x118xf32> -> vector<2x8x128xf32>
    %c0_254 = arith.constant 0 : index
    %c0_255 = arith.constant 0 : index
    %c0_256 = arith.constant 0 : index
    %499 = vector.load %arg16[%c0_254, %c0_255, %c0_256] : memref<2x8x128xf32, #tpu.memory_space<vmem>>, vector<2x8x128xf32>
    tpu.vector_store %arg16[%c0_254, %c0_255, %c0_256], %498 {strides = array<i32>} : memref<2x8x128xf32, #tpu.memory_space<vmem>>, vector<2x8x128xf32>,
    return
  }
  func.func @transform_0(%arg0: i32) -> (i32, i32) {
    %c0_i32 = arith.constant 0 : i32
    %c0_i32_0 = arith.constant 0 : i32
    return %arg0, %c0_i32 : i32, i32
  }
  func.func @transform_1(%arg0: i32) -> (i32, i32) {
    %c0_i32 = arith.constant 0 : i32
    %c0_i32_0 = arith.constant 0 : i32
    return %arg0, %c0_i32 : i32, i32
  }
  func.func @transform_2(%arg0: i32) -> (i32, i32, i32) {
    %c0_i32 = arith.constant 0 : i32
    %c0_i32_0 = arith.constant 0 : i32
    %c0_i32_1 = arith.constant 0 : i32
    return %arg0, %c0_i32, %c0_i32_0 : i32, i32, i32
  }
  func.func @transform_3(%arg0: i32) -> (i32, i32, i32) {
    %c0_i32 = arith.constant 0 : i32
    %c0_i32_0 = arith.constant 0 : i32
    %c0_i32_1 = arith.constant 0 : i32
    return %arg0, %c0_i32, %c0_i32_0 : i32, i32, i32
  }
  func.func @transform_4(%arg0: i32) -> (i32, i32, i32) {
    %c0_i32 = arith.constant 0 : i32
    %c0_i32_0 = arith.constant 0 : i32
    %c0_i32_1 = arith.constant 0 : i32
    %c0_i32_2 = arith.constant 0 : i32
    return %c0_i32, %c0_i32_0, %c0_i32_1 : i32, i32, i32
  }
  func.func @transform_5(%arg0: i32) -> (i32, i32) {
    %c0_i32 = arith.constant 0 : i32
    %c0_i32_0 = arith.constant 0 : i32
    %c0_i32_1 = arith.constant 0 : i32
    return %c0_i32, %c0_i32_0 : i32, i32
  }
  func.func @transform_6(%arg0: i32) -> (i32, i32, i32) {
    %c0_i32 = arith.constant 0 : i32
    %c0_i32_0 = arith.constant 0 : i32
    %c0_i32_1 = arith.constant 0 : i32
    %c0_i32_2 = arith.constant 0 : i32
    return %c0_i32, %c0_i32_0, %c0_i32_1 : i32, i32, i32
  }
  func.func @transform_7(%arg0: i32) -> (i32, i32) {
    %c0_i32 = arith.constant 0 : i32
    %c0_i32_0 = arith.constant 0 : i32
    %c0_i32_1 = arith.constant 0 : i32
    return %c0_i32, %c0_i32_0 : i32, i32
  }
  func.func @transform_8(%arg0: i32) -> (i32, i32) {
    %c0_i32 = arith.constant 0 : i32
    %c0_i32_0 = arith.constant 0 : i32
    %c0_i32_1 = arith.constant 0 : i32
    return %c0_i32, %c0_i32_0 : i32, i32
  }
  func.func @transform_9(%arg0: i32) -> (i32, i32) {
    %c0_i32 = arith.constant 0 : i32
    %c0_i32_0 = arith.constant 0 : i32
    %c0_i32_1 = arith.constant 0 : i32
    return %c0_i32, %c0_i32_0 : i32, i32
  }
  func.func @transform_10(%arg0: i32) -> (i32, i32) {
    %c0_i32 = arith.constant 0 : i32
    %c0_i32_0 = arith.constant 0 : i32
    %c0_i32_1 = arith.constant 0 : i32
    return %c0_i32, %c0_i32_0 : i32, i32
  }
  func.func @transform_11(%arg0: i32) -> (i32, i32) {
    %c0_i32 = arith.constant 0 : i32
    %c0_i32_0 = arith.constant 0 : i32
    %c0_i32_1 = arith.constant 0 : i32
    return %c0_i32, %c0_i32_0 : i32, i32
  }
  func.func @transform_12(%arg0: i32) -> (i32, i32) {
    %c0_i32 = arith.constant 0 : i32
    %c0_i32_0 = arith.constant 0 : i32
    %c0_i32_1 = arith.constant 0 : i32
    return %c0_i32, %c0_i32_0 : i32, i32
  }
  func.func @transform_13(%arg0: i32) -> (i32, i32) {
    %c0_i32 = arith.constant 0 : i32
    %c0_i32_0 = arith.constant 0 : i32
    %c0_i32_1 = arith.constant 0 : i32
    return %c0_i32, %c0_i32_0 : i32, i32
  }
  func.func @transform_14(%arg0: i32) -> (i32, i32) {
    %c0_i32 = arith.constant 0 : i32
    %c0_i32_0 = arith.constant 0 : i32
    return %arg0, %c0_i32 : i32, i32
  }
  func.func @transform_15(%arg0: i32) -> (i32, i32, i32) {
    %c0_i32 = arith.constant 0 : i32
    %c0_i32_0 = arith.constant 0 : i32
    %c0_i32_1 = arith.constant 0 : i32
    return %arg0, %c0_i32, %c0_i32_0 : i32, i32, i32
  }
  func.func @transform_16(%arg0: i32) -> (i32, i32) {
    %c0_i32 = arith.constant 0 : i32
    %c0_i32_0 = arith.constant 0 : i32
    return %arg0, %c0_i32 : i32, i32
  }
}

</mosaic_0001>

<bundles_post_ra>
// kernel: tpu_custom_call.1
= control target key start
LH: loop header
LB: loop body
LE: loop exit
PB: predicated region body
PF: predicated region fallthrough
CT: control target
= control target key end

     0   :  { %s7823_s0 = inlined_call_operand.vmem [shape: f32[16,32], index: 0, kind: input, shape index: {}]   ;;  %s7824_s1 = inlined_call_operand.vmem [shape: bf16[20,32], index: 1, kind: input, shape index: {}]   ;;  %s7825_s2 = inlined_call_operand.vmem [shape: f32[2,1,8], index: 2, kind: input, shape index: {}]   ;;  %s7826_s3 = inlined_call_operand.vmem [shape: f32[2,1,10], index: 3, kind: input, shape index: {}]   ;;  %s7827_s4 = inlined_call_operand.vmem [shape: bf16[24,32,8], index: 4, kind: input, shape index: {}]   ;;  %s7828_s5 = inlined_call_operand.vmem [shape: f32[24,8], index: 5, kind: input, shape index: {}]   ;;  %s7829_s6 = inlined_call_operand.vmem [shape: bf16[8,8,32], index: 6, kind: input, shape index: {}]   ;;  %s7830_s7 = inlined_call_operand.vmem [shape: f32[2,32], index: 7, kind: input, shape index: {}]   ;;  %s7831_s8 = inlined_call_operand.vmem [shape: f32[3,32], index: 8, kind: input, shape index: {}]   ;;  %s7832_s9 = inlined_call_operand.vmem [shape: f32[3,32], index: 9, kind: input, shape index: {}]   ;;  %s7833_s10 = inlined_call_operand.vmem [shape: bf16[32,64], index: 10, kind: input, shape index: {}]   ;;  %s7834_s11 = inlined_call_operand.vmem [shape: f32[1,64], index: 11, kind: input, shape index: {}]   ;;  %s7835_s12 = inlined_call_operand.vmem [shape: bf16[64,32], index: 12, kind: input, shape index: {}]   ;;  %s7836_s13 = inlined_call_operand.vmem [shape: f32[1,32], index: 13, kind: input, shape index: {}]   ;;  %s7837_s14 = inlined_call_operand.hbm [shape: f32[16,32], index: 14, kind: output, shape index: {0}]   ;;  %s7838_s15 = inlined_call_operand.hbm [shape: f32[2,8,128], index: 15, kind: output, shape index: {1}]   ;;  %s7839_s16 = inlined_call_operand.hbm [shape: bf16[16,32], index: 16, kind: output, shape index: {2}]  }
   0x1   :  { %7841 = sst [smem:[#allocation9_spill]] %s7823_s0 }
   0x2   :  { %22 = vsyncpa [#allocation3], 0  ;;  %s7842_s23 = sld [smem:[#allocation9_spill]]  ;;  %vm93_vm0 = vcmask 261120  }
   0x8   :  { %v53_v0 = vld [vmem:[%s7842_s23] sm:$0xff]  ;;  %v54_v1 = vld [vmem:[%s7842_s23 + $0x8] sm:$0xff] }
   0x9   :  { %v94_v2 = vsel %vm93_vm0, %v53_v0, 0.0  ;;  %v97_v3 = vsel %vm93_vm0, %v54_v1, 0.0 }
   0xa   :  { %95 = vadd.xlane.f32.xlu0 %v94_v2 }
   0xe   :  { %98 = vadd.xlane.f32.xlu0 %v97_v3 }
   0xf   :  { %23 = vsyncpa [#allocation5], 0  ;;  %v6459_v14 = vld [vmem:[%s7827_s4] sm:$0xff]   ;;  %v6665_v16 = vmov 0.0   ;;  %v6461_v17 = vld [vmem:[%s7827_s4 + $0x8] sm:$0xff]   ;;  %vm6666_vm1 = vmmov 0  }
  0x10   :  { %v6460_v15 = vld [vmem:[%s7827_s4 + $0x40] sm:$0xff]   ;;  %5994 = vmatprep.subr.bf16.mxu0 %v6665_v16  ;;  %6002 = vmatprep.subr.bf16.mxu1 %v6665_v16  ;;  %v6462_v18 = vld [vmem:[%s7827_s4 + $0x48] sm:$0xff]   ;;  %vm5413_vm2 = vcmask 257024   ;;  %v6667_v40 = vmov 0   ;;  %vm345_vm3 = vcmask 64512   ;;  %vm463_vm4 = vcmask 1043456  }
  0x11   :  { %5995 = vmatpush3.bf16.msra.mxu0 %v6459_v14  ;;  %6003 = vmatpush3.bf16.msra.mxu1 %v6460_v15  ;;  %v5479_v26 = vld [vmem:[%s7831_s8] ss:$0 sm:$0xff]  ;;  %v6464_v39 = vld [vmem:[%s7827_s4 + $0x88] sm:$0xff]   ;;  %v5489_v41 = vld [vmem:[%s7828_s5 + $0x4] ss:$0 sm:$0xff]  ;;  %vm2684_vm12 = vcmask 1044480  }
  0x12   :  { %5996 = vmatprep.subr.bf16.mxu0 %v6665_v16  ;;  %6004 = vmatprep.subr.bf16.mxu1 %v6665_v16  ;;  %v5480_v28 = vld [vmem:[%s7832_s9] ss:$0 sm:$0xff]  ;;  %v5497_v58 = vld [vmem:[%s7828_s5 + $0x8] ss:$0 sm:$0xff]  ;;  %vm2619_vm15 = vcmask 80896  }
  0x13   :  { %5998 = vmatprep.mubr.msk.bf16.mxu0 %vm6666_vm1, %v6665_v16  ;;  %6006 = vmatprep.mubr.msk.bf16.mxu1 %vm6666_vm1, %v6665_v16  ;;  %v6463_v36 = vld [vmem:[%s7827_s4 + $0x80] sm:$0xff]  }
  0x14   :  { %6458 = vset.pattern.permute.xlu1 %v6667_v40  ;;  %6457 = vset.pattern.permute.xlu0 %v6667_v40  ;;  %v5481_v42 = vld [vmem:[%s7828_s5] ss:$0 sm:$0xff] }
  0x15   :  { %5997 = vmatpush3.bf16.msra.mxu0 %v6461_v17  ;;  %6005 = vmatpush3.bf16.msra.mxu1 %v6462_v18 }
  0x16   :  { %6010 = vmatprep.subr.bf16.mxu0 %v6665_v16  ;;  %6018 = vmatprep.subr.bf16.mxu1 %v6665_v16 }
  0x97   :  { %v96_v4 = vpop.xlane.xlu0 %95 }
  0x98   :  { %v101_v5 = vmul.f32 0.03125, %v96_v4 }
  0x9a   :  { %v103_v6 = vsub.f32 %v53_v0, %v101_v5 }
  0x9b   :  { %v99_v7 = vpop.xlane.xlu0 %98 }
  0x9c   :  { %v102_v8 = vmul.f32 0.03125, %v99_v7  ;;  %v105_v9 = vmul.f32 %v103_v6, %v103_v6 }
  0x9e   :  { %v104_v10 = vsub.f32 %v54_v1, %v102_v8  ;;  %v107_v11 = vsel %vm93_vm0, %v105_v9, 0.0 }
  0x9f   :  { %108 = vadd.xlane.f32.xlu1 %v107_v11  ;;  %v58_v11 = vld [vmem:[%s7825_s2] sm:$0x1] }
  0xa0   :  { %v106_v12 = vmul.f32 %v104_v10, %v104_v10  ;;  %vm67_vm5 = vcmp.gt.f32.partialorder %v58_v11, 0.0 }
  0xa1   :  { %v71_v15 = vsel %vm67_vm5, 1, %v6667_v40 }
  0xa2   :  { %v110_v13 = vsel %vm93_vm0, %v106_v12, 0.0 }
  0xa3   :  { %111 = vadd.xlane.f32.xlu1 %v110_v13  ;;  %v59_v13 = vld [vmem:[%s7825_s2 + $0x1] sm:$0x1] }
  0xa4   :  { %vm68_vm6 = vcmp.gt.f32.partialorder %v59_v13, 0.0 }
  0xa5   :  { %v72_v17 = vsel %vm68_vm6, 1, %v6667_v40 }
 0x12c   :  { %v109_v19 = vpop.xlane.xlu1 %108 }
 0x12d   :  { %v113_v20 = vmul.f32 0.03125, %v109_v19 }
 0x12f   :  { %v115_v21 = vadd.f32 1e-06, %v113_v20 }
 0x130   :  { %v112_v22 = vpop.xlane.xlu1 %111 }
 0x131   :  { %6515 = vrsqrt.f32 %v115_v21  ;;  %v114_v23 = vmul.f32 0.03125, %v112_v22 }
 0x133   :  { %v116_v24 = vadd.f32 1e-06, %v114_v23 }
 0x135   :  { %6517 = vrsqrt.f32 %v116_v24 }
 0x13b   :  { %v6516_v25 = vpop.eup %6515 }
 0x13c   :  { %v119_v27 = vmul.f32 %v6516_v25, %v103_v6 }
 0x13e   :  { %v125_v29 = vmul.f32 %v5479_v26, %v119_v27 }
 0x13f   :  { %v6518_v30 = vpop.eup %6517 }
 0x140   :  { %v131_v31 = vadd.f32 %v5480_v28, %v125_v29  ;;  %v120_v32 = vmul.f32 %v6518_v30, %v104_v10  ;;  %v62_v10 = vlaneseq }
 0x142   :  { %v126_v33 = vmul.f32 %v5479_v26, %v120_v32  ;;  %v5824_v34 = vpack.c.bf16 %v131_v31, %v131_v31  ;;  %v6847_v12 = vshrl.u32 %v62_v10, 7  ;;  %v65_v18 = vand.u32 127, %v62_v10  ;;  %v5531_v10 = vld [vmem:[%s7828_s5 + $0x9] ss:$0 sm:$0xff] }
 0x144   :  { %v132_v35 = vadd.f32 %v5480_v28, %v126_v33  ;;  %5414 = vst.msk [vmem:[#allocation6] sm:$0xf] %vm5413_vm2, %v5824_v34  ;;  %v6853_v14 = vsub.s32 0, %v6847_v12  ;;  %vm66_vm7 = vcmp.gt.s32.totalorder %v65_v18, %v6847_v12 }
 0x146   :  { %v6802_v37 = vpack.c.bf16 %v132_v35, %v131_v31  ;;  %v5825_v38 = vpack.c.bf16 %v132_v35, %v132_v35  ;;  %v76_v19 = vrot.slane %v71_v15, %v6853_v14  ;;  %v80_v20 = vrot.slane %v72_v17, %v6853_v14 }
 0x148   :  { %5999 = vmatmul.mubr.msk.bf16.vlgmr.msra.gmra.mrb[0].mxu0 %vm93_vm0, %v6802_v37  ;;  %6007 = vmatmul.mubr.msk.bf16.vlgmr.msra.gmra.mrb[0].mxu1 %vm93_vm0, %v6802_v37  ;;  %5415 = vst.msk [vmem:[#allocation6 + $0x4] sm:$0xf] %vm5413_vm2, %v5825_v38  ;;  %vm81_vm8 = vcmp.eq.s32.totalorder %v76_v19, 1  ;;  %vm82_vm9 = vcmp.eq.s32.totalorder %v80_v20, 1 }
 0x149   :  { %6011 = vmatpush3.bf16.msra.mxu0 %v6463_v36  ;;  %6014 = vmatprep.mubr.msk.bf16.mxu0 %vm6666_vm1, %v6665_v16  ;;  %vm83_vm10 = vmor %vm66_vm7, %vm81_vm8 }
 0x14a   :  { %6012 = vmatprep.subr.bf16.mxu0 %v6665_v16  ;;  %6020 = vmatprep.mubr.msk.bf16.mxu1 %vm6666_vm1, %v6665_v16  ;;  %vm84_vm11 = vmor %vm66_vm7, %vm82_vm9  ;;  %v6859_v21 = vsel %vm83_vm10, -1e+18, %v6665_v16 }
 0x14b   :  { %v6862_v23 = vsel %vm84_vm11, -1e+18, %v6665_v16 }
 0x14d   :  { %6013 = vmatpush3.bf16.msra.mxu0 %v6464_v39 }
 0x14e   :  { %6024 = vmatprep.subr.bf16.mxu0 %v6665_v16 }
 0x150   :  { %6015 = vmatmul.mubr.msk.bf16.vlgmr.msra.gmra.mrb[4].mxu0 %vm93_vm0, %v6802_v37 }
 0x151   :  { %6026 = vmatprep.mubr.msk.bf16.mxu0 %vm6666_vm1, %v6665_v16 }
 0x21b   :  { %v194_v43 = vpop.f32.mrb[0].mxu0  ;;  %v256_v44 = vpop.f32.mrb[0].mxu1 }
 0x21c   :  { %v257_v45 = vadd.f32 %v5489_v41, %v256_v44  ;;  %v6000_v46 = vpop.f32.mrb[1].mxu0  ;;  %v6008_v47 = vpop.f32.mrb[1].mxu1  ;;  %v195_v50 = vadd.f32 %v5481_v42, %v194_v43  ;;  %v6465_v43 = vld [vmem:[%s7827_s4 + $0x10] sm:$0xff]  }
 0x21d   :  { %v197_v48 = vpop.f32.mrb[2].mxu0  ;;  %v259_v49 = vpop.f32.mrb[2].mxu1  ;;  %v6466_v46 = vld [vmem:[%s7827_s4 + $0x50] sm:$0xff]  }
 0x21e   :  { %v5794_v51 = vpack.c.bf16 %v257_v45, %v257_v45  ;;  %v260_v52 = vadd.f32 %v5489_v41, %v259_v49  ;;  %v6001_v53 = vpop.f32.mrb[3].mxu0  ;;  %v6009_v54 = vpop.f32.mrb[3].mxu1  ;;  %v198_v56 = vadd.f32 %v5481_v42, %v197_v48  ;;  %v325_v59 = vmul.f32 0.35355338, %v195_v50  ;;  %v6467_v48 = vld [vmem:[%s7827_s4 + $0x18] sm:$0xff]   ;;  %v6469_v50 = vld [vmem:[%s7827_s4 + $0x90] sm:$0xff]  }
 0x21f   :  { %v6468_v49 = vld [vmem:[%s7827_s4 + $0x58] sm:$0xff]  }
 0x220   :  { %v350_v55 = vsel %vm345_vm3, %v5794_v51, 0  ;;  %v5795_v57 = vpack.c.bf16 %v260_v52, %v260_v52  ;;  %v326_v62 = vmul.f32 0.35355338, %v198_v56  ;;  %v5792_v2 = vpack.c.bf16 %v325_v59, %v325_v59  ;;  %v6470_v51 = vld [vmem:[%s7827_s4 + $0x98] sm:$0xff]  }
 0x221   :  { %6019 = vmatpush3.bf16.xpose.msra.mxu1 %v350_v55 }
 0x222   :  { %v396_v60 = vsel %vm345_vm3, %v5795_v57, 0  ;;  %6030 = vmatprep.subr.bf16.mxu1 %v6665_v16  ;;  %v5793_v6 = vpack.c.bf16 %v326_v62, %v326_v62 }
 0x223   :  { %v318_v61 = vpop.f32.mrb[4].mxu0  ;;  %6025 = vmatpush3.bf16.xpose.msra.mxu0 %v396_v60 }
 0x224   :  { %v319_v63 = vadd.f32 %v5497_v58, %v318_v61  ;;  %v6016_v0 = vpop.f32.mrb[5].mxu0  ;;  %6036 = vmatprep.subr.bf16.mxu0 %v6665_v16  ;;  %v5523_v61 = vld [vmem:[%s7828_s5 + $0x5] ss:$0 sm:$0xff] }
 0x225   :  { %v321_v1 = vpop.f32.mrb[6].mxu0 }
 0x226   :  { %v5796_v3 = vpack.c.bf16 %v319_v63, %v319_v63  ;;  %v322_v4 = vadd.f32 %v5497_v58, %v321_v1  ;;  %v6017_v5 = vpop.f32.mrb[7].mxu0  ;;  %v5515_v63 = vld [vmem:[%s7828_s5 + $0x1] ss:$0 sm:$0xff] }
 0x228   :  { %v465_v7 = vsel %vm463_vm4, %v5796_v3, 0  ;;  %v5797_v8 = vpack.c.bf16 %v322_v4, %v322_v4  ;;  %6021 = vmatmul.mubr.msk.bf16.vlgmr.msra.gmra.mrb[4].mxu1 %vm345_vm3, %v5792_v2 }
 0x229   :  { %6031 = vmatpush3.bf16.msra.mxu1 %v465_v7  ;;  %6032 = vmatprep.mubr.msk.bf16.mxu1 %vm6666_vm1, %v6665_v16 }
 0x22a   :  { %v511_v9 = vsel %vm463_vm4, %v5797_v8, 0  ;;  %6027 = vmatmul.mubr.msk.bf16.vlgmr.msra.gmra.mrb[8].mxu0 %vm345_vm3, %v5793_v6  ;;  %6042 = vmatprep.subr.bf16.mxu1 %v6665_v16 }
 0x22b   :  { %6037 = vmatpush3.bf16.msra.mxu0 %v511_v9  ;;  %6038 = vmatprep.mubr.msk.bf16.mxu0 %vm6666_vm1, %v6665_v16 }
 0x22c   :  { %6050 = vmatprep.subr.bf16.mxu0 %v6665_v16 }
 0x2fb   :  { %v386_v22 = vpop.f32.mrb[4].mxu1 }
 0x2fc   :  { %v387_v24 = vadd.f32 %v386_v22, %v6859_v21  ;;  %v6022_v25 = vpop.f32.mrb[5].mxu1 }
 0x2fd   :  { %v389_v26 = vpop.f32.mrb[6].mxu1  ;;  %v432_v27 = vpop.f32.mrb[8].mxu0 }
 0x2fe   :  { %v433_v28 = vadd.f32 %v432_v27, %v6862_v23  ;;  %v6023_v29 = vpop.f32.mrb[7].mxu1  ;;  %v6028_v30 = vpop.f32.mrb[9].mxu0  ;;  %v438_v31 = vsel %vm345_vm3, %v387_v24, -inf }
 0x2ff   :  { %439 = vmax.xlane.f32.xlu1 %v438_v31  ;;  %v435_v32 = vpop.f32.mrb[10].mxu0 }
 0x300   :  { %v6029_v33 = vpop.f32.mrb[11].mxu0  ;;  %v441_v34 = vsel %vm345_vm3, %v433_v28, -inf }
 0x301   :  { %442 = vmax.xlane.f32.xlu0 %v441_v34 }
 0x38c   :  { %v440_v35 = vpop.xlane.xlu1 %439 }
 0x38d   :  { %v444_v36 = vsub.f32 %v387_v24, %v440_v35 }
 0x38e   :  { %v443_v38 = vpop.xlane.xlu0 %442 }
 0x38f   :  { %v446_v39 = vmul.f32 1.442695, %v444_v36  ;;  %v445_v40 = vsub.f32 %v433_v28, %v443_v38 }
 0x391   :  { %6519 = vpow2.f32 %v446_v39  ;;  %v448_v41 = vmul.f32 1.442695, %v445_v40 }
 0x393   :  { %6521 = vpow2.f32 %v448_v41 }
 0x39b   :  { %v6868_v42 = vpop.eup %6519 }
 0x39c   :  { %v458_v44 = vpack.c.bf16 %v6868_v42, %v6868_v42 }
 0x39d   :  { %v6875_v45 = vpop.eup %6521 }
 0x39e   :  { %6033 = vmatmul.mubr.msk.bf16.vlgmr.msra.gmra.mrb[8].mxu1 %vm345_vm3, %v458_v44  ;;  %v459_v47 = vpack.c.bf16 %v6875_v45, %v6875_v45 }
 0x39f   :  { %6043 = vmatpush3.bf16.msra.mxu1 %v6465_v43  ;;  %6046 = vmatprep.mubr.msk.bf16.mxu1 %vm6666_vm1, %v6665_v16 }
 0x3a0   :  { %6039 = vmatmul.mubr.msk.bf16.vlgmr.msra.gmra.mrb[12].mxu0 %vm345_vm3, %v459_v47  ;;  %6044 = vmatprep.subr.bf16.mxu1 %v6665_v16 }
 0x3a1   :  { %6051 = vmatpush3.bf16.msra.mxu0 %v6466_v46  ;;  %6054 = vmatprep.mubr.msk.bf16.mxu0 %vm6666_vm1, %v6665_v16 }
 0x3a2   :  { %6052 = vmatprep.subr.bf16.mxu0 %v6665_v16 }
 0x3a3   :  { %6045 = vmatpush3.bf16.msra.mxu1 %v6467_v48 }
 0x3a4   :  { %6058 = vmatprep.subr.bf16.mxu1 %v6665_v16 }
 0x3a5   :  { %6053 = vmatpush3.bf16.msra.mxu0 %v6468_v49  ;;  %v450_v49 = vsel %vm345_vm3, %v6868_v42, 0.0  ;;  %v556_v42 = vld [vmem:[%s7829_s6] sm:$0xf] }
 0x3a6   :  { %6047 = vmatmul.mubr.msk.bf16.vlgmr.msra.gmra.mrb[12].mxu1 %vm93_vm0, %v6802_v37  ;;  %6066 = vmatprep.subr.bf16.mxu0 %v6665_v16 }
 0x3a7   :  { %6059 = vmatpush3.bf16.msra.mxu1 %v6469_v50  ;;  %6062 = vmatprep.mubr.msk.bf16.mxu1 %vm6666_vm1, %v6665_v16  ;;  %v453_v50 = vsel %vm345_vm3, %v6875_v45, 0.0 }
 0x3a8   :  { %6055 = vmatmul.mubr.msk.bf16.vlgmr.msra.gmra.mrb[16].mxu0 %vm93_vm0, %v6802_v37  ;;  %6060 = vmatprep.subr.bf16.mxu1 %v6665_v16 }
 0x3a9   :  { %6068 = vmatprep.mubr.msk.bf16.mxu0 %vm6666_vm1, %v6665_v16 }
 0x3ab   :  { %6061 = vmatpush3.bf16.msra.mxu1 %v6470_v51 }
 0x3ac   :  { %6072 = vmatprep.subr.bf16.mxu1 %v6665_v16 }
 0x3ae   :  { %6063 = vmatmul.mubr.msk.bf16.vlgmr.msra.gmra.mrb[16].mxu1 %vm93_vm0, %v6802_v37 }
 0x3af   :  { %6074 = vmatprep.mubr.msk.bf16.mxu1 %vm6666_vm1, %v6665_v16 }
 0x471   :  { %v6918_v52 = vpop.f32.mrb[8].mxu1 }
 0x472   :  { %v6034_v53 = vpop.f32.mrb[9].mxu1 }
 0x473   :  { %v504_v54 = vpop.f32.mrb[10].mxu1  ;;  %v6920_v55 = vpop.f32.mrb[12].mxu0 }
 0x474   :  { %v6035_v56 = vpop.f32.mrb[11].mxu1  ;;  %v6040_v57 = vpop.f32.mrb[13].mxu0 }
 0x475   :  { %v550_v58 = vpop.f32.mrb[14].mxu0 }
 0x476   :  { %v6041_v59 = vpop.f32.mrb[15].mxu0 }
 0x479   :  { %v615_v60 = vpop.f32.mrb[12].mxu1 }
 0x47a   :  { %v6048_v62 = vpop.f32.mrb[13].mxu1  ;;  %v616_v6 = vadd.f32 %v5515_v63, %v615_v60 }
 0x47b   :  { %v618_v0 = vpop.f32.mrb[14].mxu1  ;;  %v677_v1 = vpop.f32.mrb[16].mxu0 }
 0x47c   :  { %v678_v2 = vadd.f32 %v5523_v61, %v677_v1  ;;  %v6049_v3 = vpop.f32.mrb[15].mxu1  ;;  %v6056_v4 = vpop.f32.mrb[17].mxu0  ;;  %v619_v11 = vadd.f32 %v5515_v63, %v618_v0  ;;  %v746_v18 = vmul.f32 0.35355338, %v616_v6 }
 0x47d   :  { %v680_v5 = vpop.f32.mrb[18].mxu0  ;;  %v1028_v4 = vsel %vm463_vm4, %v556_v42, 0 }
 0x47e   :  { %v5800_v7 = vpack.c.bf16 %v678_v2, %v678_v2  ;;  %v681_v8 = vadd.f32 %v5523_v61, %v680_v5  ;;  %v6057_v9 = vpop.f32.mrb[19].mxu0  ;;  %v747_v25 = vmul.f32 0.35355338, %v619_v11  ;;  %v5798_v29 = vpack.c.bf16 %v746_v18, %v746_v18 }
 0x480   :  { %v770_v13 = vsel %vm345_vm3, %v5800_v7, 0  ;;  %v5801_v15 = vpack.c.bf16 %v681_v8, %v681_v8  ;;  %v5799_v31 = vpack.c.bf16 %v747_v25, %v747_v25  ;;  %v6471_v8 = vld [vmem:[%s7827_s4 + $0x60] sm:$0xff]  }
 0x481   :  { %v739_v17 = vpop.f32.mrb[16].mxu1  ;;  %6067 = vmatpush3.bf16.xpose.msra.mxu0 %v770_v13 }
 0x482   :  { %v816_v19 = vsel %vm345_vm3, %v5801_v15, 0  ;;  %v740_v20 = vadd.f32 %v5531_v10, %v739_v17  ;;  %v6064_v22 = vpop.f32.mrb[17].mxu1  ;;  %6078 = vmatprep.subr.bf16.mxu0 %v6665_v16 }
 0x483   :  { %v742_v24 = vpop.f32.mrb[18].mxu1  ;;  %6073 = vmatpush3.bf16.xpose.msra.mxu1 %v816_v19 }
 0x484   :  { %v5802_v26 = vpack.c.bf16 %v740_v20, %v740_v20  ;;  %v743_v27 = vadd.f32 %v5531_v10, %v742_v24  ;;  %v6065_v28 = vpop.f32.mrb[19].mxu1  ;;  %6084 = vmatprep.subr.bf16.mxu1 %v6665_v16 }
 0x485   :  { %v6473_v28 = vld [vmem:[%s7827_s4 + $0x20] sm:$0xff]  }
 0x486   :  { %v5803_v30 = vpack.c.bf16 %v743_v27, %v743_v27  ;;  %v884_v32 = vsel %vm463_vm4, %v5802_v26, 0 }
 0x488   :  { %6069 = vmatmul.mubr.msk.bf16.vlgmr.msra.gmra.mrb[20].mxu0 %vm345_vm3, %v5798_v29  ;;  %v930_v33 = vsel %vm463_vm4, %v5803_v30, 0 }
 0x489   :  { %6079 = vmatpush3.bf16.msra.mxu0 %v884_v32  ;;  %6080 = vmatprep.mubr.msk.bf16.mxu0 %vm6666_vm1, %v6665_v16 }
 0x48a   :  { %6075 = vmatmul.mubr.msk.bf16.vlgmr.msra.gmra.mrb[20].mxu1 %vm345_vm3, %v5799_v31  ;;  %6090 = vmatprep.subr.bf16.mxu0 %v6665_v16  ;;  %v6474_v31 = vld [vmem:[%s7827_s4 + $0x28] sm:$0xff]  }
 0x48b   :  { %6085 = vmatpush3.bf16.msra.mxu1 %v930_v33  ;;  %6086 = vmatprep.mubr.msk.bf16.mxu1 %vm6666_vm1, %v6665_v16 }
 0x48c   :  { %6096 = vmatprep.subr.bf16.mxu1 %v6665_v16 }
 0x55b   :  { %v806_v34 = vpop.f32.mrb[20].mxu0 }
 0x55c   :  { %v807_v35 = vadd.f32 %v806_v34, %v6859_v21  ;;  %v6070_v36 = vpop.f32.mrb[21].mxu0 }
 0x55d   :  { %v809_v38 = vpop.f32.mrb[22].mxu0  ;;  %v852_v39 = vpop.f32.mrb[20].mxu1 }
 0x55e   :  { %v853_v40 = vadd.f32 %v852_v39, %v6862_v23  ;;  %v6071_v41 = vpop.f32.mrb[23].mxu0  ;;  %v6076_v43 = vpop.f32.mrb[21].mxu1  ;;  %v858_v44 = vsel %vm345_vm3, %v807_v35, -inf  ;;  %v5560_v38 = vld [vmem:[%s7828_s5 + $0x6] ss:$0 sm:$0xff]  ;;  %v6476_v39 = vld [vmem:[%s7827_s4 + $0xa8] sm:$0xff]  }
 0x55f   :  { %v855_v46 = vpop.f32.mrb[22].mxu1  ;;  %859 = vmax.xlane.f32.xlu0 %v858_v44 }
 0x560   :  { %v6077_v47 = vpop.f32.mrb[23].mxu1  ;;  %v861_v48 = vsel %vm345_vm3, %v853_v40, -inf }
 0x561   :  { %862 = vmax.xlane.f32.xlu1 %v861_v48 }
 0x563   :  { %451 = vadd.xlane.f32.xlu0 %v450_v49 }
 0x565   :  { %454 = vadd.xlane.f32.xlu1 %v453_v50 }
 0x5ec   :  { %v860_v51 = vpop.xlane.xlu0 %859 }
 0x5ed   :  { %v864_v53 = vsub.f32 %v807_v35, %v860_v51  ;;  %v6475_v35 = vld [vmem:[%s7827_s4 + $0xa0] sm:$0xff]  }
 0x5ee   :  { %v863_v54 = vpop.xlane.xlu1 %862 }
 0x5ef   :  { %v866_v56 = vmul.f32 1.442695, %v864_v53  ;;  %v865_v57 = vsub.f32 %v853_v40, %v863_v54 }
 0x5f0   :  { %v452_v58 = vpop.xlane.xlu0 %451 }
 0x5f1   :  { %6523 = vpow2.f32 %v866_v56  ;;  %v868_v59 = vmul.f32 1.442695, %v865_v57 }
 0x5f2   :  { %6525 = vrcp.f32 %v452_v58  ;;  %v455_v60 = vpop.xlane.xlu1 %454 }
 0x5f3   :  { %6527 = vpow2.f32 %v868_v59 }
 0x5f4   :  { %6529 = vrcp.f32 %v455_v60  ;;  %v5552_v60 = vld [vmem:[%s7828_s5 + $0x2] ss:$0 sm:$0xff] }
 0x5fb   :  { %v6524_v61 = vpop.eup %6523 }
 0x5fc   :  { %v6526_v62 = vpop.eup %6525  ;;  %v870_v45 = vsel %vm345_vm3, %v6524_v61, 0.0  ;;  %v878_v63 = vpack.c.bf16 %v6524_v61, %v6524_v61 }
 0x5fd   :  { %v6528_v0 = vpop.eup %6527  ;;  %871 = vadd.xlane.f32.xlu0 %v870_v45  ;;  %v553_v5 = vmul.f32 %v6526_v62, %v6918_v52  ;;  %v6472_v52 = vld [vmem:[%s7827_s4 + $0x68] sm:$0xff]  }
 0x5fe   :  { %v6530_v1 = vpop.eup %6529  ;;  %6081 = vmatmul.mubr.msk.bf16.vlgmr.msra.gmra.mrb[24].mxu0 %vm345_vm3, %v878_v63  ;;  %v873_v2 = vsel %vm345_vm3, %v6528_v0, 0.0  ;;  %v879_v3 = vpack.c.bf16 %v6528_v0, %v6528_v0 }
 0x5ff   :  { %v554_v6 = vmul.f32 %v6530_v1, %v6920_v55  ;;  %874 = vadd.xlane.f32.xlu1 %v873_v2  ;;  %6092 = vmatprep.mubr.msk.bf16.mxu0 %vm6666_vm1, %v6665_v16  ;;  %v5545_v55 = vld [vmem:[%s7829_s6 + $0x4] sm:$0xf] }
 0x600   :  { %6087 = vmatmul.mubr.msk.bf16.vlgmr.msra.gmra.mrb[24].mxu1 %vm345_vm3, %v879_v3  ;;  %v981_v9 = vsel %vm463_vm4, %v5545_v55, 0 }
 0x601   :  { %6097 = vmatpush3.bf16.msra.mxu1 %v1028_v4  ;;  %6098 = vmatprep.mubr.msk.bf16.mxu1 %vm6666_vm1, %v6665_v16  ;;  %v555_v7 = vpack.c.bf16 %v554_v6, %v553_v5  ;;  %v5568_v4 = vld [vmem:[%s7828_s5 + $0xa] ss:$0 sm:$0xff] }
 0x602   :  { %6110 = vmatprep.subr.bf16.mxu1 %v6665_v16  ;;  %6091 = vmatpush3.bf16.msra.mxu0 %v981_v9 }
 0x603   :  { %6102 = vmatprep.subr.bf16.mxu0 %v6665_v16 }
 0x608   :  { %6099 = vmatmul.mubr.msk.bf16.vlgmr.msra.gmra.mrb[28].mxu1 %vm345_vm3, %v555_v7 }
 0x609   :  { %6111 = vmatpush3.bf16.msra.mxu1 %v6471_v8  ;;  %6114 = vmatprep.mubr.msk.bf16.mxu1 %vm6666_vm1, %v6665_v16 }
 0x60a   :  { %6112 = vmatprep.subr.bf16.mxu1 %v6665_v16 }
 0x60d   :  { %6113 = vmatpush3.bf16.msra.mxu1 %v6472_v52 }
 0x60e   :  { %6126 = vmatprep.subr.bf16.mxu1 %v6665_v16 }
 0x610   :  { %6115 = vmatmul.mubr.msk.bf16.vlgmr.msra.gmra.mrb[32].mxu1 %vm93_vm0, %v6802_v37 }
 0x611   :  { %6128 = vmatprep.mubr.msk.bf16.mxu1 %vm6666_vm1, %v6665_v16 }
 0x68a   :  { %v872_v10 = vpop.xlane.xlu0 %871 }
 0x68b   :  { %6531 = vrcp.f32 %v872_v10 }
 0x68c   :  { %v875_v11 = vpop.xlane.xlu1 %874 }
 0x68d   :  { %6533 = vrcp.f32 %v875_v11 }
 0x695   :  { %v6532_v15 = vpop.eup %6531 }
 0x697   :  { %v6534_v18 = vpop.eup %6533 }
 0x6d1   :  { %v920_v13 = vpop.f32.mrb[24].mxu0 }
 0x6d2   :  { %v6082_v17 = vpop.f32.mrb[25].mxu0  ;;  %v972_v22 = vmul.f32 %v6532_v15, %v920_v13 }
 0x6d3   :  { %v923_v19 = vpop.f32.mrb[26].mxu0  ;;  %v966_v20 = vpop.f32.mrb[24].mxu1 }
 0x6d4   :  { %v973_v24 = vmul.f32 %v6534_v18, %v966_v20  ;;  %v6083_v25 = vpop.f32.mrb[27].mxu0  ;;  %v6088_v26 = vpop.f32.mrb[25].mxu1 }
 0x6d5   :  { %v969_v27 = vpop.f32.mrb[26].mxu1 }
 0x6d6   :  { %v974_v29 = vpack.c.bf16 %v973_v24, %v972_v22  ;;  %v6089_v30 = vpop.f32.mrb[27].mxu1 }
 0x6d8   :  { %6093 = vmatmul.mubr.msk.bf16.vlgmr.msra.gmra.mrb[28].mxu0 %vm345_vm3, %v974_v29 }
 0x6d9   :  { %6103 = vmatpush3.bf16.msra.mxu0 %v6473_v28  ;;  %6106 = vmatprep.mubr.msk.bf16.mxu0 %vm6666_vm1, %v6665_v16 }
 0x6da   :  { %6104 = vmatprep.subr.bf16.mxu0 %v6665_v16 }
 0x6db   :  { %v1064_v32 = vpop.f32.mrb[28].mxu1 }
 0x6dc   :  { %v6100_v33 = vpop.f32.mrb[29].mxu1 }
 0x6dd   :  { %6105 = vmatpush3.bf16.msra.mxu0 %v6474_v31  ;;  %v1067_v34 = vpop.f32.mrb[30].mxu1 }
 0x6de   :  { %v6101_v36 = vpop.f32.mrb[31].mxu1  ;;  %6118 = vmatprep.subr.bf16.mxu0 %v6665_v16 }
 0x6e0   :  { %6107 = vmatmul.mubr.msk.bf16.vlgmr.msra.gmra.mrb[32].mxu0 %vm93_vm0, %v6802_v37 }
 0x6e1   :  { %6119 = vmatpush3.bf16.msra.mxu0 %v6475_v35  ;;  %6122 = vmatprep.mubr.msk.bf16.mxu0 %vm6666_vm1, %v6665_v16 }
 0x6e2   :  { %6120 = vmatprep.subr.bf16.mxu0 %v6665_v16 }
 0x6e3   :  { %v1191_v40 = vpop.f32.mrb[32].mxu1 }
 0x6e4   :  { %v1192_v41 = vadd.f32 %v5560_v38, %v1191_v40  ;;  %v6116_v43 = vpop.f32.mrb[33].mxu1 }
 0x6e5   :  { %6121 = vmatpush3.bf16.msra.mxu0 %v6476_v39  ;;  %v1194_v44 = vpop.f32.mrb[34].mxu1  ;;  %v6477_v43 = vld [vmem:[%s7827_s4 + $0x30] sm:$0xff]  }
 0x6e6   :  { %v5806_v46 = vpack.c.bf16 %v1192_v41, %v1192_v41  ;;  %v1195_v47 = vadd.f32 %v5560_v38, %v1194_v44  ;;  %v6117_v48 = vpop.f32.mrb[35].mxu1  ;;  %6132 = vmatprep.subr.bf16.mxu0 %v6665_v16 }
 0x6e7   :  { %v6479_v48 = vld [vmem:[%s7827_s4 + $0xb0] sm:$0xff]  }
 0x6e8   :  { %v1284_v49 = vsel %vm345_vm3, %v5806_v46, 0  ;;  %6123 = vmatmul.mubr.msk.bf16.vlgmr.msra.gmra.mrb[36].mxu0 %vm93_vm0, %v6802_v37  ;;  %v5807_v50 = vpack.c.bf16 %v1195_v47, %v1195_v47  ;;  %v6478_v47 = vld [vmem:[%s7827_s4 + $0x38] sm:$0xff]  }
 0x6e9   :  { %6127 = vmatpush3.bf16.xpose.msra.mxu1 %v1284_v49  ;;  %6134 = vmatprep.mubr.msk.bf16.mxu0 %vm6666_vm1, %v6665_v16  ;;  %v6480_v49 = vld [vmem:[%s7827_s4 + $0xb8] sm:$0xff]  }
 0x6ea   :  { %6138 = vmatprep.subr.bf16.mxu1 %v6665_v16  ;;  %v1330_v51 = vsel %vm345_vm3, %v5807_v50, 0  ;;  %v5582_v50 = vld [vmem:[%s7829_s6 + $0x8] sm:$0xf] }
 0x6ee   :  { %6133 = vmatpush3.bf16.xpose.msra.mxu0 %v1330_v51  ;;  %v1495_v51 = vsel %vm463_vm4, %v5582_v50, 0 }
 0x6ef   :  { %6144 = vmatprep.subr.bf16.mxu0 %v6665_v16 }
 0x7ab   :  { %v1017_v53 = vpop.f32.mrb[28].mxu0 }
 0x7ac   :  { %v7022_v54 = vadd.f32 %v1064_v32, %v1017_v53  ;;  %v6094_v56 = vpop.f32.mrb[29].mxu0 }
 0x7ad   :  { %v1020_v57 = vpop.f32.mrb[30].mxu0 }
 0x7ae   :  { %v7024_v58 = vadd.f32 %v1067_v34, %v1020_v57  ;;  %v6095_v59 = vpop.f32.mrb[31].mxu0 }
 0x7b3   :  { %v1129_v61 = vpop.f32.mrb[32].mxu0 }
 0x7b4   :  { %v1130_v42 = vadd.f32 %v5552_v60, %v1129_v61  ;;  %v6108_v62 = vpop.f32.mrb[33].mxu0 }
 0x7b5   :  { %v1132_v45 = vpop.f32.mrb[34].mxu0 }
 0x7b6   :  { %v1260_v63 = vmul.f32 0.35355338, %v1130_v42  ;;  %v1133_v0 = vadd.f32 %v5552_v60, %v1132_v45  ;;  %v6109_v1 = vpop.f32.mrb[35].mxu0 }
 0x7b8   :  { %v5804_v2 = vpack.c.bf16 %v1260_v63, %v1260_v63  ;;  %v1261_v3 = vmul.f32 0.35355338, %v1133_v0 }
 0x7ba   :  { %v5805_v5 = vpack.c.bf16 %v1261_v3, %v1261_v3  ;;  %6129 = vmatmul.mubr.msk.bf16.vlgmr.msra.gmra.mrb[36].mxu1 %vm345_vm3, %v5804_v2  ;;  %v6481_v3 = vld [vmem:[%s7827_s4 + $0x70] sm:$0xff]  }
 0x7bb   :  { %v1253_v6 = vpop.f32.mrb[36].mxu0  ;;  %6140 = vmatprep.mubr.msk.bf16.mxu1 %vm6666_vm1, %v6665_v16 }
 0x7bc   :  { %v1254_v7 = vadd.f32 %v5568_v4, %v1253_v6  ;;  %v6124_v8 = vpop.f32.mrb[37].mxu0  ;;  %6135 = vmatmul.mubr.msk.bf16.vlgmr.msra.gmra.mrb[40].mxu0 %vm345_vm3, %v5805_v5  ;;  %v6482_v6 = vld [vmem:[%s7827_s4 + $0x78] sm:$0xff]  }
 0x7bd   :  { %v1256_v52 = vpop.f32.mrb[38].mxu0  ;;  %6146 = vmatprep.mubr.msk.bf16.mxu0 %vm6666_vm1, %v6665_v16 }
 0x7be   :  { %v5808_v55 = vpack.c.bf16 %v1254_v7, %v1254_v7  ;;  %v1257_v9 = vadd.f32 %v5568_v4, %v1256_v52  ;;  %v6125_v10 = vpop.f32.mrb[39].mxu0 }
 0x7c0   :  { %v1398_v11 = vsel %vm463_vm4, %v5808_v55, 0  ;;  %v5809_v13 = vpack.c.bf16 %v1257_v9, %v1257_v9 }
 0x7c1   :  { %6139 = vmatpush3.bf16.msra.mxu1 %v1398_v11 }
 0x7c2   :  { %v1444_v15 = vsel %vm463_vm4, %v5809_v13, 0  ;;  %6150 = vmatprep.subr.bf16.mxu1 %v6665_v16 }
 0x7c3   :  { %6145 = vmatpush3.bf16.msra.mxu0 %v1444_v15 }
 0x7c4   :  { %6156 = vmatprep.subr.bf16.mxu0 %v6665_v16 }
 0x88d   :  { %v1320_v17 = vpop.f32.mrb[36].mxu1 }
 0x88e   :  { %v1321_v18 = vadd.f32 %v1320_v17, %v6859_v21  ;;  %v6130_v19 = vpop.f32.mrb[37].mxu1 }
 0x88f   :  { %v1323_v20 = vpop.f32.mrb[38].mxu1  ;;  %v1366_v22 = vpop.f32.mrb[40].mxu0 }
 0x890   :  { %v1367_v24 = vadd.f32 %v1366_v22, %v6862_v23  ;;  %v6131_v25 = vpop.f32.mrb[39].mxu1  ;;  %v6136_v26 = vpop.f32.mrb[41].mxu0  ;;  %v1372_v27 = vsel %vm345_vm3, %v1321_v18, -inf }
 0x891   :  { %1373 = vmax.xlane.f32.xlu0 %v1372_v27  ;;  %v1369_v28 = vpop.f32.mrb[42].mxu0 }
 0x892   :  { %v6137_v29 = vpop.f32.mrb[43].mxu0  ;;  %v1375_v30 = vsel %vm345_vm3, %v1367_v24, -inf }
 0x893   :  { %1376 = vmax.xlane.f32.xlu1 %v1375_v30 }
 0x91e   :  { %v1374_v31 = vpop.xlane.xlu0 %1373 }
 0x91f   :  { %v1378_v32 = vsub.f32 %v1321_v18, %v1374_v31 }
 0x920   :  { %v1377_v33 = vpop.xlane.xlu1 %1376 }
 0x921   :  { %v1380_v34 = vmul.f32 1.442695, %v1378_v32  ;;  %v1379_v35 = vsub.f32 %v1367_v24, %v1377_v33  ;;  %v5588_v24 = vld [vmem:[%s7828_s5 + $0x3] ss:$0 sm:$0xff] }
 0x923   :  { %6535 = vpow2.f32 %v1380_v34  ;;  %v1382_v36 = vmul.f32 1.442695, %v1379_v35 }
 0x925   :  { %6537 = vpow2.f32 %v1382_v36 }
 0x92d   :  { %v6536_v38 = vpop.eup %6535 }
 0x92e   :  { %v1384_v39 = vsel %vm345_vm3, %v6536_v38, 0.0  ;;  %v1392_v40 = vpack.c.bf16 %v6536_v38, %v6536_v38 }
 0x92f   :  { %v6538_v41 = vpop.eup %6537  ;;  %1385 = vadd.xlane.f32.xlu0 %v1384_v39 }
 0x930   :  { %6141 = vmatmul.mubr.msk.bf16.vlgmr.msra.gmra.mrb[40].mxu1 %vm345_vm3, %v1392_v40  ;;  %v1387_v44 = vsel %vm345_vm3, %v6538_v41, 0.0  ;;  %v1393_v46 = vpack.c.bf16 %v6538_v41, %v6538_v41 }
 0x931   :  { %1388 = vadd.xlane.f32.xlu1 %v1387_v44  ;;  %6152 = vmatprep.mubr.msk.bf16.mxu1 %vm6666_vm1, %v6665_v16 }
 0x932   :  { %6147 = vmatmul.mubr.msk.bf16.vlgmr.msra.gmra.mrb[44].mxu0 %vm345_vm3, %v1393_v46  ;;  %6151 = vmatpush3.bf16.msra.mxu1 %v1495_v51 }
 0x933   :  { %6157 = vmatpush3.bf16.msra.mxu0 %v6477_v43  ;;  %6160 = vmatprep.mubr.msk.bf16.mxu0 %vm6666_vm1, %v6665_v16 }
 0x934   :  { %6158 = vmatprep.subr.bf16.mxu0 %v6665_v16  ;;  %6164 = vmatprep.subr.bf16.mxu1 %v6665_v16 }
 0x937   :  { %6159 = vmatpush3.bf16.msra.mxu0 %v6478_v47 }
 0x938   :  { %6172 = vmatprep.subr.bf16.mxu0 %v6665_v16 }
 0x93a   :  { %6161 = vmatmul.mubr.msk.bf16.vlgmr.msra.gmra.mrb[48].mxu0 %vm93_vm0, %v6802_v37 }
 0x93b   :  { %6173 = vmatpush3.bf16.msra.mxu0 %v6479_v48  ;;  %6176 = vmatprep.mubr.msk.bf16.mxu0 %vm6666_vm1, %v6665_v16 }
 0x93c   :  { %6174 = vmatprep.subr.bf16.mxu0 %v6665_v16 }
 0x93f   :  { %6175 = vmatpush3.bf16.msra.mxu0 %v6480_v49 }
 0x940   :  { %6186 = vmatprep.subr.bf16.mxu0 %v6665_v16 }
 0x942   :  { %6177 = vmatmul.mubr.msk.bf16.vlgmr.msra.gmra.mrb[52].mxu0 %vm93_vm0, %v6802_v37 }
 0x943   :  { %6188 = vmatprep.mubr.msk.bf16.mxu0 %vm6666_vm1, %v6665_v16 }
 0x9bc   :  { %v1386_v53 = vpop.xlane.xlu0 %1385 }
 0x9bd   :  { %6539 = vrcp.f32 %v1386_v53 }
 0x9be   :  { %v1389_v56 = vpop.xlane.xlu1 %1388 }
 0x9bf   :  { %6541 = vrcp.f32 %v1389_v56 }
 0x9c7   :  { %v6540_v59 = vpop.eup %6539 }
 0x9c9   :  { %v6542_v61 = vpop.eup %6541 }
 0xa03   :  { %v1434_v57 = vpop.f32.mrb[40].mxu1 }
 0xa04   :  { %v6142_v60 = vpop.f32.mrb[41].mxu1  ;;  %v1486_v45 = vmul.f32 %v6540_v59, %v1434_v57 }
 0xa05   :  { %v1437_v42 = vpop.f32.mrb[42].mxu1  ;;  %v1480_v62 = vpop.f32.mrb[44].mxu0 }
 0xa06   :  { %v1487_v63 = vmul.f32 %v6542_v61, %v1480_v62  ;;  %v6143_v0 = vpop.f32.mrb[43].mxu1  ;;  %v6148_v1 = vpop.f32.mrb[45].mxu0 }
 0xa07   :  { %v1483_v2 = vpop.f32.mrb[46].mxu0 }
 0xa08   :  { %v1488_v4 = vpack.c.bf16 %v1487_v63, %v1486_v45  ;;  %v6149_v5 = vpop.f32.mrb[47].mxu0 }
 0xa0a   :  { %6153 = vmatmul.mubr.msk.bf16.vlgmr.msra.gmra.mrb[44].mxu1 %vm345_vm3, %v1488_v4 }
 0xa0b   :  { %6165 = vmatpush3.bf16.msra.mxu1 %v6481_v3  ;;  %6168 = vmatprep.mubr.msk.bf16.mxu1 %vm6666_vm1, %v6665_v16 }
 0xa0c   :  { %6166 = vmatprep.subr.bf16.mxu1 %v6665_v16 }
 0xa0d   :  { %v1598_v7 = vpop.f32.mrb[48].mxu0 }
 0xa0e   :  { %v6162_v8 = vpop.f32.mrb[49].mxu0  ;;  %v1599_v29 = vadd.f32 %v5588_v24, %v1598_v7 }
 0xa0f   :  { %v1601_v52 = vpop.f32.mrb[50].mxu0  ;;  %6167 = vmatpush3.bf16.msra.mxu1 %v6482_v6 }
 0xa10   :  { %v6163_v55 = vpop.f32.mrb[51].mxu0  ;;  %6180 = vmatprep.subr.bf16.mxu1 %v6665_v16  ;;  %v1602_v32 = vadd.f32 %v5588_v24, %v1601_v52  ;;  %v1729_v36 = vmul.f32 0.35355338, %v1599_v29  ;;  %v5618_v52 = vld [vmem:[%s7829_s6 + $0xc] sm:$0xf] }
 0xa11   :  { %v1964_v55 = vsel %vm463_vm4, %v5618_v52, 0 }
 0xa12   :  { %6169 = vmatmul.mubr.msk.bf16.vlgmr.msra.gmra.mrb[48].mxu1 %vm93_vm0, %v6802_v37  ;;  %v5596_v37 = vld [vmem:[%s7828_s5 + $0x7] ss:$0 sm:$0xff]  ;;  %v1730_v40 = vmul.f32 0.35355338, %v1602_v32  ;;  %v5810_v43 = vpack.c.bf16 %v1729_v36, %v1729_v36 }
 0xa13   :  { %6182 = vmatprep.mubr.msk.bf16.mxu1 %vm6666_vm1, %v6665_v16  ;;  %v6591_v36 = vld [vmem:[%s7842_s23] sm:$0xff] }
 0xa14   :  { %v5811_v46 = vpack.c.bf16 %v1730_v40, %v1730_v40  ;;  %v6592_v40 = vld [vmem:[%s7842_s23 + $0x8] sm:$0xff]  ;;  %s6669_s23 = smov [#allocation4]  }
 0xa15   :  { %v1722_v9 = vpop.f32.mrb[52].mxu0  ;;  %s5449_s21 = sshll.u32 %s6669_s23, 4  ;;  %s5450_s21 = int_to_ptr.vmem [resolvable:$true] %s5449_s21 }
 0xa16   :  { %v6178_v10 = vpop.f32.mrb[53].mxu0  ;;  %p6600_p1 = scmp.lt.s32.totalorder %s5450_s21, %s5450_s21 }
 0xa17   :  { %v1725_v11 = vpop.f32.mrb[54].mxu0 }
 0xa18   :  { %v6179_v13 = vpop.f32.mrb[55].mxu0 }
 0xadd   :  { %v1531_v15 = vpop.f32.mrb[44].mxu1 }
 0xade   :  { %v7099_v17 = vadd.f32 %v1531_v15, %v7022_v54  ;;  %v6154_v18 = vpop.f32.mrb[45].mxu1  ;;  %v5604_v54 = vld [vmem:[%s7828_s5 + $0xb] ss:$0 sm:$0xff] }
 0xadf   :  { %v1534_v19 = vpop.f32.mrb[46].mxu1  ;;  %v1723_v33 = vadd.f32 %v5604_v54, %v1722_v9  ;;  %v1726_v38 = vadd.f32 %v5604_v54, %v1725_v11 }
 0xae0   :  { %v7102_v20 = vadd.f32 %v1534_v19, %v7024_v58  ;;  %v6155_v22 = vpop.f32.mrb[47].mxu1 }
 0xae1   :  { %v5814_v41 = vpack.c.bf16 %v1723_v33, %v1723_v33  ;;  %v5815_v44 = vpack.c.bf16 %v1726_v38, %v1726_v38 }
 0xae3   :  { %v1867_v47 = vsel %vm463_vm4, %v5814_v41, 0  ;;  %v1913_v48 = vsel %vm463_vm4, %v5815_v44, 0  ;;  %v6484_v44 = vld [vmem:[%s7827_s4 + $0x108] sm:$0xff]  }
 0xae5   :  { %v1660_v25 = vpop.f32.mrb[48].mxu1 }
 0xae6   :  { %v1661_v26 = vadd.f32 %v5596_v37, %v1660_v25  ;;  %v6170_v27 = vpop.f32.mrb[49].mxu1 }
 0xae7   :  { %v1663_v28 = vpop.f32.mrb[50].mxu1 }
 0xae8   :  { %v5812_v58 = vpack.c.bf16 %v1661_v26, %v1661_v26  ;;  %v1664_v30 = vadd.f32 %v5596_v37, %v1663_v28  ;;  %v6171_v31 = vpop.f32.mrb[51].mxu1 }
 0xaea   :  { %v1753_v34 = vsel %vm345_vm3, %v5812_v58, 0  ;;  %v5813_v35 = vpack.c.bf16 %v1664_v30, %v1664_v30  ;;  %v5620_v58 = vld [vmem:[%s7830_s7] ss:$0 sm:$0xff] }
 0xaeb   :  { %6181 = vmatpush3.bf16.xpose.msra.mxu1 %v1753_v34 }
 0xaec   :  { %v1799_v39 = vsel %vm345_vm3, %v5813_v35, 0  ;;  %6192 = vmatprep.subr.bf16.mxu1 %v6665_v16 }
 0xaed   :  { %6187 = vmatpush3.bf16.xpose.msra.mxu0 %v1799_v39 }
 0xaee   :  { %6198 = vmatprep.subr.bf16.mxu0 %v6665_v16 }
 0xaf2   :  { %6183 = vmatmul.mubr.msk.bf16.vlgmr.msra.gmra.mrb[52].mxu1 %vm345_vm3, %v5810_v43  ;;  %v6483_v43 = vld [vmem:[%s7827_s4 + $0x100] sm:$0xff]  }
 0xaf3   :  { %6193 = vmatpush3.bf16.msra.mxu1 %v1867_v47  ;;  %6194 = vmatprep.mubr.msk.bf16.mxu1 %vm6666_vm1, %v6665_v16  ;;  %v7179_v47 = vld [vmem:[%s7824_s1 + $0x8] ss:$0 sps:$4 sm:$0x33]  }
 0xaf4   :  { %6189 = vmatmul.mubr.msk.bf16.vlgmr.msra.gmra.mrb[56].mxu0 %vm345_vm3, %v5811_v46  ;;  %6204 = vmatprep.subr.bf16.mxu1 %v6665_v16  ;;  %v7172_v46 = vld [vmem:[%s7824_s1] sm:$0xff]  }
 0xaf5   :  { %6199 = vmatpush3.bf16.msra.mxu0 %v1913_v48  ;;  %6200 = vmatprep.mubr.msk.bf16.mxu0 %vm6666_vm1, %v6665_v16 }
 0xaf6   :  { %6210 = vmatprep.subr.bf16.mxu0 %v6665_v16 }
 0xbc5   :  { %v1789_v49 = vpop.f32.mrb[52].mxu1 }
 0xbc6   :  { %v1790_v50 = vadd.f32 %v1789_v49, %v6859_v21  ;;  %v6184_v51 = vpop.f32.mrb[53].mxu1 }
 0xbc7   :  { %v1792_v53 = vpop.f32.mrb[54].mxu1  ;;  %v1835_v56 = vpop.f32.mrb[56].mxu0 }
 0xbc8   :  { %v1836_v57 = vadd.f32 %v1835_v56, %v6862_v23  ;;  %v6185_v59 = vpop.f32.mrb[55].mxu1  ;;  %v6190_v60 = vpop.f32.mrb[57].mxu0  ;;  %v1841_v61 = vsel %vm345_vm3, %v1790_v50, -inf }
 0xbc9   :  { %1842 = vmax.xlane.f32.xlu0 %v1841_v61  ;;  %v1838_v42 = vpop.f32.mrb[58].mxu0 }
 0xbca   :  { %v6191_v62 = vpop.f32.mrb[59].mxu0  ;;  %v1844_v45 = vsel %vm345_vm3, %v1836_v57, -inf  ;;  %v6487_v42 = vld [vmem:[%s7827_s4 + $0xc0] sm:$0xff]  }
 0xbcb   :  { %1845 = vmax.xlane.f32.xlu1 %v1844_v45  ;;  %v6488_v62 = vld [vmem:[%s7827_s4 + $0xc8] sm:$0xff]   ;;  %v7208_v45 = vld [vmem:[%s7827_s4 + $0x140] sm:$0xff]  }
 0xc56   :  { %v1843_v63 = vpop.xlane.xlu0 %1842 }
 0xc57   :  { %v1847_v0 = vsub.f32 %v1790_v50, %v1843_v63  ;;  %v6668_v63 = vmov 1966171168  }
 0xc58   :  { %v1846_v1 = vpop.xlane.xlu1 %1845 }
 0xc59   :  { %v1849_v2 = vmul.f32 1.442695, %v1847_v0  ;;  %v1848_v21 = vsub.f32 %v1836_v57, %v1846_v1  ;;  %v2293_v0 = vunpack.c.l.s4 %v6668_v63  ;;  %v5621_v63 = vld [vmem:[%s7831_s8 + $0x1] ss:$0 sm:$0xff] }
 0xc5b   :  { %6543 = vpow2.f32 %v1849_v2  ;;  %v1851_v3 = vmul.f32 1.442695, %v1848_v21  ;;  %v2294_v1 = vunpack.c.0.s8 %v2293_v0  ;;  %v5635_v2 = vld [vmem:[%s7828_s5 + $0x10] ss:$0 sm:$0xff] }
 0xc5d   :  { %6545 = vpow2.f32 %v1851_v3 }
 0xc65   :  { %v6544_v4 = vpop.eup %6543 }
 0xc66   :  { %v1853_v23 = vsel %vm345_vm3, %v6544_v4, 0.0  ;;  %v1861_v5 = vpack.c.bf16 %v6544_v4, %v6544_v4 }
 0xc67   :  { %v6546_v6 = vpop.eup %6545  ;;  %1854 = vadd.xlane.f32.xlu0 %v1853_v23 }
 0xc68   :  { %6195 = vmatmul.mubr.msk.bf16.vlgmr.msra.gmra.mrb[56].mxu1 %vm345_vm3, %v1861_v5  ;;  %v1856_v7 = vsel %vm345_vm3, %v6546_v6, 0.0  ;;  %v1862_v8 = vpack.c.bf16 %v6546_v6, %v6546_v6  ;;  %v7215_v6 = vsub.s32 %v2294_v1, %v6847_v12 }
 0xc69   :  { %1857 = vadd.xlane.f32.xlu1 %v1856_v7  ;;  %6206 = vmatprep.mubr.msk.bf16.mxu1 %vm6666_vm1, %v6665_v16 }
 0xc6a   :  { %6201 = vmatmul.mubr.msk.bf16.vlgmr.msra.gmra.mrb[60].mxu0 %vm345_vm3, %v1862_v8  ;;  %6205 = vmatpush3.bf16.msra.mxu1 %v1964_v55 }
 0xc6b   :  { %6214 = vmatprep.mubr.msk.bf16.mxu0 %vm6666_vm1, %v6665_v16  ;;  %6218 = vmatprep.subr.bf16.mxu1 %v6483_v43 }
 0xc6c   :  { %6211 = vmatpush3.bf16.msra.mxu0 %v6487_v42 }
 0xc6d   :  { %6212 = vmatprep.subr.bf16.mxu0 %v6665_v16 }
 0xc70   :  { %6213 = vmatpush3.bf16.msra.mxu0 %v6488_v62 }
 0xc71   :  { %6226 = vmatprep.subr.bf16.mxu0 %v7208_v45 }
 0xcf4   :  { %v1855_v9 = vpop.xlane.xlu0 %1854 }
 0xcf5   :  { %6547 = vrcp.f32 %v1855_v9 }
 0xcf6   :  { %v1858_v10 = vpop.xlane.xlu1 %1857 }
 0xcf7   :  { %6549 = vrcp.f32 %v1858_v10 }
 0xcff   :  { %v6548_v13 = vpop.eup %6547 }
 0xd01   :  { %v6550_v18 = vpop.eup %6549 }
 0xd3b   :  { %v1903_v11 = vpop.f32.mrb[56].mxu1 }
 0xd3c   :  { %v6196_v15 = vpop.f32.mrb[57].mxu1  ;;  %v1955_v37 = vmul.f32 %v6548_v13, %v1903_v11 }
 0xd3d   :  { %v1906_v19 = vpop.f32.mrb[58].mxu1  ;;  %v1949_v22 = vpop.f32.mrb[60].mxu0 }
 0xd3e   :  { %v1956_v24 = vmul.f32 %v6550_v18, %v1949_v22  ;;  %v6197_v25 = vpop.f32.mrb[59].mxu1  ;;  %v6202_v26 = vpop.f32.mrb[61].mxu0 }
 0xd3f   :  { %v1952_v27 = vpop.f32.mrb[62].mxu0 }
 0xd40   :  { %v1957_v54 = vpack.c.bf16 %v1956_v24, %v1955_v37  ;;  %v6203_v28 = vpop.f32.mrb[63].mxu0 }
 0xd42   :  { %6207 = vmatmul.mubr.msk.bf16.vlgmr.msra.gmra.mrb[60].mxu1 %vm345_vm3, %v1957_v54 }
 0xd43   :  { %6222 = vmatprep.mubr.msk.bf16.mxu1 %vm93_vm0, %v7172_v46  ;;  %6219 = vmatpush3.bf16.msra.mxu1 %v6483_v43 }
 0xd44   :  { %6220 = vmatprep.subr.bf16.mxu1 %v6484_v44 }
 0xd47   :  { %6221 = vmatpush3.bf16.msra.mxu1 %v6484_v44 }
 0xd48   :  { %6234 = vmatprep.subr.bf16.mxu1 %v6665_v16 }
 0xd4a   :  { %6223 = vmatmul.mubr.msk.bf16.vlgmr.msra.gmra.mrb[64].mxu1 %vm93_vm0, %v7179_v47 }
 0xd4b   :  { %6236 = vmatprep.mubr.msk.bf16.mxu1 %vm6666_vm1, %v6665_v16 }
 0xe15   :  { %v2000_v29 = vpop.f32.mrb[60].mxu1 }
 0xe16   :  { %v2007_v30 = vadd.f32 %v2000_v29, %v7099_v17  ;;  %v6208_v31 = vpop.f32.mrb[61].mxu1 }
 0xe17   :  { %v2003_v32 = vpop.f32.mrb[62].mxu1 }
 0xe18   :  { %v2014_v33 = vadd.f32 %v5620_v58, %v2007_v30  ;;  %v2008_v34 = vadd.f32 %v2003_v32, %v7102_v20  ;;  %v6209_v35 = vpop.f32.mrb[63].mxu1 }
 0xe1a   :  { %v7152_v38 = vadd.f32 %v6591_v36, %v2014_v33  ;;  %v2015_v39 = vadd.f32 %v5620_v58, %v2008_v34 }
 0xe1c   :  { %v7157_v41 = vadd.f32 %v6592_v40, %v2015_v39  ;;  %v2020_v17 = vsel %vm93_vm0, %v7152_v38, 0.0 }
 0xe1d   :  { %2021 = vadd.xlane.f32.xlu0 %v2020_v17  ;;  %v6224_v21 = vpop.f32.mrb[64].mxu1 }
 0xe1e   :  { %v2023_v20 = vsel %vm93_vm0, %v7157_v41, 0.0  ;;  %v2205_v3 = vadd.f32 %v6224_v21, %v5635_v2  ;;  %v2196_v4 = vpop.f32.mrb[65].mxu1 }
 0xe1f   :  { %2024 = vadd.xlane.f32.xlu1 %v2023_v20  ;;  %v2197_v23 = vadd.f32 %v5635_v2, %v2196_v4  ;;  %v6225_v5 = vpop.f32.mrb[66].mxu1 }
 0xe20   :  { %v2288_v7 = vpack.c.bf16 %v2205_v3, %v2205_v3  ;;  %v2199_v8 = vpop.f32.mrb[67].mxu1  ;;  %v5622_v3 = vld [vmem:[%s7832_s9 + $0x1] ss:$0 sm:$0xff] }
 0xe21   :  { %v2200_v52 = vadd.f32 %v5635_v2, %v2199_v8  ;;  %v6490_v8 = vld [vmem:[%s7827_s4 + $0x148] sm:$0xff]  }
 0xe22   :  { %v2346_v55 = vrot.slane %v2288_v7, %v7215_v6 }
 0xe23   :  { %v2287_v9 = vpack.c.bf16 %v2200_v52, %v2197_v23  ;;  %v5653_v10 = vpack.c.bf16 %v2200_v52, %v2200_v52 }
 0xe24   :  { %v2347_v11 = vcombine.high %v2346_v55, %v2346_v55  ;;  %v2354_v24 = vrot.slane %v2346_v55, %v7215_v6 }
 0xe25   :  { %v2298_v13 = vrot.slane %v2287_v9, %v7215_v6  ;;  %v2305_v15 = vrot.slane %v5653_v10, %v7215_v6 }
 0xe26   :  { %v2361_v12 = vrot.slane %v2347_v11, %v7215_v6 }
 0xe27   :  { %v2306_v18 = vcombine.high %v2298_v13, %v2298_v13  ;;  %v2307_v19 = vcombine.high %v2305_v15, %v2305_v15  ;;  %v2314_v22 = vrot.slane %v2298_v13, %v7215_v6  ;;  %v2321_v37 = vrot.slane %v2305_v15, %v7215_v6 }
 0xe28   :  { %v2556_v31 = vrot.slane %v2361_v12, %v7215_v6 }
 0xe29   :  { %v2328_v25 = vrot.slane %v2306_v18, %v7215_v6  ;;  %v2335_v26 = vrot.slane %v2307_v19, %v7215_v6  ;;  %v2337_v27 = vcombine.high %v2321_v37, %v2321_v37  ;;  %v2471_v54 = vrot.slane %v2321_v37, %v7215_v6 }
 0xe2a   :  { %v2571_v43 = vrot.slane %v2556_v31, %v7215_v6 }
 0xe2b   :  { %v2339_v28 = vcombine.high %v2335_v26, %v2335_v26  ;;  %v2449_v29 = vcombine.low %v2314_v22, %v2328_v25  ;;  %v5655_v58 = vcombine.high %v2314_v22, %v2328_v25  ;;  %v2534_v30 = vcombine.low %v2335_v26, %v2337_v27  ;;  %v5646_v22 = vld [vmem:[%s7828_s5 + $0x14] ss:$0 sm:$0xff] }
 0xe2c   :  { %v2486_v39 = vrot.slane %v2471_v54, %v7215_v6 }
 0xe2d   :  { %v2457_v32 = vrot.slane %v2449_v29, %v7215_v6  ;;  %v2464_v33 = vrot.slane %v5655_v58, %v7215_v6  ;;  %v2535_v34 = vcombine.low %v2339_v28, %v2354_v24  ;;  %v2542_v35 = vrot.slane %v2534_v30, %v7215_v6 }
 0xe2f   :  { %v2472_v36 = vcombine.low %v2457_v32, %v2464_v33  ;;  %v2549_v40 = vrot.slane %v2535_v34, %v7215_v6 }
 0xe31   :  { %v2479_v17 = vrot.slane %v2472_v36, %v7215_v6  ;;  %v2557_v20 = vcombine.low %v2542_v35, %v2549_v40 }
 0xe33   :  { %v2487_v44 = vcombine.low %v2479_v17, %v2486_v39 }
 0xeaa   :  { %v2022_v48 = vpop.xlane.xlu0 %2021 }
 0xeab   :  { %v2026_v49 = vmul.f32 0.03125, %v2022_v48  ;;  %v2564_v48 = vrot.slane %v2557_v20, %v7215_v6 }
 0xeac   :  { %v2025_v50 = vpop.xlane.xlu1 %2024 }
 0xead   :  { %v7187_v51 = vsub.f32 %v7152_v38, %v2026_v49  ;;  %v2027_v53 = vmul.f32 0.03125, %v2025_v50  ;;  %v2492_v49 = vsel %vm345_vm3, %v2487_v44, 0  ;;  %v2572_v50 = vcombine.low %v2564_v48, %v2571_v43 }
 0xeae   :  { %6235 = vmatpush3.bf16.xpose.msra.mxu1 %v2492_v49 }
 0xeaf   :  { %v7190_v56 = vsub.f32 %v7157_v41, %v2027_v53  ;;  %v2030_v57 = vmul.f32 %v7187_v51, %v7187_v51  ;;  %6246 = vmatprep.subr.bf16.mxu1 %v6665_v16 }
 0xeb1   :  { %v2032_v59 = vsel %vm93_vm0, %v2030_v57, 0.0  ;;  %v2031_v60 = vmul.f32 %v7190_v56, %v7190_v56 }
 0xeb2   :  { %2033 = vadd.xlane.f32.xlu0 %v2032_v59 }
 0xeb3   :  { %v2035_v61 = vsel %vm93_vm0, %v2031_v60, 0.0 }
 0xeb4   :  { %2036 = vadd.xlane.f32.xlu1 %v2035_v61 }
 0xf3f   :  { %v2034_v53 = vpop.xlane.xlu0 %2033 }
 0xf40   :  { %v2038_v57 = vmul.f32 0.03125, %v2034_v53 }
 0xf41   :  { %v2037_v59 = vpop.xlane.xlu1 %2036 }
 0xf42   :  { %v2040_v60 = vadd.f32 1e-06, %v2038_v57  ;;  %v2039_v61 = vmul.f32 0.03125, %v2037_v59 }
 0xf44   :  { %6551 = vrsqrt.f32 %v2040_v60  ;;  %v2041_v42 = vadd.f32 1e-06, %v2039_v61 }
 0xf46   :  { %6553 = vrsqrt.f32 %v2041_v42 }
 0xf4e   :  { %v6552_v62 = vpop.eup %6551 }
 0xf4f   :  { %v2044_v0 = vmul.f32 %v6552_v62, %v7187_v51  ;;  %v2577_v51 = vsel %vm345_vm3, %v2572_v50, 0 }
 0xf50   :  { %v6554_v1 = vpop.eup %6553 }
 0xf51   :  { %v2050_v2 = vmul.f32 %v5621_v63, %v2044_v0  ;;  %v2045_v21 = vmul.f32 %v6554_v1, %v7190_v56  ;;  %v5627_v56 = vld [vmem:[%s7828_s5 + $0xc] ss:$0 sm:$0xff] }
 0xf53   :  { %v2051_v4 = vmul.f32 %v5621_v63, %v2045_v21  ;;  %v2056_v23 = vadd.f32 %v5622_v3, %v2050_v2 }
 0xf55   :  { %v2057_v5 = vadd.f32 %v5622_v3, %v2051_v4 }
 0xf57   :  { %v7246_v7 = vpack.c.bf16 %v2057_v5, %v2056_v23 }
 0xf59   :  { %6215 = vmatmul.mubr.msk.bf16.vlgmr.msra.gmra.mrb[64].mxu0 %vm93_vm0, %v7246_v7 }
 0xf5a   :  { %6227 = vmatpush3.bf16.msra.mxu0 %v7208_v45  ;;  %6230 = vmatprep.mubr.msk.bf16.mxu0 %vm93_vm0, %v7172_v46 }
 0xf5b   :  { %6228 = vmatprep.subr.bf16.mxu0 %v6490_v8 }
 0xf5e   :  { %6229 = vmatpush3.bf16.msra.mxu0 %v6490_v8 }
 0xf5f   :  { %6240 = vmatprep.subr.bf16.mxu0 %v6665_v16 }
 0xf61   :  { %6231 = vmatmul.mubr.msk.bf16.vlgmr.msra.gmra.mrb[68].mxu0 %vm93_vm0, %v7179_v47 }
 0xf62   :  { %6242 = vmatprep.mubr.msk.bf16.mxu0 %vm6666_vm1, %v6665_v16 }
 0xf67   :  { %6241 = vmatpush3.bf16.xpose.msra.mxu0 %v2577_v51 }
 0xf68   :  { %6252 = vmatprep.subr.bf16.mxu0 %v6665_v16 }
0x102c   :  { %v2120_v45 = vpop.f32.mrb[64].mxu0 }
0x102d   :  { %v2121_v52 = vadd.f32 %v5627_v56, %v2120_v45  ;;  %v6216_v55 = vpop.f32.mrb[65].mxu0  ;;  %v61_v45 = vld [vmem:[%s7826_s3 + $0x1] sm:$0x1] }
0x102e   :  { %v2123_v9 = vpop.f32.mrb[66].mxu0  ;;  %vm88_vm14 = vcmp.gt.f32.partialorder %v61_v45, 0.0 }
0x102f   :  { %v2279_v10 = vmul.f32 0.35355338, %v2121_v52  ;;  %v2124_v11 = vadd.f32 %v5627_v56, %v2123_v9  ;;  %v6217_v13 = vpop.f32.mrb[67].mxu0  ;;  %v60_v56 = vld [vmem:[%s7826_s3] sm:$0x1] }
0x1030   :  { %vm87_vm13 = vcmp.gt.f32.partialorder %v60_v56, 0.0  ;;  %v90_v55 = vsel %vm88_vm14, -1e+18, %v6665_v16 }
0x1031   :  { %v5816_v15 = vpack.c.bf16 %v2279_v10, %v2279_v10  ;;  %v2280_v18 = vmul.f32 0.35355338, %v2124_v11  ;;  %v89_v52 = vsel %vm87_vm13, -1e+18, %v6665_v16  ;;  %v7309_v10 = vrot.slane %v90_v55, %v6853_v14 }
0x1032   :  { %v7306_v9 = vrot.slane %v89_v52, %v6853_v14  ;;  %v6492_v14 = vld [vmem:[%s7827_s4 + $0x110] sm:$0xff]  }
0x1033   :  { %v5817_v19 = vpack.c.bf16 %v2280_v18, %v2280_v18  ;;  %6237 = vmatmul.mubr.msk.bf16.vlgmr.msra.gmra.mrb[68].mxu1 %vm345_vm3, %v5816_v15 }
0x1034   :  { %v6232_v37 = vpop.f32.mrb[68].mxu0  ;;  %6248 = vmatprep.mubr.msk.bf16.mxu1 %vm6666_vm1, %v6665_v16 }
0x1035   :  { %6243 = vmatmul.mubr.msk.bf16.vlgmr.msra.gmra.mrb[72].mxu0 %vm345_vm3, %v5817_v19  ;;  %v2274_v12 = vadd.f32 %v6232_v37, %v5646_v22  ;;  %v2265_v24 = vpop.f32.mrb[69].mxu0 }
0x1036   :  { %v2266_v25 = vadd.f32 %v5646_v22, %v2265_v24  ;;  %v6233_v26 = vpop.f32.mrb[70].mxu0  ;;  %6254 = vmatprep.mubr.msk.bf16.mxu0 %vm6666_vm1, %v6665_v16 }
0x1037   :  { %v2268_v27 = vpop.f32.mrb[71].mxu0  ;;  %v2363_v54 = vpack.c.bf16 %v2274_v12, %v2274_v12 }
0x1038   :  { %v2269_v28 = vadd.f32 %v5646_v22, %v2268_v27 }
0x1039   :  { %v2421_v30 = vrot.slane %v2363_v54, %v7215_v6 }
0x103a   :  { %v2362_v29 = vpack.c.bf16 %v2269_v28, %v2266_v25  ;;  %v5654_v58 = vpack.c.bf16 %v2269_v28, %v2269_v28 }
0x103b   :  { %v2429_v33 = vrot.slane %v2421_v30, %v7215_v6  ;;  %v2422_v44 = vcombine.high %v2421_v30, %v2421_v30 }
0x103c   :  { %v2380_v31 = vrot.slane %v5654_v58, %v7215_v6  ;;  %v2373_v39 = vrot.slane %v2362_v29, %v7215_v6 }
0x103d   :  { %v2436_v53 = vrot.slane %v2422_v44, %v7215_v6 }
0x103e   :  { %v2382_v32 = vcombine.high %v2380_v31, %v2380_v31  ;;  %v2381_v40 = vcombine.high %v2373_v39, %v2373_v39  ;;  %v2389_v17 = vrot.slane %v2373_v39, %v7215_v6  ;;  %v2396_v20 = vrot.slane %v2380_v31, %v7215_v6  ;;  %v6494_v39 = vld [vmem:[%s7827_s4 + $0x118] sm:$0xff]  }
0x103f   :  { %v2750_v42 = vrot.slane %v2436_v53, %v7215_v6 }
0x1040   :  { %v2410_v34 = vrot.slane %v2382_v32, %v7215_v6  ;;  %v2403_v43 = vrot.slane %v2381_v40, %v7215_v6  ;;  %v2412_v48 = vcombine.high %v2396_v20, %v2396_v20  ;;  %v2664_v61 = vrot.slane %v2396_v20, %v7215_v6  ;;  %v6493_v40 = vld [vmem:[%s7827_s4 + $0xd8] sm:$0xff]  }
0x1041   :  { %v2765_v3 = vrot.slane %v2750_v42, %v7215_v6  ;;  %v6496_v20 = vld [vmem:[%s7827_s4 + $0x158] sm:$0xff]  }
0x1042   :  { %v2414_v35 = vcombine.high %v2410_v34, %v2410_v34  ;;  %v2642_v49 = vcombine.low %v2389_v17, %v2403_v43  ;;  %v5658_v50 = vcombine.high %v2389_v17, %v2403_v43  ;;  %v2728_v60 = vcombine.low %v2410_v34, %v2412_v48  ;;  %v6495_v17 = vld [vmem:[%s7827_s4 + $0x150] sm:$0xff]  }
0x1043   :  { %v2679_v2 = vrot.slane %v2664_v61, %v7215_v6  ;;  %v5674_v61 = vld [vmem:[%s7828_s5 + $0x11] ss:$0 sm:$0xff] }
0x1044   :  { %v2729_v36 = vcombine.low %v2414_v35, %v2429_v33  ;;  %v2650_v57 = vrot.slane %v2642_v49, %v7215_v6  ;;  %v2657_v59 = vrot.slane %v5658_v50, %v7215_v6  ;;  %v2736_v63 = vrot.slane %v2728_v60, %v7215_v6  ;;  %v6491_v33 = vld [vmem:[%s7827_s4 + $0xd0] sm:$0xff]  }
0x1046   :  { %v2665_v62 = vcombine.low %v2650_v57, %v2657_v59  ;;  %v2743_v0 = vrot.slane %v2729_v36, %v7215_v6 }
0x1048   :  { %v2672_v1 = vrot.slane %v2665_v62, %v7215_v6  ;;  %v2751_v21 = vcombine.low %v2736_v63, %v2743_v0 }
0x104a   :  { %v2680_v4 = vcombine.low %v2672_v1, %v2679_v2  ;;  %v2758_v23 = vrot.slane %v2751_v21, %v7215_v6 }
0x104c   :  { %v2686_v5 = vsel %vm2684_vm12, %v2680_v4, 0  ;;  %v2766_v8 = vcombine.low %v2758_v23, %v2765_v3 }
0x104d   :  { %6247 = vmatpush3.bf16.msra.mxu1 %v2686_v5 }
0x104e   :  { %v2771_v51 = vsel %vm2684_vm12, %v2766_v8, 0  ;;  %6258 = vmatprep.subr.bf16.mxu1 %v6665_v16 }
0x104f   :  { %6253 = vmatpush3.bf16.msra.mxu0 %v2771_v51 }
0x1050   :  { %6266 = vmatprep.subr.bf16.mxu0 %v6492_v14 }
0x1106   :  { %v2528_v11 = vpop.f32.mrb[68].mxu1 }
0x1107   :  { %v2529_v13 = vadd.f32 %v2528_v11, %v7306_v9  ;;  %v6238_v15 = vpop.f32.mrb[69].mxu1 }
0x1108   :  { %v2531_v18 = vpop.f32.mrb[70].mxu1  ;;  %v2613_v19 = vpop.f32.mrb[72].mxu0 }
0x1109   :  { %v2614_v22 = vadd.f32 %v2613_v19, %v7309_v10  ;;  %v6239_v37 = vpop.f32.mrb[71].mxu1  ;;  %v6244_v12 = vpop.f32.mrb[73].mxu0  ;;  %v2620_v24 = vsel %vm2619_vm15, %v2529_v13, -inf }
0x110a   :  { %2621 = vmax.xlane.f32.xlu1 %v2620_v24  ;;  %v2616_v25 = vpop.f32.mrb[74].mxu0 }
0x110b   :  { %v6245_v26 = vpop.f32.mrb[75].mxu0  ;;  %v2623_v27 = vsel %vm2619_vm15, %v2614_v22, -inf }
0x110c   :  { %2624 = vmax.xlane.f32.xlu0 %v2623_v27 }
0x1197   :  { %v2622_v54 = vpop.xlane.xlu1 %2621 }
0x1198   :  { %v2626_v28 = vsub.f32 %v2529_v13, %v2622_v54 }
0x1199   :  { %v2625_v29 = vpop.xlane.xlu0 %2624 }
0x119a   :  { %v2628_v58 = vmul.f32 1.442695, %v2626_v28  ;;  %v2627_v30 = vsub.f32 %v2614_v22, %v2625_v29 }
0x119c   :  { %6555 = vpow2.f32 %v2628_v58  ;;  %v2630_v31 = vmul.f32 1.442695, %v2627_v30 }
0x119e   :  { %6557 = vpow2.f32 %v2630_v31 }
0x11a6   :  { %v7318_v32 = vpop.eup %6555 }
0x11a7   :  { %v2640_v34 = vpack.c.bf16 %v7318_v32, %v7318_v32 }
0x11a8   :  { %v7325_v35 = vpop.eup %6557 }
0x11a9   :  { %6249 = vmatmul.mubr.msk.bf16.vlgmr.msra.gmra.mrb[72].mxu1 %vm2619_vm15, %v2640_v34  ;;  %v2641_v36 = vpack.c.bf16 %v7325_v35, %v7325_v35 }
0x11aa   :  { %6259 = vmatpush3.bf16.msra.mxu1 %v6491_v33  ;;  %6262 = vmatprep.mubr.msk.bf16.mxu1 %vm6666_vm1, %v6665_v16 }
0x11ab   :  { %6255 = vmatmul.mubr.msk.bf16.vlgmr.msra.gmra.mrb[76].mxu0 %vm2619_vm15, %v2641_v36  ;;  %6260 = vmatprep.subr.bf16.mxu1 %v6665_v16  ;;  %v5666_v36 = vld [vmem:[%s7828_s5 + $0xd] ss:$0 sm:$0xff] }
0x11ac   :  { %6267 = vmatpush3.bf16.msra.mxu0 %v6492_v14  ;;  %6270 = vmatprep.mubr.msk.bf16.mxu0 %vm93_vm0, %v7172_v46 }
0x11ad   :  { %6268 = vmatprep.subr.bf16.mxu0 %v6494_v39 }
0x11ae   :  { %6261 = vmatpush3.bf16.msra.mxu1 %v6493_v40 }
0x11af   :  { %6274 = vmatprep.subr.bf16.mxu1 %v6495_v17 }
0x11b0   :  { %6269 = vmatpush3.bf16.msra.mxu0 %v6494_v39 }
0x11b1   :  { %6263 = vmatmul.mubr.msk.bf16.vlgmr.msra.gmra.mrb[76].mxu1 %vm93_vm0, %v7246_v7  ;;  %6282 = vmatprep.subr.bf16.mxu0 %v6665_v16 }
0x11b2   :  { %6278 = vmatprep.mubr.msk.bf16.mxu1 %vm93_vm0, %v7172_v46  ;;  %6275 = vmatpush3.bf16.msra.mxu1 %v6495_v17 }
0x11b3   :  { %6271 = vmatmul.mubr.msk.bf16.vlgmr.msra.gmra.mrb[80].mxu0 %vm93_vm0, %v7179_v47  ;;  %6276 = vmatprep.subr.bf16.mxu1 %v6496_v20 }
0x11b4   :  { %6284 = vmatprep.mubr.msk.bf16.mxu0 %vm6666_vm1, %v6665_v16 }
0x11b6   :  { %6277 = vmatpush3.bf16.msra.mxu1 %v6496_v20 }
0x11b7   :  { %6288 = vmatprep.subr.bf16.mxu1 %v6665_v16 }
0x11b9   :  { %6279 = vmatmul.mubr.msk.bf16.vlgmr.msra.gmra.mrb[80].mxu1 %vm93_vm0, %v7179_v47 }
0x11ba   :  { %6290 = vmatprep.mubr.msk.bf16.mxu1 %vm6666_vm1, %v6665_v16 }
0x127c   :  { %v7362_v43 = vpop.f32.mrb[72].mxu1 }
0x127d   :  { %v6250_v44 = vpop.f32.mrb[73].mxu1 }
0x127e   :  { %v2725_v48 = vpop.f32.mrb[74].mxu1  ;;  %v7364_v49 = vpop.f32.mrb[76].mxu0 }
0x127f   :  { %v6251_v50 = vpop.f32.mrb[75].mxu1  ;;  %v6256_v53 = vpop.f32.mrb[77].mxu0 }
0x1280   :  { %v2810_v57 = vpop.f32.mrb[78].mxu0 }
0x1281   :  { %v6257_v59 = vpop.f32.mrb[79].mxu0 }
0x1284   :  { %v2878_v60 = vpop.f32.mrb[76].mxu1 }
0x1285   :  { %v6264_v42 = vpop.f32.mrb[77].mxu1  ;;  %v2879_v20 = vadd.f32 %v5666_v36, %v2878_v60 }
0x1286   :  { %v2881_v62 = vpop.f32.mrb[78].mxu1  ;;  %v6272_v63 = vpop.f32.mrb[80].mxu0 }
0x1287   :  { %v2949_v0 = vadd.f32 %v6272_v63, %v5674_v61  ;;  %v6265_v1 = vpop.f32.mrb[79].mxu1  ;;  %v2940_v2 = vpop.f32.mrb[81].mxu0  ;;  %v2882_v53 = vadd.f32 %v5666_v36, %v2881_v62  ;;  %v5683_v62 = vld [vmem:[%s7828_s5 + $0x15] ss:$0 sm:$0xff] }
0x1288   :  { %v6273_v21 = vpop.f32.mrb[82].mxu0  ;;  %v2941_v23 = vadd.f32 %v5674_v61, %v2940_v2 }
0x1289   :  { %v3032_v3 = vpack.c.bf16 %v2949_v0, %v2949_v0  ;;  %v2943_v4 = vpop.f32.mrb[83].mxu0  ;;  %v3024_v63 = vmul.f32 0.35355338, %v2882_v53 }
0x128a   :  { %v2944_v5 = vadd.f32 %v5674_v61, %v2943_v4  ;;  %v3023_v61 = vmul.f32 0.35355338, %v2879_v20 }
0x128b   :  { %v3090_v8 = vrot.slane %v3032_v3, %v7215_v6  ;;  %v5819_v0 = vpack.c.bf16 %v3024_v63, %v3024_v63 }
0x128c   :  { %v3031_v51 = vpack.c.bf16 %v2944_v5, %v2941_v23  ;;  %v5690_v56 = vpack.c.bf16 %v2944_v5, %v2944_v5  ;;  %v5818_v60 = vpack.c.bf16 %v3023_v61, %v3023_v61  ;;  %v6280_v1 = vpop.f32.mrb[80].mxu1 }
0x128d   :  { %v3091_v55 = vcombine.high %v3090_v8, %v3090_v8  ;;  %v3098_v12 = vrot.slane %v3090_v8, %v7215_v6  ;;  %v3018_v2 = vadd.f32 %v6280_v1, %v5683_v62  ;;  %v3009_v21 = vpop.f32.mrb[81].mxu1 }
0x128e   :  { %v3042_v45 = vrot.slane %v3031_v51, %v7215_v6  ;;  %v3049_v52 = vrot.slane %v5690_v56, %v7215_v6  ;;  %v3010_v3 = vadd.f32 %v5683_v62, %v3009_v21  ;;  %v6281_v4 = vpop.f32.mrb[82].mxu1 }
0x128f   :  { %v3105_v24 = vrot.slane %v3091_v55, %v7215_v6  ;;  %v3107_v23 = vpack.c.bf16 %v3018_v2, %v3018_v2  ;;  %v3012_v5 = vpop.f32.mrb[83].mxu1 }
0x1290   :  { %v3050_v11 = vcombine.high %v3042_v45, %v3042_v45  ;;  %v3051_v13 = vcombine.high %v3049_v52, %v3049_v52  ;;  %v3065_v15 = vrot.slane %v3049_v52, %v7215_v6  ;;  %v3058_v18 = vrot.slane %v3042_v45, %v7215_v6 }
0x1291   :  { %v3288_v30 = vrot.slane %v3105_v24, %v7215_v6  ;;  %v3013_v8 = vadd.f32 %v5683_v62, %v3012_v5  ;;  %v3165_v45 = vrot.slane %v3107_v23, %v7215_v6  ;;  %v2632_v23 = vsel %vm2619_vm15, %v7318_v32, 0.0 }
0x1292   :  { %v3072_v19 = vrot.slane %v3050_v11, %v7215_v6  ;;  %v3079_v22 = vrot.slane %v3051_v13, %v7215_v6  ;;  %v3081_v37 = vcombine.high %v3065_v15, %v3065_v15  ;;  %v3203_v29 = vrot.slane %v3065_v15, %v7215_v6 }
0x1293   :  { %v3303_v50 = vrot.slane %v3288_v30, %v7215_v6  ;;  %v3106_v51 = vpack.c.bf16 %v3013_v8, %v3010_v3  ;;  %v5691_v56 = vpack.c.bf16 %v3013_v8, %v3013_v8  ;;  %v3166_v11 = vcombine.high %v3165_v45, %v3165_v45 }
0x1294   :  { %v3083_v25 = vcombine.high %v3079_v22, %v3079_v22  ;;  %v3181_v26 = vcombine.low %v3058_v18, %v3072_v19  ;;  %v5692_v27 = vcombine.high %v3058_v18, %v3072_v19  ;;  %v3266_v14 = vcombine.low %v3079_v22, %v3081_v37 }
0x1295   :  { %v3218_v40 = vrot.slane %v3203_v29, %v7215_v6  ;;  %v3117_v52 = vrot.slane %v3106_v51, %v7215_v6  ;;  %v3124_v55 = vrot.slane %v5691_v56, %v7215_v6  ;;  %v3173_v22 = vrot.slane %v3165_v45, %v7215_v6 }
0x1296   :  { %v3189_v54 = vrot.slane %v3181_v26, %v7215_v6  ;;  %v3196_v28 = vrot.slane %v5692_v27, %v7215_v6  ;;  %v3267_v58 = vcombine.low %v3083_v25, %v3098_v12  ;;  %v3274_v33 = vrot.slane %v3266_v14, %v7215_v6 }
0x1297   :  { %v3125_v13 = vcombine.high %v3117_v52, %v3117_v52  ;;  %v3126_v15 = vcombine.high %v3124_v55, %v3124_v55  ;;  %v3133_v18 = vrot.slane %v3117_v52, %v7215_v6  ;;  %v3140_v19 = vrot.slane %v3124_v55, %v7215_v6 }
0x1298   :  { %v3204_v31 = vcombine.low %v3189_v54, %v3196_v28  ;;  %v3281_v34 = vrot.slane %v3267_v58, %v7215_v6  ;;  %v3180_v25 = vrot.slane %v3166_v11, %v7215_v6  ;;  %v2635_v5 = vsel %vm2619_vm15, %v7325_v35, 0.0 }
0x1299   :  { %v3147_v37 = vrot.slane %v3125_v13, %v7215_v6  ;;  %v3154_v12 = vrot.slane %v3126_v15, %v7215_v6  ;;  %v3156_v24 = vcombine.high %v3140_v19, %v3140_v19  ;;  %v3395_v58 = vrot.slane %v3140_v19, %v7215_v6 }
0x129a   :  { %v3211_v39 = vrot.slane %v3204_v31, %v7215_v6  ;;  %v3289_v17 = vcombine.low %v3274_v33, %v3281_v34  ;;  %v3480_v31 = vrot.slane %v3180_v25, %v7215_v6 }
0x129b   :  { %v3158_v26 = vcombine.high %v3154_v12, %v3154_v12  ;;  %v3373_v27 = vcombine.low %v3133_v18, %v3147_v37  ;;  %v5695_v14 = vcombine.high %v3133_v18, %v3147_v37  ;;  %v3458_v54 = vcombine.low %v3154_v12, %v3156_v24  ;;  %v5661_v18 = vld [vmem:[%s7829_s6 + $0x10] sm:$0xf] }
0x129c   :  { %v3219_v44 = vcombine.low %v3211_v39, %v3218_v40  ;;  %v3296_v48 = vrot.slane %v3289_v17, %v7215_v6  ;;  %v3410_v40 = vrot.slane %v3395_v58, %v7215_v6 }
0x129d   :  { %v3381_v28 = vrot.slane %v3373_v27, %v7215_v6  ;;  %v3388_v29 = vrot.slane %v5695_v14, %v7215_v6  ;;  %v3459_v30 = vcombine.low %v3158_v26, %v3173_v22  ;;  %v3466_v34 = vrot.slane %v3458_v54, %v7215_v6 }
0x129e   :  { %v3224_v57 = vsel %vm345_vm3, %v3219_v44, 0  ;;  %v3304_v59 = vcombine.low %v3296_v48, %v3303_v50  ;;  %v3495_v48 = vrot.slane %v3480_v31, %v7215_v6  ;;  %v3599_v27 = vsel %vm463_vm4, %v5661_v18, 0 }
0x129f   :  { %6283 = vmatpush3.bf16.xpose.msra.mxu0 %v3224_v57  ;;  %v3396_v33 = vcombine.low %v3381_v28, %v3388_v29  ;;  %v3473_v36 = vrot.slane %v3459_v30, %v7215_v6  ;;  %v5698_v29 = vld [vmem:[%s7829_s6 + $0x14] sm:$0xf] }
0x12a0   :  { %v3309_v42 = vsel %vm345_vm3, %v3304_v59, 0  ;;  %6294 = vmatprep.subr.bf16.mxu0 %v6665_v16  ;;  %v3552_v58 = vsel %vm463_vm4, %v5698_v29, 0 }
0x12a1   :  { %6289 = vmatpush3.bf16.xpose.msra.mxu1 %v3309_v42  ;;  %v3403_v39 = vrot.slane %v3396_v33, %v7215_v6  ;;  %v3481_v17 = vcombine.low %v3466_v34, %v3473_v36 }
0x12a2   :  { %6300 = vmatprep.subr.bf16.mxu1 %v6665_v16 }
0x12a3   :  { %v3411_v20 = vcombine.low %v3403_v39, %v3410_v40  ;;  %v3488_v44 = vrot.slane %v3481_v17, %v7215_v6 }
0x12a5   :  { %v3416_v50 = vsel %vm2684_vm12, %v3411_v20, 0  ;;  %v3496_v53 = vcombine.low %v3488_v44, %v3495_v48 }
0x12a6   :  { %6285 = vmatmul.mubr.msk.bf16.vlgmr.msra.gmra.mrb[84].mxu0 %vm345_vm3, %v5818_v60 }
0x12a7   :  { %6296 = vmatprep.mubr.msk.bf16.mxu0 %vm6666_vm1, %v6665_v16  ;;  %6295 = vmatpush3.bf16.msra.mxu0 %v3416_v50  ;;  %v3501_v57 = vsel %vm2684_vm12, %v3496_v53, 0 }
0x12a8   :  { %6291 = vmatmul.mubr.msk.bf16.vlgmr.msra.gmra.mrb[84].mxu1 %vm345_vm3, %v5819_v0  ;;  %6306 = vmatprep.subr.bf16.mxu0 %v6665_v16 }
0x12a9   :  { %6302 = vmatprep.mubr.msk.bf16.mxu1 %vm6666_vm1, %v6665_v16  ;;  %6301 = vmatpush3.bf16.msra.mxu1 %v3501_v57  ;;  %v6499_v57 = vld [vmem:[%s7827_s4 + $0xe0] sm:$0xff]  }
0x12aa   :  { %6312 = vmatprep.subr.bf16.mxu1 %v6665_v16 }
0x1379   :  { %v3260_v59 = vpop.f32.mrb[84].mxu0 }
0x137a   :  { %v3261_v61 = vadd.f32 %v3260_v59, %v7306_v9  ;;  %v6286_v42 = vpop.f32.mrb[85].mxu0 }
0x137b   :  { %v3263_v63 = vpop.f32.mrb[86].mxu0  ;;  %v3345_v60 = vpop.f32.mrb[84].mxu1  ;;  %v6500_v42 = vld [vmem:[%s7827_s4 + $0xe8] sm:$0xff]  }
0x137c   :  { %v3346_v0 = vadd.f32 %v3345_v60, %v7309_v10  ;;  %v6287_v62 = vpop.f32.mrb[87].mxu0  ;;  %v6292_v1 = vpop.f32.mrb[85].mxu1  ;;  %v3351_v2 = vsel %vm2619_vm15, %v3261_v61, -inf  ;;  %v6501_v63 = vld [vmem:[%s7827_s4 + $0x160] sm:$0xff]  }
0x137d   :  { %3352 = vmax.xlane.f32.xlu0 %v3351_v2  ;;  %v3348_v21 = vpop.f32.mrb[86].mxu1  ;;  %v6502_v2 = vld [vmem:[%s7827_s4 + $0x168] sm:$0xff]  }
0x137e   :  { %v6293_v3 = vpop.f32.mrb[87].mxu1  ;;  %v3354_v4 = vsel %vm2619_vm15, %v3346_v0, -inf  ;;  %v5713_v21 = vld [vmem:[%s7828_s5 + $0x12] ss:$0 sm:$0xff] }
0x137f   :  { %3355 = vmax.xlane.f32.xlu1 %v3354_v4 }
0x1381   :  { %2633 = vadd.xlane.f32.xlu0 %v2632_v23 }
0x1383   :  { %2636 = vadd.xlane.f32.xlu1 %v2635_v5 }
0x140a   :  { %v3353_v8 = vpop.xlane.xlu0 %3352 }
0x140b   :  { %v3357_v51 = vsub.f32 %v3261_v61, %v3353_v8 }
0x140c   :  { %v3356_v56 = vpop.xlane.xlu1 %3355 }
0x140d   :  { %v3359_v45 = vmul.f32 1.442695, %v3357_v51  ;;  %v3358_v52 = vsub.f32 %v3346_v0, %v3356_v56 }
0x140e   :  { %v2634_v55 = vpop.xlane.xlu0 %2633 }
0x140f   :  { %6559 = vpow2.f32 %v3359_v45  ;;  %v3361_v11 = vmul.f32 1.442695, %v3358_v52 }
0x1410   :  { %6561 = vrcp.f32 %v2634_v55  ;;  %v2637_v13 = vpop.xlane.xlu1 %2636 }
0x1411   :  { %6563 = vpow2.f32 %v3361_v11 }
0x1412   :  { %6565 = vrcp.f32 %v2637_v13 }
0x1419   :  { %v6560_v15 = vpop.eup %6559 }
0x141a   :  { %v7438_v19 = vpop.eup %6561  ;;  %v3363_v22 = vsel %vm2619_vm15, %v6560_v15, 0.0  ;;  %v3371_v37 = vpack.c.bf16 %v6560_v15, %v6560_v15 }
0x141b   :  { %v6564_v12 = vpop.eup %6563  ;;  %3364 = vadd.xlane.f32.xlu0 %v3363_v22  ;;  %v2813_v14 = vmul.f32 %v7438_v19, %v7362_v43  ;;  %v6497_v43 = vld [vmem:[%s7827_s4 + $0x120] sm:$0xff]  }
0x141c   :  { %v7441_v24 = vpop.eup %6565  ;;  %6297 = vmatmul.mubr.msk.bf16.vlgmr.msra.gmra.mrb[88].mxu0 %vm2619_vm15, %v3371_v37  ;;  %v3366_v25 = vsel %vm2619_vm15, %v6564_v12, 0.0  ;;  %v3372_v26 = vpack.c.bf16 %v6564_v12, %v6564_v12 }
0x141d   :  { %v2814_v54 = vmul.f32 %v7441_v24, %v7364_v49  ;;  %3367 = vadd.xlane.f32.xlu1 %v3366_v25  ;;  %6308 = vmatprep.mubr.msk.bf16.mxu0 %vm6666_vm1, %v6665_v16  ;;  %v6498_v49 = vld [vmem:[%s7827_s4 + $0x128] sm:$0xff]  }
0x141e   :  { %6303 = vmatmul.mubr.msk.bf16.vlgmr.msra.gmra.mrb[88].mxu1 %vm2619_vm15, %v3372_v26  ;;  %6307 = vmatpush3.bf16.msra.mxu0 %v3552_v58 }
0x141f   :  { %6313 = vmatpush3.bf16.msra.mxu1 %v3599_v27  ;;  %6314 = vmatprep.mubr.msk.bf16.mxu1 %vm6666_vm1, %v6665_v16  ;;  %v2815_v28 = vpack.c.bf16 %v2814_v54, %v2813_v14 }
0x1420   :  { %6326 = vmatprep.subr.bf16.mxu1 %v6497_v43  ;;  %6318 = vmatprep.subr.bf16.mxu0 %v6665_v16 }
0x1426   :  { %6315 = vmatmul.mubr.msk.bf16.vlgmr.msra.gmra.mrb[92].mxu1 %vm345_vm3, %v2815_v28 }
0x1427   :  { %6330 = vmatprep.mubr.msk.bf16.mxu1 %vm93_vm0, %v7172_v46  ;;  %6327 = vmatpush3.bf16.msra.mxu1 %v6497_v43 }
0x1428   :  { %6328 = vmatprep.subr.bf16.mxu1 %v6498_v49 }
0x142b   :  { %6329 = vmatpush3.bf16.msra.mxu1 %v6498_v49 }
0x142c   :  { %6342 = vmatprep.subr.bf16.mxu1 %v6665_v16 }
0x142e   :  { %6331 = vmatmul.mubr.msk.bf16.vlgmr.msra.gmra.mrb[96].mxu1 %vm93_vm0, %v7179_v47 }
0x142f   :  { %6344 = vmatprep.mubr.msk.bf16.mxu1 %vm6666_vm1, %v6665_v16 }
0x14a8   :  { %v3365_v30 = vpop.xlane.xlu0 %3364 }
0x14a9   :  { %6567 = vrcp.f32 %v3365_v30 }
0x14aa   :  { %v3368_v31 = vpop.xlane.xlu1 %3367 }
0x14ab   :  { %6569 = vrcp.f32 %v3368_v31 }
0x14b3   :  { %v6568_v34 = vpop.eup %6567 }
0x14b5   :  { %v6570_v39 = vpop.eup %6569 }
0x14ef   :  { %v3452_v33 = vpop.f32.mrb[88].mxu0 }
0x14f0   :  { %v6298_v36 = vpop.f32.mrb[89].mxu0  ;;  %v3543_v20 = vmul.f32 %v6568_v34, %v3452_v33 }
0x14f1   :  { %v3455_v40 = vpop.f32.mrb[90].mxu0  ;;  %v3537_v17 = vpop.f32.mrb[88].mxu1 }
0x14f2   :  { %v3544_v44 = vmul.f32 %v6570_v39, %v3537_v17  ;;  %v6299_v48 = vpop.f32.mrb[91].mxu0  ;;  %v6304_v50 = vpop.f32.mrb[89].mxu1 }
0x14f3   :  { %v3540_v53 = vpop.f32.mrb[90].mxu1 }
0x14f4   :  { %v3545_v59 = vpack.c.bf16 %v3544_v44, %v3543_v20  ;;  %v6305_v61 = vpop.f32.mrb[91].mxu1 }
0x14f6   :  { %6309 = vmatmul.mubr.msk.bf16.vlgmr.msra.gmra.mrb[92].mxu0 %vm345_vm3, %v3545_v59 }
0x14f7   :  { %6319 = vmatpush3.bf16.msra.mxu0 %v6499_v57  ;;  %6322 = vmatprep.mubr.msk.bf16.mxu0 %vm6666_vm1, %v6665_v16 }
0x14f8   :  { %6320 = vmatprep.subr.bf16.mxu0 %v6665_v16 }
0x14f9   :  { %v7487_v60 = vpop.f32.mrb[92].mxu1 }
0x14fa   :  { %v6316_v0 = vpop.f32.mrb[93].mxu1 }
0x14fb   :  { %v7489_v62 = vpop.f32.mrb[94].mxu1  ;;  %6321 = vmatpush3.bf16.msra.mxu0 %v6500_v42 }
0x14fc   :  { %v6317_v1 = vpop.f32.mrb[95].mxu1  ;;  %6334 = vmatprep.subr.bf16.mxu0 %v6501_v63 }
0x14fe   :  { %6323 = vmatmul.mubr.msk.bf16.vlgmr.msra.gmra.mrb[96].mxu0 %vm93_vm0, %v7246_v7 }
0x14ff   :  { %6335 = vmatpush3.bf16.msra.mxu0 %v6501_v63  ;;  %6338 = vmatprep.mubr.msk.bf16.mxu0 %vm93_vm0, %v7172_v46 }
0x1500   :  { %6336 = vmatprep.subr.bf16.mxu0 %v6502_v2 }
0x1501   :  { %v6332_v3 = vpop.f32.mrb[96].mxu1 }
0x1502   :  { %v3771_v4 = vadd.f32 %v6332_v3, %v5713_v21  ;;  %v3762_v23 = vpop.f32.mrb[97].mxu1 }
0x1503   :  { %6337 = vmatpush3.bf16.msra.mxu0 %v6502_v2  ;;  %v3763_v5 = vadd.f32 %v5713_v21, %v3762_v23  ;;  %v6333_v8 = vpop.f32.mrb[98].mxu1 }
0x1504   :  { %6348 = vmatprep.subr.bf16.mxu0 %v6665_v16  ;;  %v3765_v46 = vpop.f32.mrb[99].mxu1  ;;  %v3854_v51 = vpack.c.bf16 %v3771_v4, %v3771_v4 }
0x1505   :  { %v3766_v56 = vadd.f32 %v5713_v21, %v3765_v46  ;;  %v5705_v21 = vld [vmem:[%s7828_s5 + $0xe] ss:$0 sm:$0xff] }
0x1506   :  { %6339 = vmatmul.mubr.msk.bf16.vlgmr.msra.gmra.mrb[100].mxu0 %vm93_vm0, %v7179_v47  ;;  %v3912_v55 = vrot.slane %v3854_v51, %v7215_v6 }
0x1507   :  { %6350 = vmatprep.mubr.msk.bf16.mxu0 %vm6666_vm1, %v6665_v16  ;;  %v3853_v45 = vpack.c.bf16 %v3766_v56, %v3763_v5  ;;  %v5729_v52 = vpack.c.bf16 %v3766_v56, %v3766_v56 }
0x1508   :  { %v3920_v22 = vrot.slane %v3912_v55, %v7215_v6  ;;  %v3913_v34 = vcombine.high %v3912_v55, %v3912_v55 }
0x1509   :  { %v3864_v47 = vrot.slane %v3853_v45, %v7215_v6  ;;  %v3871_v11 = vrot.slane %v5729_v52, %v7215_v6 }
0x150a   :  { %v3927_v39 = vrot.slane %v3913_v34, %v7215_v6 }
0x150b   :  { %v3872_v13 = vcombine.high %v3864_v47, %v3864_v47  ;;  %v3873_v15 = vcombine.high %v3871_v11, %v3871_v11  ;;  %v3880_v18 = vrot.slane %v3864_v47, %v7215_v6  ;;  %v3887_v37 = vrot.slane %v3871_v11, %v7215_v6 }
0x150c   :  { %v4110_v17 = vrot.slane %v3927_v39, %v7215_v6 }
0x150d   :  { %v3894_v12 = vrot.slane %v3872_v13, %v7215_v6  ;;  %v3901_v25 = vrot.slane %v3873_v15, %v7215_v6  ;;  %v4025_v54 = vrot.slane %v3887_v37, %v7215_v6  ;;  %v3903_v36 = vcombine.high %v3887_v37, %v3887_v37 }
0x150e   :  { %v4125_v53 = vrot.slane %v4110_v17, %v7215_v6 }
0x150f   :  { %v3905_v26 = vcombine.high %v3901_v25, %v3901_v25  ;;  %v4003_v27 = vcombine.low %v3880_v18, %v3894_v12  ;;  %v5731_v14 = vcombine.high %v3880_v18, %v3894_v12  ;;  %v4040_v58 = vrot.slane %v4025_v54, %v7215_v6 }
0x1510   :  { %v4088_v40 = vcombine.low %v3901_v25, %v3903_v36 }
0x1511   :  { %v4011_v28 = vrot.slane %v4003_v27, %v7215_v6  ;;  %v4018_v43 = vrot.slane %v5731_v14, %v7215_v6  ;;  %v4089_v49 = vcombine.low %v3905_v26, %v3920_v22 }
0x1512   :  { %v4096_v20 = vrot.slane %v4088_v40, %v7215_v6 }
0x1513   :  { %v4026_v29 = vcombine.low %v4011_v28, %v4018_v43  ;;  %v4103_v44 = vrot.slane %v4089_v49, %v7215_v6 }
0x1515   :  { %v4033_v30 = vrot.slane %v4026_v29, %v7215_v6  ;;  %v4111_v48 = vcombine.low %v4096_v20, %v4103_v44 }
0x1517   :  { %v4041_v31 = vcombine.low %v4033_v30, %v4040_v58  ;;  %v4118_v50 = vrot.slane %v4111_v48, %v7215_v6 }
0x1519   :  { %v4046_v33 = vsel %vm345_vm3, %v4041_v31, 0  ;;  %v4126_v57 = vcombine.low %v4118_v50, %v4125_v53 }
0x151a   :  { %6343 = vmatpush3.bf16.xpose.msra.mxu1 %v4046_v33 }
0x151b   :  { %6354 = vmatprep.subr.bf16.mxu1 %v6665_v16  ;;  %v4131_v59 = vsel %vm345_vm3, %v4126_v57, 0 }
0x151c   :  { %6349 = vmatpush3.bf16.xpose.msra.mxu0 %v4131_v59 }
0x151d   :  { %6360 = vmatprep.subr.bf16.mxu0 %v6665_v16 }
0x15c9   :  { %v3588_v61 = vpop.f32.mrb[92].mxu0 }
0x15ca   :  { %v7530_v42 = vadd.f32 %v7487_v60, %v3588_v61  ;;  %v6310_v63 = vpop.f32.mrb[93].mxu0 }
0x15cb   :  { %v3591_v0 = vpop.f32.mrb[94].mxu0 }
0x15cc   :  { %v7533_v1 = vadd.f32 %v7489_v62, %v3591_v0  ;;  %v6311_v2 = vpop.f32.mrb[95].mxu0  ;;  %v5722_v62 = vld [vmem:[%s7828_s5 + $0x16] ss:$0 sm:$0xff] }
0x15d1   :  { %v3700_v3 = vpop.f32.mrb[96].mxu0 }
0x15d2   :  { %v3701_v4 = vadd.f32 %v5705_v21, %v3700_v3  ;;  %v6324_v23 = vpop.f32.mrb[97].mxu0 }
0x15d3   :  { %v3703_v5 = vpop.f32.mrb[98].mxu0 }
0x15d4   :  { %v3845_v8 = vmul.f32 0.35355338, %v3701_v4  ;;  %v3704_v46 = vadd.f32 %v5705_v21, %v3703_v5  ;;  %v6325_v51 = vpop.f32.mrb[99].mxu0 }
0x15d6   :  { %v5820_v56 = vpack.c.bf16 %v3845_v8, %v3845_v8  ;;  %v3846_v60 = vmul.f32 0.35355338, %v3704_v46 }
0x15d8   :  { %v5821_v45 = vpack.c.bf16 %v3846_v60, %v3846_v60  ;;  %6345 = vmatmul.mubr.msk.bf16.vlgmr.msra.gmra.mrb[100].mxu1 %vm345_vm3, %v5820_v56 }
0x15d9   :  { %v6340_v52 = vpop.f32.mrb[100].mxu0  ;;  %6356 = vmatprep.mubr.msk.bf16.mxu1 %vm6666_vm1, %v6665_v16 }
0x15da   :  { %6351 = vmatmul.mubr.msk.bf16.vlgmr.msra.gmra.mrb[104].mxu0 %vm345_vm3, %v5821_v45  ;;  %v3840_v55 = vadd.f32 %v6340_v52, %v5722_v62  ;;  %v3831_v47 = vpop.f32.mrb[101].mxu0 }
0x15db   :  { %v3832_v11 = vadd.f32 %v5722_v62, %v3831_v47  ;;  %v6341_v13 = vpop.f32.mrb[102].mxu0  ;;  %6362 = vmatprep.mubr.msk.bf16.mxu0 %vm6666_vm1, %v6665_v16 }
0x15dc   :  { %v3834_v15 = vpop.f32.mrb[103].mxu0  ;;  %v3929_v18 = vpack.c.bf16 %v3840_v55, %v3840_v55 }
0x15dd   :  { %v3835_v22 = vadd.f32 %v5722_v62, %v3834_v15 }
0x15de   :  { %v3987_v25 = vrot.slane %v3929_v18, %v7215_v6 }
0x15df   :  { %v3928_v37 = vpack.c.bf16 %v3835_v22, %v3832_v11  ;;  %v5730_v12 = vpack.c.bf16 %v3835_v22, %v3835_v22 }
0x15e0   :  { %v3995_v14 = vrot.slane %v3987_v25, %v7215_v6  ;;  %v3988_v33 = vcombine.high %v3987_v25, %v3987_v25 }
0x15e1   :  { %v3946_v26 = vrot.slane %v5730_v12, %v7215_v6  ;;  %v3939_v49 = vrot.slane %v3928_v37, %v7215_v6 }
0x15e2   :  { %v4002_v40 = vrot.slane %v3988_v33, %v7215_v6  ;;  %v6505_v33 = vld [vmem:[%s7827_s4 + $0x130] sm:$0xff]  }
0x15e3   :  { %v3948_v27 = vcombine.high %v3946_v26, %v3946_v26  ;;  %v3947_v29 = vcombine.high %v3939_v49, %v3939_v49  ;;  %v3955_v58 = vrot.slane %v3939_v49, %v7215_v6  ;;  %v3962_v30 = vrot.slane %v3946_v26, %v7215_v6 }
0x15e4   :  { %v4302_v48 = vrot.slane %v4002_v40, %v7215_v6 }
0x15e5   :  { %v3976_v54 = vrot.slane %v3948_v27, %v7215_v6  ;;  %v3969_v31 = vrot.slane %v3947_v29, %v7215_v6  ;;  %v3978_v34 = vcombine.high %v3962_v30, %v3962_v30  ;;  %v4217_v50 = vrot.slane %v3962_v30, %v7215_v6  ;;  %v6504_v29 = vld [vmem:[%s7827_s4 + $0xf8] sm:$0xff]  }
0x15e6   :  { %v4317_v2 = vrot.slane %v4302_v48, %v7215_v6  ;;  %v5737_v30 = vld [vmem:[%s7829_s6 + $0x18] sm:$0xf] }
0x15e7   :  { %v3980_v28 = vcombine.high %v3976_v54, %v3976_v54  ;;  %v4195_v36 = vcombine.low %v3955_v58, %v3969_v31  ;;  %v5734_v39 = vcombine.high %v3955_v58, %v3969_v31  ;;  %v4280_v44 = vcombine.low %v3976_v54, %v3978_v34  ;;  %v6593_v58 = vld [vmem:[%s7824_s1] sm:$0xff]  }
0x15e8   :  { %v4232_v63 = vrot.slane %v4217_v50, %v7215_v6  ;;  %v4374_v31 = vsel %vm463_vm4, %v5737_v30, 0 }
0x15e9   :  { %v4281_v43 = vcombine.low %v3980_v28, %v3995_v14  ;;  %v4203_v17 = vrot.slane %v4195_v36, %v7215_v6  ;;  %v4210_v20 = vrot.slane %v5734_v39, %v7215_v6  ;;  %v4288_v57 = vrot.slane %v4280_v44, %v7215_v6  ;;  %v6503_v28 = vld [vmem:[%s7827_s4 + $0xf0] sm:$0xff]  }
0x15eb   :  { %v4218_v53 = vcombine.low %v4203_v17, %v4210_v20  ;;  %v4295_v59 = vrot.slane %v4281_v43, %v7215_v6 }
0x15ed   :  { %v4225_v61 = vrot.slane %v4218_v53, %v7215_v6  ;;  %v4303_v0 = vcombine.low %v4288_v57, %v4295_v59 }
0x15ef   :  { %v4233_v21 = vcombine.low %v4225_v61, %v4232_v63  ;;  %v4310_v3 = vrot.slane %v4303_v0, %v7215_v6  ;;  %v6506_v0 = vld [vmem:[%s7827_s4 + $0x138] sm:$0xff]  }
0x15f1   :  { %v4238_v4 = vsel %vm2684_vm12, %v4233_v21, 0  ;;  %v4318_v23 = vcombine.low %v4310_v3, %v4317_v2 }
0x15f2   :  { %6355 = vmatpush3.bf16.msra.mxu1 %v4238_v4 }
0x15f3   :  { %v4323_v5 = vsel %vm2684_vm12, %v4318_v23, 0  ;;  %6366 = vmatprep.subr.bf16.mxu1 %v6665_v16  ;;  %v6594_v23 = vld [vmem:[%s7824_s1 + $0x8] ss:$0 sps:$4 sm:$0x33]  }
0x15f4   :  { %6361 = vmatpush3.bf16.msra.mxu0 %v4323_v5  ;;  %v6507_v5 = vld [vmem:[%s7827_s4 + $0x170] sm:$0xff]  }
0x15f5   :  { %6372 = vmatprep.subr.bf16.mxu0 %v6665_v16 }
0x16ab   :  { %v4082_v8 = vpop.f32.mrb[100].mxu1 }
0x16ac   :  { %v4083_v46 = vadd.f32 %v4082_v8, %v7306_v9  ;;  %v6346_v51 = vpop.f32.mrb[101].mxu1  ;;  %v6508_v8 = vld [vmem:[%s7827_s4 + $0x178] sm:$0xff]  }
0x16ad   :  { %v4085_v56 = vpop.f32.mrb[102].mxu1  ;;  %v4167_v60 = vpop.f32.mrb[104].mxu0 }
0x16ae   :  { %v4168_v45 = vadd.f32 %v4167_v60, %v7309_v10  ;;  %v6347_v62 = vpop.f32.mrb[103].mxu1  ;;  %v6352_v52 = vpop.f32.mrb[105].mxu0  ;;  %v4173_v55 = vsel %vm2619_vm15, %v4083_v46, -inf }
0x16af   :  { %4174 = vmax.xlane.f32.xlu0 %v4173_v55  ;;  %v4170_v47 = vpop.f32.mrb[106].mxu0  ;;  %v5751_v52 = vld [vmem:[%s7828_s5 + $0x13] ss:$0 sm:$0xff] }
0x16b0   :  { %v6353_v11 = vpop.f32.mrb[107].mxu0  ;;  %v4176_v13 = vsel %vm2619_vm15, %v4168_v45, -inf }
0x16b1   :  { %4177 = vmax.xlane.f32.xlu1 %v4176_v13 }
0x173c   :  { %v4175_v15 = vpop.xlane.xlu0 %4174 }
0x173d   :  { %v4179_v18 = vsub.f32 %v4083_v46, %v4175_v15 }
0x173e   :  { %v4178_v22 = vpop.xlane.xlu1 %4177 }
0x173f   :  { %v4181_v37 = vmul.f32 1.442695, %v4179_v18  ;;  %v4180_v12 = vsub.f32 %v4168_v45, %v4178_v22 }
0x1741   :  { %6571 = vpow2.f32 %v4181_v37  ;;  %v4183_v25 = vmul.f32 1.442695, %v4180_v12 }
0x1743   :  { %6573 = vpow2.f32 %v4183_v25 }
0x174b   :  { %v6572_v26 = vpop.eup %6571 }
0x174c   :  { %v4185_v27 = vsel %vm2619_vm15, %v6572_v26, 0.0  ;;  %v4193_v14 = vpack.c.bf16 %v6572_v26, %v6572_v26 }
0x174d   :  { %v6574_v54 = vpop.eup %6573  ;;  %4186 = vadd.xlane.f32.xlu0 %v4185_v27 }
0x174e   :  { %6357 = vmatmul.mubr.msk.bf16.vlgmr.msra.gmra.mrb[104].mxu1 %vm2619_vm15, %v4193_v14  ;;  %v4188_v43 = vsel %vm2619_vm15, %v6574_v54, 0.0  ;;  %v4194_v49 = vpack.c.bf16 %v6574_v54, %v6574_v54 }
0x174f   :  { %4189 = vadd.xlane.f32.xlu1 %v4188_v43  ;;  %6368 = vmatprep.mubr.msk.bf16.mxu1 %vm6666_vm1, %v6665_v16 }
0x1750   :  { %6363 = vmatmul.mubr.msk.bf16.vlgmr.msra.gmra.mrb[108].mxu0 %vm2619_vm15, %v4194_v49  ;;  %6367 = vmatpush3.bf16.msra.mxu1 %v4374_v31 }
0x1751   :  { %6373 = vmatpush3.bf16.msra.mxu0 %v6503_v28  ;;  %6376 = vmatprep.mubr.msk.bf16.mxu0 %vm6666_vm1, %v6665_v16 }
0x1752   :  { %6374 = vmatprep.subr.bf16.mxu0 %v6665_v16  ;;  %6380 = vmatprep.subr.bf16.mxu1 %v6505_v33 }
0x1755   :  { %6375 = vmatpush3.bf16.msra.mxu0 %v6504_v29 }
0x1756   :  { %6388 = vmatprep.subr.bf16.mxu0 %v6507_v5 }
0x1758   :  { %6377 = vmatmul.mubr.msk.bf16.vlgmr.msra.gmra.mrb[112].mxu0 %vm93_vm0, %v7246_v7 }
0x1759   :  { %6392 = vmatprep.mubr.msk.bf16.mxu0 %vm93_vm0, %v6593_v58  ;;  %6389 = vmatpush3.bf16.msra.mxu0 %v6507_v5 }
0x175a   :  { %6390 = vmatprep.subr.bf16.mxu0 %v6508_v8 }
0x175d   :  { %6391 = vmatpush3.bf16.msra.mxu0 %v6508_v8 }
0x175e   :  { %6402 = vmatprep.subr.bf16.mxu0 %v6665_v16 }
0x1760   :  { %6393 = vmatmul.mubr.msk.bf16.vlgmr.msra.gmra.mrb[116].mxu0 %vm93_vm0, %v6594_v23 }
0x1761   :  { %6404 = vmatprep.mubr.msk.bf16.mxu0 %vm6666_vm1, %v6665_v16 }
0x17da   :  { %v4187_v34 = vpop.xlane.xlu0 %4186 }
0x17db   :  { %6575 = vrcp.f32 %v4187_v34 }
0x17dc   :  { %v4190_v7 = vpop.xlane.xlu1 %4189 }
0x17dd   :  { %6577 = vrcp.f32 %v4190_v7 }
0x17e5   :  { %v6576_v39 = vpop.eup %6575 }
0x17e7   :  { %v6578_v17 = vpop.eup %6577 }
0x1821   :  { %v4274_v36 = vpop.f32.mrb[104].mxu1 }
0x1822   :  { %v6358_v40 = vpop.f32.mrb[105].mxu1  ;;  %v4365_v48 = vmul.f32 %v6576_v39, %v4274_v36 }
0x1823   :  { %v4277_v20 = vpop.f32.mrb[106].mxu1  ;;  %v4359_v44 = vpop.f32.mrb[108].mxu0 }
0x1824   :  { %v4366_v50 = vmul.f32 %v6578_v17, %v4359_v44  ;;  %v6359_v53 = vpop.f32.mrb[107].mxu1  ;;  %v6364_v57 = vpop.f32.mrb[109].mxu0 }
0x1825   :  { %v4362_v59 = vpop.f32.mrb[110].mxu0  ;;  %v5743_v57 = vld [vmem:[%s7828_s5 + $0xf] ss:$0 sm:$0xff] }
0x1826   :  { %v4367_v61 = vpack.c.bf16 %v4366_v50, %v4365_v48  ;;  %v6365_v63 = vpop.f32.mrb[111].mxu0 }
0x1828   :  { %6369 = vmatmul.mubr.msk.bf16.vlgmr.msra.gmra.mrb[108].mxu1 %vm345_vm3, %v4367_v61 }
0x1829   :  { %6381 = vmatpush3.bf16.msra.mxu1 %v6505_v33  ;;  %6384 = vmatprep.mubr.msk.bf16.mxu1 %vm93_vm0, %v6593_v58 }
0x182a   :  { %6382 = vmatprep.subr.bf16.mxu1 %v6506_v0 }
0x182b   :  { %v7607_v2 = vpop.f32.mrb[112].mxu0 }
0x182c   :  { %v6378_v21 = vpop.f32.mrb[113].mxu0 }
0x182d   :  { %v7609_v3 = vpop.f32.mrb[114].mxu0  ;;  %6383 = vmatpush3.bf16.msra.mxu1 %v6506_v0  ;;  %v4478_v0 = vadd.f32 %v5743_v57, %v7607_v2 }
0x182e   :  { %v6379_v4 = vpop.f32.mrb[115].mxu0  ;;  %6396 = vmatprep.subr.bf16.mxu1 %v6665_v16  ;;  %v4481_v5 = vadd.f32 %v5743_v57, %v7609_v3  ;;  %v5760_v3 = vld [vmem:[%s7828_s5 + $0x17] ss:$0 sm:$0xff] }
0x1830   :  { %6385 = vmatmul.mubr.msk.bf16.vlgmr.msra.gmra.mrb[112].mxu1 %vm93_vm0, %v6594_v23 }
0x1831   :  { %6398 = vmatprep.mubr.msk.bf16.mxu1 %vm6666_vm1, %v6665_v16 }
0x18fb   :  { %v4410_v46 = vpop.f32.mrb[108].mxu1 }
0x18fc   :  { %v7629_v51 = vadd.f32 %v4410_v46, %v7530_v42  ;;  %v6370_v56 = vpop.f32.mrb[109].mxu1 }
0x18fd   :  { %v4413_v60 = vpop.f32.mrb[110].mxu1  ;;  %v4622_v56 = vmul.f32 0.35355338, %v4478_v0 }
0x18fe   :  { %v7632_v45 = vadd.f32 %v4413_v60, %v7533_v1  ;;  %v6371_v62 = vpop.f32.mrb[111].mxu1 }
0x18ff   :  { %v4623_v62 = vmul.f32 0.35355338, %v4481_v5  ;;  %v5822_v2 = vpack.c.bf16 %v4622_v56, %v4622_v56 }
0x1903   :  { %v6386_v55 = vpop.f32.mrb[112].mxu1 }
0x1904   :  { %v4548_v47 = vadd.f32 %v6386_v55, %v5751_v52  ;;  %v4539_v11 = vpop.f32.mrb[113].mxu1  ;;  %v6394_v55 = vpop.f32.mrb[116].mxu0 }
0x1905   :  { %v6387_v13 = vpop.f32.mrb[114].mxu1  ;;  %v4540_v22 = vadd.f32 %v5751_v52, %v4539_v11  ;;  %v4608_v11 = vpop.f32.mrb[117].mxu0 }
0x1906   :  { %v4631_v15 = vpack.c.bf16 %v4548_v47, %v4548_v47  ;;  %v4542_v18 = vpop.f32.mrb[115].mxu1  ;;  %v4617_v47 = vadd.f32 %v6394_v55, %v5760_v3  ;;  %v4609_v13 = vadd.f32 %v5760_v3, %v4608_v11 }
0x1907   :  { %v4543_v37 = vadd.f32 %v5751_v52, %v4542_v18  ;;  %v5823_v52 = vpack.c.bf16 %v4623_v62, %v4623_v62 }
0x1908   :  { %v4689_v42 = vrot.slane %v4631_v15, %v7215_v6  ;;  %v6395_v15 = vpop.f32.mrb[118].mxu0  ;;  %v4706_v18 = vpack.c.bf16 %v4617_v47, %v4617_v47 }
0x1909   :  { %v4630_v12 = vpack.c.bf16 %v4543_v37, %v4540_v22  ;;  %v5767_v25 = vpack.c.bf16 %v4543_v37, %v4543_v37  ;;  %v4611_v22 = vpop.f32.mrb[119].mxu0 }
0x190a   :  { %v4690_v27 = vcombine.high %v4689_v42, %v4689_v42  ;;  %v4697_v30 = vrot.slane %v4689_v42, %v7215_v6  ;;  %v4612_v37 = vadd.f32 %v5760_v3, %v4611_v22  ;;  %v4764_v42 = vrot.slane %v4706_v18, %v7215_v6 }
0x190b   :  { %v4641_v1 = vrot.slane %v4630_v12, %v7215_v6  ;;  %v4648_v26 = vrot.slane %v5767_v25, %v7215_v6 }
0x190c   :  { %v4704_v31 = vrot.slane %v4690_v27, %v7215_v6  ;;  %v4705_v12 = vpack.c.bf16 %v4612_v37, %v4609_v13  ;;  %v5768_v25 = vpack.c.bf16 %v4612_v37, %v4612_v37 }
0x190d   :  { %v4649_v14 = vcombine.high %v4641_v1, %v4641_v1  ;;  %v4650_v54 = vcombine.high %v4648_v26, %v4648_v26  ;;  %v4664_v28 = vrot.slane %v4648_v26, %v7215_v6  ;;  %v4657_v43 = vrot.slane %v4641_v1, %v7215_v6 }
0x190e   :  { %v4887_v44 = vrot.slane %v4704_v31, %v7215_v6  ;;  %v4765_v1 = vcombine.high %v4764_v42, %v4764_v42  ;;  %v4716_v26 = vrot.slane %v4705_v12, %v7215_v6  ;;  %v4723_v27 = vrot.slane %v5768_v25, %v7215_v6 }
0x190f   :  { %v4671_v49 = vrot.slane %v4649_v14, %v7215_v6  ;;  %v4678_v29 = vrot.slane %v4650_v54, %v7215_v6  ;;  %v4680_v58 = vcombine.high %v4664_v28, %v4664_v28  ;;  %v4802_v17 = vrot.slane %v4664_v28, %v7215_v6 }
0x1910   :  { %v4902_v23 = vrot.slane %v4887_v44, %v7215_v6  ;;  %v4724_v14 = vcombine.high %v4716_v26, %v4716_v26  ;;  %v4725_v54 = vcombine.high %v4723_v27, %v4723_v27  ;;  %v4732_v28 = vrot.slane %v4716_v26, %v7215_v6 }
0x1911   :  { %v4682_v33 = vcombine.high %v4678_v29, %v4678_v29  ;;  %v4780_v34 = vcombine.low %v4657_v43, %v4671_v49  ;;  %v5769_v7 = vcombine.high %v4657_v43, %v4671_v49  ;;  %v4865_v36 = vcombine.low %v4678_v29, %v4680_v58 }
0x1912   :  { %v4817_v61 = vrot.slane %v4802_v17, %v7215_v6  ;;  %v4739_v43 = vrot.slane %v4723_v27, %v7215_v6  ;;  %v4779_v49 = vrot.slane %v4765_v1, %v7215_v6  ;;  %v4772_v29 = vrot.slane %v4764_v42, %v7215_v6  ;;  %v5775_v27 = vld [vmem:[%s7829_s6 + $0x1c] sm:$0xf] }
0x1913   :  { %v4788_v39 = vrot.slane %v4780_v34, %v7215_v6  ;;  %v4795_v40 = vrot.slane %v5769_v7, %v7215_v6  ;;  %v4866_v20 = vcombine.low %v4682_v33, %v4697_v30  ;;  %v4873_v50 = vrot.slane %v4865_v36, %v7215_v6 }
0x1914   :  { %v4746_v58 = vrot.slane %v4724_v14, %v7215_v6  ;;  %v4753_v30 = vrot.slane %v4725_v54, %v7215_v6  ;;  %v4755_v31 = vcombine.high %v4739_v43, %v4739_v43  ;;  %v5151_v14 = vsel %vm463_vm4, %v5775_v27, 0 }
0x1915   :  { %v4803_v48 = vcombine.low %v4788_v39, %v4795_v40  ;;  %v4880_v53 = vrot.slane %v4866_v20, %v7215_v6  ;;  %v5079_v39 = vrot.slane %v4779_v49, %v7215_v6  ;;  %v4994_v20 = vrot.slane %v4739_v43, %v7215_v6 }
0x1916   :  { %v4757_v33 = vcombine.high %v4753_v30, %v4753_v30  ;;  %v4972_v34 = vcombine.low %v4732_v28, %v4746_v58  ;;  %v5772_v7 = vcombine.high %v4732_v28, %v4746_v58  ;;  %v5057_v36 = vcombine.low %v4753_v30, %v4755_v31 }
0x1917   :  { %v4810_v59 = vrot.slane %v4803_v48, %v7215_v6  ;;  %v4888_v63 = vcombine.low %v4873_v50, %v4880_v53 }
0x1918   :  { %v4980_v40 = vrot.slane %v4972_v34, %v7215_v6  ;;  %v4987_v17 = vrot.slane %v5772_v7, %v7215_v6  ;;  %v5058_v44 = vcombine.low %v4757_v33, %v4772_v29  ;;  %v5065_v50 = vrot.slane %v5057_v36, %v7215_v6 }
0x1919   :  { %v4818_v21 = vcombine.low %v4810_v59, %v4817_v61  ;;  %v4895_v4 = vrot.slane %v4888_v63, %v7215_v6  ;;  %v5009_v59 = vrot.slane %v4994_v20, %v7215_v6  ;;  %v5094_v63 = vrot.slane %v5079_v39, %v7215_v6 }
0x191a   :  { %v4995_v48 = vcombine.low %v4980_v40, %v4987_v17  ;;  %v5072_v53 = vrot.slane %v5058_v44, %v7215_v6  ;;  %v5777_v44 = vld [vmem:[%s7830_s7 + $0x1] ss:$0 sm:$0xff] }
0x191b   :  { %v4823_v8 = vsel %vm345_vm3, %v4818_v21, 0  ;;  %v4903_v46 = vcombine.low %v4895_v4, %v4902_v23 }
0x191c   :  { %6397 = vmatpush3.bf16.xpose.msra.mxu1 %v4823_v8  ;;  %v5002_v57 = vrot.slane %v4995_v48, %v7215_v6  ;;  %v5080_v61 = vcombine.low %v5065_v50, %v5072_v53 }
0x191d   :  { %v4908_v60 = vsel %vm345_vm3, %v4903_v46, 0  ;;  %6408 = vmatprep.subr.bf16.mxu1 %v6665_v16 }
0x191e   :  { %6403 = vmatpush3.bf16.xpose.msra.mxu0 %v4908_v60  ;;  %v5010_v0 = vcombine.low %v5002_v57, %v5009_v59  ;;  %v5087_v21 = vrot.slane %v5080_v61, %v7215_v6 }
0x191f   :  { %6414 = vmatprep.subr.bf16.mxu0 %v6665_v16 }
0x1920   :  { %v5015_v4 = vsel %vm2684_vm12, %v5010_v0, 0  ;;  %v5095_v23 = vcombine.low %v5087_v21, %v5094_v63 }
0x1922   :  { %v5100_v5 = vsel %vm2684_vm12, %v5095_v23, 0 }
0x1923   :  { %6399 = vmatmul.mubr.msk.bf16.vlgmr.msra.gmra.mrb[116].mxu1 %vm345_vm3, %v5822_v2 }
0x1924   :  { %6410 = vmatprep.mubr.msk.bf16.mxu1 %vm6666_vm1, %v6665_v16  ;;  %6409 = vmatpush3.bf16.msra.mxu1 %v5015_v4 }
0x1925   :  { %6405 = vmatmul.mubr.msk.bf16.vlgmr.msra.gmra.mrb[120].mxu0 %vm345_vm3, %v5823_v52  ;;  %6420 = vmatprep.subr.bf16.mxu1 %v6665_v16 }
0x1926   :  { %6416 = vmatprep.mubr.msk.bf16.mxu0 %vm6666_vm1, %v6665_v16  ;;  %6415 = vmatpush3.bf16.msra.mxu0 %v5100_v5 }
0x1927   :  { %6426 = vmatprep.subr.bf16.mxu0 %v6665_v16 }
0x19f6   :  { %v4859_v8 = vpop.f32.mrb[116].mxu1 }
0x19f7   :  { %v4860_v46 = vadd.f32 %v4859_v8, %v7306_v9  ;;  %v6400_v56 = vpop.f32.mrb[117].mxu1 }
0x19f8   :  { %v4862_v60 = vpop.f32.mrb[118].mxu1  ;;  %v4944_v62 = vpop.f32.mrb[120].mxu0 }
0x19f9   :  { %v4945_v2 = vadd.f32 %v4944_v62, %v7309_v10  ;;  %v6401_v6 = vpop.f32.mrb[119].mxu1  ;;  %v6406_v52 = vpop.f32.mrb[121].mxu0  ;;  %v4950_v3 = vsel %vm2619_vm15, %v4860_v46, -inf }
0x19fa   :  { %v4947_v55 = vpop.f32.mrb[122].mxu0  ;;  %4951 = vmax.xlane.f32.xlu0 %v4950_v3  ;;  %v2818_v6 = vmul.f32 %v7438_v19, %v7318_v32  ;;  %v6511_v32 = vld [vmem:[%s7835_s12] sm:$0xff]  }
0x19fb   :  { %v6407_v47 = vpop.f32.mrb[123].mxu0  ;;  %v4953_v11 = vsel %vm2619_vm15, %v4945_v2, -inf  ;;  %v6509_v55 = vld [vmem:[%s7833_s10] sm:$0xff]  }
0x19fc   :  { %4954 = vmax.xlane.f32.xlu1 %v4953_v11  ;;  %v5416_v3 = vmul.f32 0.0, %v2818_v6  ;;  %v6510_v47 = vld [vmem:[%s7833_s10 + $0x8] sm:$0xff]  }
0x1a87   :  { %v4952_v13 = vpop.xlane.xlu0 %4951 }
0x1a88   :  { %v4956_v15 = vsub.f32 %v4860_v46, %v4952_v13 }
0x1a89   :  { %v4955_v18 = vpop.xlane.xlu1 %4954 }
0x1a8a   :  { %v4958_v22 = vmul.f32 1.442695, %v4956_v15  ;;  %v4957_v9 = vsub.f32 %v4945_v2, %v4955_v18  ;;  %v2819_v2 = vmul.f32 %v7441_v24, %v7325_v35  ;;  %v6512_v35 = vld [vmem:[%s7835_s12 + $0x8] sm:$0xff]  }
0x1a8c   :  { %6579 = vpow2.f32 %v4958_v22  ;;  %v4960_v37 = vmul.f32 1.442695, %v4957_v9  ;;  %v5417_v52 = vmul.f32 0.0, %v2819_v2 }
0x1a8e   :  { %6581 = vpow2.f32 %v4960_v37 }
0x1a96   :  { %v6580_v42 = vpop.eup %6579 }
0x1a97   :  { %v4962_v10 = vsel %vm2619_vm15, %v6580_v42, 0.0  ;;  %v4970_v12 = vpack.c.bf16 %v6580_v42, %v6580_v42 }
0x1a98   :  { %v6582_v25 = vpop.eup %6581  ;;  %4963 = vadd.xlane.f32.xlu0 %v4962_v10 }
0x1a99   :  { %6411 = vmatmul.mubr.msk.bf16.vlgmr.msra.gmra.mrb[120].mxu1 %vm2619_vm15, %v4970_v12  ;;  %v4965_v1 = vsel %vm2619_vm15, %v6582_v25, 0.0  ;;  %v4971_v26 = vpack.c.bf16 %v6582_v25, %v6582_v25  ;;  %v5778_v12 = vld [vmem:[%s7831_s8 + $0x2] ss:$0 sm:$0xff] }
0x1a9a   :  { %4966 = vadd.xlane.f32.xlu1 %v4965_v1  ;;  %6422 = vmatprep.mubr.msk.bf16.mxu1 %vm6666_vm1, %v6665_v16 }
0x1a9b   :  { %6417 = vmatmul.mubr.msk.bf16.vlgmr.msra.gmra.mrb[124].mxu0 %vm2619_vm15, %v4971_v26  ;;  %6421 = vmatpush3.bf16.msra.mxu1 %v5151_v14  ;;  %v5779_v14 = vld [vmem:[%s7832_s9 + $0x2] ss:$0 sm:$0xff] }
0x1a9c   :  { %6430 = vmatprep.mubr.msk.bf16.mxu0 %vm6666_vm1, %v6665_v16  ;;  %6434 = vmatprep.subr.bf16.mxu1 %v6665_v16 }
0x1a9d   :  { %6427 = vmatpush3.bf16.msra.mxu0 %v6509_v55 }
0x1a9e   :  { %6428 = vmatprep.subr.bf16.mxu0 %v6665_v16 }
0x1aa1   :  { %6429 = vmatpush3.bf16.msra.mxu0 %v6510_v47 }
0x1b25   :  { %v4964_v54 = vpop.xlane.xlu0 %4963 }
0x1b26   :  { %6583 = vrcp.f32 %v4964_v54 }
0x1b27   :  { %v4967_v28 = vpop.xlane.xlu1 %4966 }
0x1b28   :  { %6585 = vrcp.f32 %v4967_v28 }
0x1b30   :  { %v6584_v49 = vpop.eup %6583 }
0x1b32   :  { %v6586_v58 = vpop.eup %6585 }
0x1b6c   :  { %v5051_v43 = vpop.f32.mrb[120].mxu1 }
0x1b6d   :  { %v6412_v29 = vpop.f32.mrb[121].mxu1  ;;  %v5142_v33 = vmul.f32 %v6584_v49, %v5051_v43 }
0x1b6e   :  { %v5054_v30 = vpop.f32.mrb[122].mxu1  ;;  %v5136_v31 = vpop.f32.mrb[124].mxu0  ;;  %v6513_v29 = vld [vmem:[%s7835_s12 + $0x10] sm:$0xff]  }
0x1b6f   :  { %v5143_v34 = vmul.f32 %v6586_v58, %v5136_v31  ;;  %v6413_v7 = vpop.f32.mrb[123].mxu1  ;;  %v6418_v36 = vpop.f32.mrb[125].mxu0  ;;  %v6514_v58 = vld [vmem:[%s7835_s12 + $0x18] sm:$0xff]   ;;  %v5781_v30 = vld [vmem:[%s7834_s11] ss:$0 sm:$0xff]  ;;  %s6595_s12 = scalar_lea.vmem %s5450_s21, 256 }
0x1b70   :  { %v5139_v39 = vpop.f32.mrb[126].mxu0  ;;  %p6596_p0 = scmp.ne.s32.totalorder %s5450_s21, %s6595_s12  ;;  %p6601_p2 = scmp.lt.s32.totalorder %s6595_s12, %s6595_s12 }
0x1b71   :  { %v5144_v40 = vpack.c.bf16 %v5143_v34, %v5142_v33  ;;  %v6419_v17 = vpop.f32.mrb[127].mxu0 }
0x1b72   :  { %p6602_p3 = por %p6601_p2, %p6600_p1 }
0x1b73   :  { %6423 = vmatmul.mubr.msk.bf16.vlgmr.msra.gmra.mrb[124].mxu1 %vm345_vm3, %v5144_v40 }
0x1b74   :  { %6442 = vmatprep.mubr.msk.bf16.mxu1 %vm6666_vm1, %v6665_v16  ;;  %6435 = vmatpush3.bf16.msra.mxu1 %v6511_v32  ;;  %vm5357_vm1 = vcmask 523264   ;;  %p6603_p4 = pnand %p6602_p3, %p6596_p0 }
0x1b75   :  { %6436 = vmatprep.subr.bf16.mxu1 %v6665_v16 }
0x1b78   :  { %6437 = vmatpush3.bf16.msra.mxu1 %v6512_v35 }
0x1b79   :  { %6438 = vmatprep.subr.bf16.mxu1 %v6665_v16 }
0x1b7c   :  { %6439 = vmatpush3.bf16.msra.mxu1 %v6513_v29 }
0x1b7d   :  { %6440 = vmatprep.subr.bf16.mxu1 %v6665_v16 }
0x1b80   :  { %6441 = vmatpush3.bf16.msra.mxu1 %v6514_v58 }
0x1c46   :  { %v5187_v20 = vpop.f32.mrb[124].mxu1 }
0x1c47   :  { %v5194_v48 = vadd.f32 %v5187_v20, %v7629_v51  ;;  %v6424_v50 = vpop.f32.mrb[125].mxu1 }
0x1c48   :  { %v5190_v53 = vpop.f32.mrb[126].mxu1 }
0x1c49   :  { %v5201_v57 = vadd.f32 %v5777_v44, %v5194_v48  ;;  %v5195_v59 = vadd.f32 %v5190_v53, %v7632_v45  ;;  %v6425_v61 = vpop.f32.mrb[127].mxu1 }
0x1c4b   :  { %v7723_v63 = vadd.f32 %v5201_v57, %v7152_v38  ;;  %v5202_v0 = vadd.f32 %v5777_v44, %v5195_v59 }
0x1c4d   :  { %v7726_v21 = vadd.f32 %v5202_v0, %v7157_v41  ;;  %v5207_v4 = vsel %vm93_vm0, %v7723_v63, 0.0 }
0x1c4e   :  { %5208 = vadd.xlane.f32.xlu0 %v5207_v4 }
0x1c4f   :  { %v5210_v51 = vsel %vm93_vm0, %v7726_v21, 0.0 }
0x1c50   :  { %5211 = vadd.xlane.f32.xlu1 %v5210_v51 }
0x1cdb   :  { %v5209_v23 = vpop.xlane.xlu0 %5208 }
0x1cdc   :  { %v5213_v5 = vmul.f32 0.03125, %v5209_v23 }
0x1cdd   :  { %v5212_v8 = vpop.xlane.xlu1 %5211 }
0x1cde   :  { %v5215_v45 = vsub.f32 %v7723_v63, %v5213_v5  ;;  %v5214_v46 = vmul.f32 0.03125, %v5212_v8 }
0x1ce0   :  { %v5216_v38 = vsub.f32 %v7726_v21, %v5214_v46  ;;  %v5217_v56 = vmul.f32 %v5215_v45, %v5215_v45 }
0x1ce2   :  { %v5219_v41 = vsel %vm93_vm0, %v5217_v56, 0.0  ;;  %v5218_v60 = vmul.f32 %v5216_v38, %v5216_v38 }
0x1ce3   :  { %5220 = vadd.xlane.f32.xlu0 %v5219_v41 }
0x1ce4   :  { %v5222_v62 = vsel %vm93_vm0, %v5218_v60, 0.0 }
0x1ce5   :  { %5223 = vadd.xlane.f32.xlu1 %v5222_v62 }
0x1cf6   :  { %5425 = vperm.xlu1 %6458, %v5417_v52  }
0x1cf9   :  { %5420 = vperm.xlu0 %6457, %v5416_v3  }
0x1d70   :  { %v5221_v19 = vpop.xlane.xlu0 %5220 }
0x1d71   :  { %v5225_v24 = vmul.f32 0.03125, %v5221_v19 }
0x1d72   :  { %v5224_v11 = vpop.xlane.xlu1 %5223 }
0x1d73   :  { %v5227_v13 = vadd.f32 1e-06, %v5225_v24  ;;  %v5226_v15 = vmul.f32 0.03125, %v5224_v11 }
0x1d75   :  { %6587 = vrsqrt.f32 %v5227_v13  ;;  %v5228_v18 = vadd.f32 1e-06, %v5226_v15 }
0x1d76   :  { %v5426_v22 = vpop.permute.xlu1 %5425 }
0x1d77   :  { %6589 = vrsqrt.f32 %v5228_v18  ;;  %v5429_v9 = vsel %vm2619_vm15, %v2819_v2, %v5426_v22 }
0x1d78   :  { %5431 = vst [vmem:[#allocation4 + $0x8] sm:$0xff] %v5429_v9  ;;  %v5421_v37 = vpop.permute.xlu0 %5420 }
0x1d79   :  { %v5428_v42 = vsel %vm2619_vm15, %v2818_v6, %v5421_v37 }
0x1d7a   :  { %5430 = vst [vmem:[#allocation4] sm:$0xff] %v5428_v42 }
0x1d7f   :  { %v6588_v10 = vpop.eup %6587 }
0x1d80   :  { %v5231_v25 = vmul.f32 %v6588_v10, %v5215_v45 }
0x1d81   :  { %v6590_v1 = vpop.eup %6589 }
0x1d82   :  { %v5237_v26 = vmul.f32 %v5778_v12, %v5231_v25  ;;  %v5232_v27 = vmul.f32 %v6590_v1, %v5216_v38 }
0x1d84   :  { %v5238_v54 = vmul.f32 %v5778_v12, %v5232_v27  ;;  %v5243_v28 = vadd.f32 %v5779_v14, %v5237_v26 }
0x1d86   :  { %v5244_v43 = vadd.f32 %v5779_v14, %v5238_v54 }
0x1d88   :  { %v5245_v49 = vpack.c.bf16 %v5244_v43, %v5243_v28 }
0x1d8a   :  { %6431 = vmatmul.mubr.msk.bf16.vlgmr.msra.gmra.mrb[128].mxu0 %vm93_vm0, %v5245_v49 }
0x1e5d   :  { %v5315_v31 = vpop.f32.mrb[128].mxu0 }
0x1e5e   :  { %v5316_v33 = vadd.f32 %v5781_v30, %v5315_v31  ;;  %v6432_v34 = vpop.f32.mrb[129].mxu0 }
0x1e5f   :  { %v5318_v7 = vpop.f32.mrb[130].mxu0 }
0x1e60   :  { %v5319_v36 = vadd.f32 %v5781_v30, %v5318_v7  ;;  %v6433_v39 = vpop.f32.mrb[131].mxu0  ;;  %v5322_v40 = vmax.f32 %v5316_v33, 0.0 }
0x1e62   :  { %v5323_v17 = vmax.f32 %v5319_v36, 0.0 }
0x1e64   :  { %v5324_v20 = vpack.c.bf16 %v5323_v17, %v5322_v40 }
0x1e66   :  { %6443 = vmatmul.mubr.msk.bf16.vlgmr.msra.gmra.mrb[128].mxu1 %vm5357_vm1, %v5324_v20 }
0x1e67   :  { %6606 = shalt.err (!%p6603_p4)
}
0x1e68   :  { %s6607_s5 = scalar_lea.hbm %s7838_s15, 256 }
0x1e69   :  { %p6608_p5 = scmp.ne.s32.totalorder %s7838_s15, %s6607_s5  ;;  %p6611_p6 = scmp.lt.u32.totalorder %s6607_s5, %s7838_s15 }
0x1e6b   :  { %p6613_p7 = pnand %p6611_p6, %p6608_p5 }
0x1e6d   :  { %6616 = shalt.err (!%p6613_p7)
}
0x1e6e   :  { %s6670_s25 = smov 128   ;;  %s6671_s26 = smov 8  }
0x1e6f   :  { %5455 = dma.vmem_to_hbm [thread:$0]  %s5450_s21, 256, %s7838_s15, [#allocation5], %s6670_s25, %s6670_s25, %s6671_s26  }
0x1e70   :  { %s6672_s3 = smov [#allocation6]  }
0x1e71   :  { %s5461_s29 = sshll.u32 %s6672_s3, 4  ;;  %s5462_s29 = int_to_ptr.vmem [resolvable:$true] %s5461_s29 }
0x1e72   :  { %s6617_s30 = scalar_lea.vmem %s5462_s29, 128  ;;  %p6622_p9 = scmp.lt.s32.totalorder %s5462_s29, %s5462_s29 }
0x1e73   :  { %p6618_p8 = scmp.ne.s32.totalorder %s5462_s29, %s6617_s30  ;;  %p6623_p10 = scmp.lt.s32.totalorder %s6617_s30, %s6617_s30 }
0x1e75   :  { %p6624_p11 = por %p6623_p10, %p6622_p9 }
0x1e77   :  { %p6625_p12 = pnand %p6624_p11, %p6618_p8 }
0x1e79   :  { %6628 = shalt.err (!%p6625_p12)
}
0x1e7a   :  { %s6629_s17 = scalar_lea.hbm %s7839_s16, 128 }
0x1e7b   :  { %p6630_p13 = scmp.ne.s32.totalorder %s7839_s16, %s6629_s17  ;;  %p6633_p0 = scmp.lt.u32.totalorder %s6629_s17, %s7839_s16 }
0x1e7d   :  { %p6635_p1 = pnand %p6633_p0, %p6630_p13 }
0x1e7f   :  { %6638 = shalt.err (!%p6635_p1)
}
0x1e80   :  { %s6673_s8 = smov 64   ;;  %s6674_s4 = smov 4   ;;  %v5780_v16 = vld [vmem:[%s7836_s13] ss:$0 sm:$0xff] }
0x1e81   :  { %5467 = dma.vmem_to_hbm [thread:$0]  %s5462_s29, 128, %s7839_s16, [#allocation5], %s6673_s8, %s6673_s8, %s6674_s4   ;;  %v5253_v44 = vadd.f32 %v5780_v16, %v7723_v63  ;;  %v5254_v57 = vadd.f32 %v5780_v16, %v7726_v21 }
0x1e82   :  { %s6675_s12 = smov [#allocation2]  }
0x1e83   :  { %s5437_s11 = sshll.u32 %s6675_s12, 4  ;;  %s5438_s11 = int_to_ptr.vmem [resolvable:$true] %s5437_s11 }
0x1e84   :  { %s6639_s16 = scalar_lea.vmem %s5438_s11, 256  ;;  %p6644_p3 = scmp.lt.s32.totalorder %s5438_s11, %s5438_s11 }
0x1e85   :  { %p6640_p2 = scmp.ne.s32.totalorder %s5438_s11, %s6639_s16  ;;  %p6645_p4 = scmp.lt.s32.totalorder %s6639_s16, %s6639_s16 }
0x1e87   :  { %p6646_p5 = por %p6645_p4, %p6644_p3 }
0x1e89   :  { %p6647_p6 = pnand %p6646_p5, %p6640_p2 }
0x1f39   :  { %v5395_v48 = vpop.f32.mrb[128].mxu1 }
0x1f3a   :  { %v5402_v50 = vadd.f32 %v5395_v48, %v5253_v44  ;;  %v6444_v53 = vpop.f32.mrb[129].mxu1 }
0x1f3b   :  { %v5398_v59 = vpop.f32.mrb[130].mxu1 }
0x1f3c   :  { %5404 = vst.msk [vmem:[#allocation2] sm:$0xff] %vm93_vm0, %v5402_v50  ;;  %v5403_v61 = vadd.f32 %v5398_v59, %v5254_v57  ;;  %v6445_v0 = vpop.f32.mrb[131].mxu1 }
0x1f3e   :  { %5405 = vst.msk [vmem:[#allocation2 + $0x8] sm:$0xff] %vm93_vm0, %v5403_v61 }
0x1f3f   :  { %6650 = shalt.err (!%p6647_p6)
}
0x1f40   :  { %s6651_s5 = scalar_lea.hbm %s7837_s14, 256 }
0x1f41   :  { %p6652_p7 = scmp.ne.s32.totalorder %s7837_s14, %s6651_s5  ;;  %p6655_p8 = scmp.lt.u32.totalorder %s6651_s5, %s7837_s14 }
0x1f43   :  { %p6657_p9 = pnand %p6655_p8, %p6652_p7 }
0x1f45   :  { %6660 = shalt.err (!%p6657_p9)
}
0x1f46   :  { %5443 = dma.vmem_to_hbm [thread:$0]  %s5438_s11, 256, %s7837_s14, [#allocation3], %s6670_s25, %s6670_s25, %s6671_s26  }
0x1f47   :  { %6661 = dma.done.wait [#allocation3], 256  }
0x1f48   :  { %6662 = vsyncadd [#allocation3], 4294967040 }
0x1f49   :  { %6663 = dma.done.wait [#allocation5], 384  }
0x1f4a   :  { %6664 = vsyncadd [#allocation5], 4294966912 }
0x1f4b   :  { %5477 = vsyncpa [#allocation3], 1 }
0x1f4c   :  { %5478 = vsyncpa [#allocation5], 1 }

</bundles_post_ra>
